<compile_context>
chip_gen: v7x
topology: tpu7x:2x2x1
jax: 0.10.0
libtpu: 0.0.40
codegen_flags: <defaults>
</compile_context>

<pallas_src>
import functools

import numpy as np
import jax
import jax.numpy as jnp
from jax.experimental import pallas as pl
from jax.experimental.pallas import tpu as pltpu

DROPOUT = 0.5          # eval mode -> identity
NUM_CLASSES = 2        # len(label_map)
C1, C2, FEAT = 32, 64, 128


# --------------------------------------------------------------------------
# Pallas kernels
# --------------------------------------------------------------------------

def _branch_kernel(x_ref, w1_ref, b1_ref, w2_ref, b2_ref, wf_ref, bf_ref,
                   feat_ref, s1_ref, p2p_ref, *, N, H, W):
    """One full branch for one grid step (grid axis = branch).

    x_ref  : (1, N, H+2, W+2, 3)   spatially pre-padded NHWC input
    w1_ref : (1, 9, 3, 32) bf16    conv1 taps (dy,dx)-major
    b1_ref : (1, 1, 32) f32
    w2_ref : (1, 9, 32, 64) bf16   conv2 taps
    b2_ref : (1, 1, 64) f32
    wf_ref : (1, H4*W4, 64, 128) bf16  AdaptiveAvgPool(7,7)+Flatten+Linear folded weight
    bf_ref : (1, 1, 128) f32
    feat_ref: (1, N, 128) f32      branch feature output (lane-dense, 128 lanes)
    s1_ref : VMEM (N*H/2, W, 32)   staging for H-pooled conv1 activation
    p2p_ref: VMEM (N, H/2+2, W/2+2, 32)  zero-padded conv2 input
    """
    H2, W2 = H // 2, W // 2
    H4, W4 = H2 // 2, W2 // 2
    f32, bf16 = jnp.float32, jnp.bfloat16

    # ---- Conv2d(3 -> 32, 3x3, pad=1) + ReLU; batch folded into matmul rows ----
    acc = None
    for t in range(9):
        dy, dx = divmod(t, 3)
        win = x_ref[0, :, dy:dy + H, dx:dx + W, :]           # (N, H, W, 3)
        win = win.reshape(N * H * W, 3).astype(bf16)
        d = jnp.dot(win, w1_ref[0, t], preferred_element_type=f32)
        acc = d if acc is None else acc + d
    a1 = jnp.maximum(acc + b1_ref[0], 0.0)                   # (N*H*W, 32) f32

    # ---- MaxPool2d(2): H direction via aligned slices, W direction via strided loads ----
    v = a1.reshape(N * H2, 2 * W, C1)                        # rows (n,h2), cols (h parity, w)
    a1h = jnp.maximum(v[:, :W, :], v[:, W:, :])              # (N*H2, W, 32)
    s1_ref[...] = a1h
    p1 = jnp.maximum(s1_ref[:, pl.ds(0, W2, stride=2), :],
                     s1_ref[:, pl.ds(1, W2, stride=2), :])   # (N*H2, W2, 32)

    # ---- zero-padded conv2 input staged in VMEM (never touches HBM) ----
    p2p_ref[...] = jnp.zeros_like(p2p_ref)
    p2p_ref[:, 1:1 + H2, 1:1 + W2, :] = p1.reshape(N, H2, W2, C1)

    # ---- Conv2d(32 -> 64, 3x3, pad=1) + ReLU ----
    acc2 = None
    for t in range(9):
        dy, dx = divmod(t, 3)
        win = p2p_ref[:, dy:dy + H2, dx:dx + W2, :]          # (N, H2, W2, 32)
        win = win.reshape(N * H2 * W2, C1).astype(bf16)
        d = jnp.dot(win, w2_ref[0, t], preferred_element_type=f32)
        acc2 = d if acc2 is None else acc2 + d
    a2 = jnp.maximum(acc2 + b2_ref[0], 0.0)                  # (N*H2*W2, 64)

    # ---- MaxPool2d(2): H direction now; W direction fused into the FC loop below ----
    v2 = a2.reshape(N * H4, 2 * W2, C2)
    a2h = jnp.maximum(v2[:, :W2, :], v2[:, W2:, :])          # (N*H4, W2, 64)
    a2h = a2h.reshape(N, H4, W2, C2)

    # ---- AdaptiveAvgPool2d((7,7)) + Flatten + Linear(3136,128) + ReLU ----
    # (adaptive pool + flatten are linear and pre-folded into wf_ref; maxpool-W on the fly)
    fc = None
    for h4 in range(H4):
        for w4 in range(W4):
            xs = jnp.maximum(a2h[:, h4, 2 * w4, :],
                             a2h[:, h4, 2 * w4 + 1, :]).astype(bf16)   # (N, 64)
            d = jnp.dot(xs, wf_ref[0, h4 * W4 + w4], preferred_element_type=f32)
            fc = d if fc is None else fc + d
    feat_ref[0] = jnp.maximum(fc + bf_ref[0], 0.0)           # (N, 128)
    # Dropout(DROPOUT) is identity in eval mode.


def _head_kernel(feat_ref, w1_ref, b1_ref, w2_ref, b2_ref, out_ref):
    """fused = cat(feats); ReLU(fused @ W1 + b1) @ W2 + b2  (concat -> 3 accumulated dots).

    feat_ref: (3, N, 128) f32; w1_ref: (3, 128, 128) bf16; b1_ref: (1, 128) f32
    w2_ref  : (128, NUM_CLASSES) bf16; b2_ref: (1, NUM_CLASSES) f32; out_ref: (N, NUM_CLASSES)
    """
    f32, bf16 = jnp.float32, jnp.bfloat16
    h = None
    for br in range(3):
        d = jnp.dot(feat_ref[br].astype(bf16), w1_ref[br], preferred_element_type=f32)
        h = d if h is None else h + d
    h = jnp.maximum(h + b1_ref[...], 0.0)
    # Dropout(DROPOUT) is identity in eval mode.
    out = jnp.dot(h.astype(bf16), w2_ref[...], preferred_element_type=f32)
    out_ref[...] = out + b2_ref[...]


# --------------------------------------------------------------------------
# Parameters (deterministic synthetic init, PyTorch-style uniform(-1/sqrt(fan_in)))
# --------------------------------------------------------------------------

def _adaptive_matrix(in_size, out_size):
    # PyTorch AdaptiveAvgPool bin rule: start=floor(i*in/out), end=ceil((i+1)*in/out)
    A = np.zeros((out_size, in_size), np.float32)
    for i in range(out_size):
        s = (i * in_size) // out_size
        e = -((-(i + 1) * in_size) // out_size)
        A[i, s:e] = 1.0 / (e - s)
    return A


def init_params(key, H, W):
    H4, W4 = H // 4, W // 4
    Ah = jnp.asarray(_adaptive_matrix(H4, 7))     # (7, H4)
    Aw = jnp.asarray(_adaptive_matrix(W4, 7))     # (7, W4)

    def init_branch(k):
        k1, k1b, k2, k2b, k3, k3b = jax.random.split(k, 6)
        bc1 = 1.0 / np.sqrt(3 * 9)
        w1 = jax.random.uniform(k1, (9, 3, C1), jnp.float32, -bc1, bc1)
        b1 = jax.random.uniform(k1b, (1, C1), jnp.float32, -bc1, bc1)
        bc2 = 1.0 / np.sqrt(C1 * 9)
        w2 = jax.random.uniform(k2, (9, C1, C2), jnp.float32, -bc2, bc2)
        b2 = jax.random.uniform(k2b, (1, C2), jnp.float32, -bc2, bc2)
        bcf = 1.0 / np.sqrt(C2 * 7 * 7)
        # "torch-layout" Linear weight over the NCHW flatten of the 7x7 adaptive pool ...
        wf_torch = jax.random.uniform(k3, (C2 * 7 * 7, FEAT), jnp.float32, -bcf, bcf)
        bf = jax.random.uniform(k3b, (1, FEAT), jnp.float32, -bcf, bcf)
        # ... folded (offline, once) with the adaptive-pool averaging matrices:
        #     W_eff[h4,w4,c,o] = sum_{i,j} Ah[i,h4] Aw[j,w4] wf_torch[c*49+i*7+j, o]
        wf_eff = jnp.einsum('ih,jw,cijo->hwco', Ah, Aw,
                            wf_torch.reshape(C2, 7, 7, FEAT)).reshape(H4 * W4, C2, FEAT)
        return w1, b1, w2, b2, wf_eff, bf

    kb = jax.random.split(key, 5)
    branches = [init_branch(kb[i]) for i in range(3)]    # spatial, temporal, pose
    params = dict(
        w1s=jnp.stack([b[0] for b in branches]).astype(jnp.bfloat16),   # (3, 9, 3, 32)
        b1s=jnp.stack([b[1] for b in branches]),                        # (3, 1, 32)
        w2s=jnp.stack([b[2] for b in branches]).astype(jnp.bfloat16),   # (3, 9, 32, 64)
        b2s=jnp.stack([b[3] for b in branches]),                        # (3, 1, 64)
        wfs=jnp.stack([b[4] for b in branches]).astype(jnp.bfloat16),   # (3, 16, 64, 128)
        bfs=jnp.stack([b[5] for b in branches]),                        # (3, 1, 128)
    )

    kf1, kf1b, kf2, kf2b = jax.random.split(kb[3], 4)
    bcf1 = 1.0 / np.sqrt(FEAT * 3)
    fw1 = jax.random.uniform(kf1, (3 * FEAT, FEAT), jnp.float32, -bcf1, bcf1)
    fb1 = jax.random.uniform(kf1b, (1, FEAT), jnp.float32, -bcf1, bcf1)
    bcf2 = 1.0 / np.sqrt(FEAT)
    fw2 = jax.random.uniform(kf2, (FEAT, NUM_CLASSES), jnp.float32, -bcf2, bcf2)
    fb2 = jax.random.uniform(kf2b, (1, NUM_CLASSES), jnp.float32, -bcf2, bcf2)
    # Split the (384,128) fusion weight per branch so the head kernel never concatenates:
    # cat(f0,f1,f2) @ W1 == f0 @ W1[0:128] + f1 @ W1[128:256] + f2 @ W1[256:384]
    params.update(
        fw1s=fw1.reshape(3, FEAT, FEAT).astype(jnp.bfloat16),
        fb1=fb1,
        fw2=fw2.astype(jnp.bfloat16),
        fb2=fb2,
    )
    return params


# --------------------------------------------------------------------------
# Forward pass
# --------------------------------------------------------------------------

@jax.jit
def three_stream_forward(params, spatial, temporal, pose):
    N, Cin, H, W = spatial.shape
    assert Cin == 3 and H % 4 == 0 and W % 4 == 0
    H2, W2, H4, W4 = H // 2, W // 2, H // 4, W // 4

    # Input prep (once, before the kernel): NCHW -> NHWC, stack branches, pad 1 px.
    x = jnp.stack([spatial, temporal, pose])                     # (3, N, 3, H, W)
    x = jnp.transpose(x, (0, 1, 3, 4, 2))                        # (3, N, H, W, 3)
    x = jnp.pad(x, ((0, 0), (0, 0), (1, 1), (1, 1), (0, 0)))     # (3, N, H+2, W+2, 3)

    # ---- single fused trunk kernel: grid axis = branch (parallel => 2 TCs on v7x) ----
    feats = pl.pallas_call(
        functools.partial(_branch_kernel, N=N, H=H, W=W),
        out_shape=jax.ShapeDtypeStruct((3, N, FEAT), jnp.float32),
        grid=(3,),
        in_specs=[
            pl.BlockSpec((1, N, H + 2, W + 2, 3), lambda b: (b, 0, 0, 0, 0)),
            pl.BlockSpec((1, 9, 3, C1), lambda b: (b, 0, 0, 0)),
            pl.BlockSpec((1, 1, C1), lambda b: (b, 0, 0)),
            pl.BlockSpec((1, 9, C1, C2), lambda b: (b, 0, 0, 0)),
            pl.BlockSpec((1, 1, C2), lambda b: (b, 0, 0)),
            pl.BlockSpec((1, H4 * W4, C2, FEAT), lambda b: (b, 0, 0, 0)),
            pl.BlockSpec((1, 1, FEAT), lambda b: (b, 0, 0)),
        ],
        out_specs=pl.BlockSpec((1, N, FEAT), lambda b: (b, 0, 0)),
        scratch_shapes=[
            pltpu.VMEM((N * H2, W, C1), jnp.float32),          # H-pooled conv1 staging
            pltpu.VMEM((N, H2 + 2, W2 + 2, C1), jnp.float32),  # zero-padded conv2 input
        ],
        compiler_params=pltpu.CompilerParams(dimension_semantics=("parallel",)),
    )(x, params["w1s"], params["b1s"], params["w2s"], params["b2s"],
      params["wfs"], params["bfs"])

    # ---- fused head kernel: concat + Linear(384,128)+ReLU + Linear(128,num_classes) ----
    out = pl.pallas_call(
        _head_kernel,
        out_shape=jax.ShapeDtypeStruct((N, NUM_CLASSES), jnp.float32),
        grid=(1,),
        in_specs=[
            pl.BlockSpec((3, N, FEAT), lambda i: (0, 0, 0)),
            pl.BlockSpec((3, FEAT, FEAT), lambda i: (0, 0, 0)),
            pl.BlockSpec((1, FEAT), lambda i: (0, 0)),
            pl.BlockSpec((FEAT, NUM_CLASSES), lambda i: (0, 0)),
            pl.BlockSpec((1, NUM_CLASSES), lambda i: (0, 0)),
        ],
        out_specs=pl.BlockSpec((N, NUM_CLASSES), lambda i: (0, 0)),
    )(feats, params["fw1s"], params["fb1"], params["fw2"], params["fb2"])
    return out


# --------------------------------------------------------------------------

if __name__ == "__main__":
    key = jax.random.PRNGKey(0)
    kp, ks, kt, kq = jax.random.split(key, 4)

    N, C, H, W = 2, 3, 16, 16
    params = init_params(kp, H, W)
    spatial = jax.random.normal(ks, (N, C, H, W), jnp.float32)
    temporal = jax.random.normal(kt, (N, C, H, W), jnp.float32)
    pose = jax.random.normal(kq, (N, C, H, W), jnp.float32)

    out = three_stream_forward(params, spatial, temporal, pose)
    out = jax.block_until_ready(out)
    assert out.shape == (N, NUM_CLASSES) and out.dtype == jnp.float32
    print("KERNEL_OK")
</pallas_src>

<mosaic_0001>
module attributes {stable_mosaic.version = 11 : i64} {
  func.func @_branch_kernel(%arg0: i32, %arg1: memref<1x2x18x18x3xf32, #tpu.memory_space<vmem>>, %arg2: memref<1x9x3x32xbf16, #tpu.memory_space<vmem>>, %arg3: memref<1x1x32xf32, #tpu.memory_space<vmem>>, %arg4: memref<1x9x32x64xbf16, #tpu.memory_space<vmem>>, %arg5: memref<1x1x64xf32, #tpu.memory_space<vmem>>, %arg6: memref<1x16x64x128xbf16, #tpu.memory_space<vmem>>, %arg7: memref<1x1x128xf32, #tpu.memory_space<vmem>>, %arg8: memref<1x2x128xf32, #tpu.memory_space<vmem>>, %arg9: memref<16x16x32xf32, #tpu.memory_space<vmem>>, %arg10: memref<2x10x10x32xf32, #tpu.memory_space<vmem>>) attributes {dimension_semantics = [#tpu.dimension_semantics<parallel>], iteration_bounds = array<i64: 3>, scalar_prefetch = 0 : i64, scratch_operands = 2 : i64, tpu.core_type = #tpu.core_type<tc>, window_params = [{transform_indices = @transform_0, window_bounds = array<i64: 1, 2, 18, 18, 3>}, {transform_indices = @transform_1, window_bounds = array<i64: 1, 9, 3, 32>}, {transform_indices = @transform_2, window_bounds = array<i64: 1, 1, 32>}, {transform_indices = @transform_3, window_bounds = array<i64: 1, 9, 32, 64>}, {transform_indices = @transform_4, window_bounds = array<i64: 1, 1, 64>}, {transform_indices = @transform_5, window_bounds = array<i64: 1, 16, 64, 128>}, {transform_indices = @transform_6, window_bounds = array<i64: 1, 1, 128>}, {transform_indices = @transform_7, window_bounds = array<i64: 1, 2, 128>}]} {
    %c0 = arith.constant 0 : index
    %c0_0 = arith.constant 0 : index
    %c0_1 = arith.constant 0 : index
    %c0_2 = arith.constant 0 : index
    %c0_3 = arith.constant 0 : index
    %0 = vector.load %arg1[%c0, %c0_0, %c0_1, %c0_2, %c0_3] : memref<1x2x18x18x3xf32, #tpu.memory_space<vmem>>, vector<1x2x16x16x3xf32>
    %1 = vector.shape_cast %0 : vector<1x2x16x16x3xf32> to vector<2x16x16x3xf32>
    %2 = vector.shape_cast %1 : vector<2x16x16x3xf32> to vector<512x3xf32>
    %3 = arith.truncf %2 : vector<512x3xf32> to vector<512x3xbf16>
    %c0_4 = arith.constant 0 : index
    %c0_5 = arith.constant 0 : index
    %c0_6 = arith.constant 0 : index
    %c0_7 = arith.constant 0 : index
    %4 = vector.load %arg2[%c0_4, %c0_5, %c0_6, %c0_7] : memref<1x9x3x32xbf16, #tpu.memory_space<vmem>>, vector<1x1x3x32xbf16>
    %5 = vector.shape_cast %4 : vector<1x1x3x32xbf16> to vector<3x32xbf16>
    %cst = arith.constant dense<0.000000e+00> : vector<512x32xf32>
    %6 = tpu.matmul %3, %5, %cst {dimension_numbers = #tpu.dot_dimension_numbers<[1], [0], [0], [1], [0, 0, 1, 1], [], []>} : vector<512x3xbf16>, vector<3x32xbf16>, vector<512x32xf32> -> vector<512x32xf32>
    %c0_8 = arith.constant 0 : index
    %c0_9 = arith.constant 0 : index
    %c0_10 = arith.constant 0 : index
    %c1 = arith.constant 1 : index
    %c0_11 = arith.constant 0 : index
    %7 = vector.load %arg1[%c0_8, %c0_9, %c0_10, %c1, %c0_11] : memref<1x2x18x18x3xf32, #tpu.memory_space<vmem>>, vector<1x2x16x16x3xf32>
    %8 = vector.shape_cast %7 : vector<1x2x16x16x3xf32> to vector<2x16x16x3xf32>
    %9 = vector.shape_cast %8 : vector<2x16x16x3xf32> to vector<512x3xf32>
    %10 = arith.truncf %9 : vector<512x3xf32> to vector<512x3xbf16>
    %c0_12 = arith.constant 0 : index
    %c1_13 = arith.constant 1 : index
    %c0_14 = arith.constant 0 : index
    %c0_15 = arith.constant 0 : index
    %11 = vector.load %arg2[%c0_12, %c1_13, %c0_14, %c0_15] : memref<1x9x3x32xbf16, #tpu.memory_space<vmem>>, vector<1x1x3x32xbf16>
    %12 = vector.shape_cast %11 : vector<1x1x3x32xbf16> to vector<3x32xbf16>
    %cst_16 = arith.constant dense<0.000000e+00> : vector<512x32xf32>
    %13 = tpu.matmul %10, %12, %cst_16 {dimension_numbers = #tpu.dot_dimension_numbers<[1], [0], [0], [1], [0, 0, 1, 1], [], []>} : vector<512x3xbf16>, vector<3x32xbf16>, vector<512x32xf32> -> vector<512x32xf32>
    %14 = arith.addf %6, %13 : vector<512x32xf32>
    %c0_17 = arith.constant 0 : index
    %c0_18 = arith.constant 0 : index
    %c0_19 = arith.constant 0 : index
    %c2 = arith.constant 2 : index
    %c0_20 = arith.constant 0 : index
    %15 = vector.load %arg1[%c0_17, %c0_18, %c0_19, %c2, %c0_20] : memref<1x2x18x18x3xf32, #tpu.memory_space<vmem>>, vector<1x2x16x16x3xf32>
    %16 = vector.shape_cast %15 : vector<1x2x16x16x3xf32> to vector<2x16x16x3xf32>
    %17 = vector.shape_cast %16 : vector<2x16x16x3xf32> to vector<512x3xf32>
    %18 = arith.truncf %17 : vector<512x3xf32> to vector<512x3xbf16>
    %c0_21 = arith.constant 0 : index
    %c2_22 = arith.constant 2 : index
    %c0_23 = arith.constant 0 : index
    %c0_24 = arith.constant 0 : index
    %19 = vector.load %arg2[%c0_21, %c2_22, %c0_23, %c0_24] : memref<1x9x3x32xbf16, #tpu.memory_space<vmem>>, vector<1x1x3x32xbf16>
    %20 = vector.shape_cast %19 : vector<1x1x3x32xbf16> to vector<3x32xbf16>
    %cst_25 = arith.constant dense<0.000000e+00> : vector<512x32xf32>
    %21 = tpu.matmul %18, %20, %cst_25 {dimension_numbers = #tpu.dot_dimension_numbers<[1], [0], [0], [1], [0, 0, 1, 1], [], []>} : vector<512x3xbf16>, vector<3x32xbf16>, vector<512x32xf32> -> vector<512x32xf32>
    %22 = arith.addf %14, %21 : vector<512x32xf32>
    %c0_26 = arith.constant 0 : index
    %c0_27 = arith.constant 0 : index
    %c1_28 = arith.constant 1 : index
    %c0_29 = arith.constant 0 : index
    %c0_30 = arith.constant 0 : index
    %23 = vector.load %arg1[%c0_26, %c0_27, %c1_28, %c0_29, %c0_30] : memref<1x2x18x18x3xf32, #tpu.memory_space<vmem>>, vector<1x2x16x16x3xf32>
    %24 = vector.shape_cast %23 : vector<1x2x16x16x3xf32> to vector<2x16x16x3xf32>
    %25 = vector.shape_cast %24 : vector<2x16x16x3xf32> to vector<512x3xf32>
    %26 = arith.truncf %25 : vector<512x3xf32> to vector<512x3xbf16>
    %c0_31 = arith.constant 0 : index
    %c3 = arith.constant 3 : index
    %c0_32 = arith.constant 0 : index
    %c0_33 = arith.constant 0 : index
    %27 = vector.load %arg2[%c0_31, %c3, %c0_32, %c0_33] : memref<1x9x3x32xbf16, #tpu.memory_space<vmem>>, vector<1x1x3x32xbf16>
    %28 = vector.shape_cast %27 : vector<1x1x3x32xbf16> to vector<3x32xbf16>
    %cst_34 = arith.constant dense<0.000000e+00> : vector<512x32xf32>
    %29 = tpu.matmul %26, %28, %cst_34 {dimension_numbers = #tpu.dot_dimension_numbers<[1], [0], [0], [1], [0, 0, 1, 1], [], []>} : vector<512x3xbf16>, vector<3x32xbf16>, vector<512x32xf32> -> vector<512x32xf32>
    %30 = arith.addf %22, %29 : vector<512x32xf32>
    %c0_35 = arith.constant 0 : index
    %c0_36 = arith.constant 0 : index
    %c1_37 = arith.constant 1 : index
    %c1_38 = arith.constant 1 : index
    %c0_39 = arith.constant 0 : index
    %31 = vector.load %arg1[%c0_35, %c0_36, %c1_37, %c1_38, %c0_39] : memref<1x2x18x18x3xf32, #tpu.memory_space<vmem>>, vector<1x2x16x16x3xf32>
    %32 = vector.shape_cast %31 : vector<1x2x16x16x3xf32> to vector<2x16x16x3xf32>
    %33 = vector.shape_cast %32 : vector<2x16x16x3xf32> to vector<512x3xf32>
    %34 = arith.truncf %33 : vector<512x3xf32> to vector<512x3xbf16>
    %c0_40 = arith.constant 0 : index
    %c4 = arith.constant 4 : index
    %c0_41 = arith.constant 0 : index
    %c0_42 = arith.constant 0 : index
    %35 = vector.load %arg2[%c0_40, %c4, %c0_41, %c0_42] : memref<1x9x3x32xbf16, #tpu.memory_space<vmem>>, vector<1x1x3x32xbf16>
    %36 = vector.shape_cast %35 : vector<1x1x3x32xbf16> to vector<3x32xbf16>
    %cst_43 = arith.constant dense<0.000000e+00> : vector<512x32xf32>
    %37 = tpu.matmul %34, %36, %cst_43 {dimension_numbers = #tpu.dot_dimension_numbers<[1], [0], [0], [1], [0, 0, 1, 1], [], []>} : vector<512x3xbf16>, vector<3x32xbf16>, vector<512x32xf32> -> vector<512x32xf32>
    %38 = arith.addf %30, %37 : vector<512x32xf32>
    %c0_44 = arith.constant 0 : index
    %c0_45 = arith.constant 0 : index
    %c1_46 = arith.constant 1 : index
    %c2_47 = arith.constant 2 : index
    %c0_48 = arith.constant 0 : index
    %39 = vector.load %arg1[%c0_44, %c0_45, %c1_46, %c2_47, %c0_48] : memref<1x2x18x18x3xf32, #tpu.memory_space<vmem>>, vector<1x2x16x16x3xf32>
    %40 = vector.shape_cast %39 : vector<1x2x16x16x3xf32> to vector<2x16x16x3xf32>
    %41 = vector.shape_cast %40 : vector<2x16x16x3xf32> to vector<512x3xf32>
    %42 = arith.truncf %41 : vector<512x3xf32> to vector<512x3xbf16>
    %c0_49 = arith.constant 0 : index
    %c5 = arith.constant 5 : index
    %c0_50 = arith.constant 0 : index
    %c0_51 = arith.constant 0 : index
    %43 = vector.load %arg2[%c0_49, %c5, %c0_50, %c0_51] : memref<1x9x3x32xbf16, #tpu.memory_space<vmem>>, vector<1x1x3x32xbf16>
    %44 = vector.shape_cast %43 : vector<1x1x3x32xbf16> to vector<3x32xbf16>
    %cst_52 = arith.constant dense<0.000000e+00> : vector<512x32xf32>
    %45 = tpu.matmul %42, %44, %cst_52 {dimension_numbers = #tpu.dot_dimension_numbers<[1], [0], [0], [1], [0, 0, 1, 1], [], []>} : vector<512x3xbf16>, vector<3x32xbf16>, vector<512x32xf32> -> vector<512x32xf32>
    %46 = arith.addf %38, %45 : vector<512x32xf32>
    %c0_53 = arith.constant 0 : index
    %c0_54 = arith.constant 0 : index
    %c2_55 = arith.constant 2 : index
    %c0_56 = arith.constant 0 : index
    %c0_57 = arith.constant 0 : index
    %47 = vector.load %arg1[%c0_53, %c0_54, %c2_55, %c0_56, %c0_57] : memref<1x2x18x18x3xf32, #tpu.memory_space<vmem>>, vector<1x2x16x16x3xf32>
    %48 = vector.shape_cast %47 : vector<1x2x16x16x3xf32> to vector<2x16x16x3xf32>
    %49 = vector.shape_cast %48 : vector<2x16x16x3xf32> to vector<512x3xf32>
    %50 = arith.truncf %49 : vector<512x3xf32> to vector<512x3xbf16>
    %c0_58 = arith.constant 0 : index
    %c6 = arith.constant 6 : index
    %c0_59 = arith.constant 0 : index
    %c0_60 = arith.constant 0 : index
    %51 = vector.load %arg2[%c0_58, %c6, %c0_59, %c0_60] : memref<1x9x3x32xbf16, #tpu.memory_space<vmem>>, vector<1x1x3x32xbf16>
    %52 = vector.shape_cast %51 : vector<1x1x3x32xbf16> to vector<3x32xbf16>
    %cst_61 = arith.constant dense<0.000000e+00> : vector<512x32xf32>
    %53 = tpu.matmul %50, %52, %cst_61 {dimension_numbers = #tpu.dot_dimension_numbers<[1], [0], [0], [1], [0, 0, 1, 1], [], []>} : vector<512x3xbf16>, vector<3x32xbf16>, vector<512x32xf32> -> vector<512x32xf32>
    %54 = arith.addf %46, %53 : vector<512x32xf32>
    %c0_62 = arith.constant 0 : index
    %c0_63 = arith.constant 0 : index
    %c2_64 = arith.constant 2 : index
    %c1_65 = arith.constant 1 : index
    %c0_66 = arith.constant 0 : index
    %55 = vector.load %arg1[%c0_62, %c0_63, %c2_64, %c1_65, %c0_66] : memref<1x2x18x18x3xf32, #tpu.memory_space<vmem>>, vector<1x2x16x16x3xf32>
    %56 = vector.shape_cast %55 : vector<1x2x16x16x3xf32> to vector<2x16x16x3xf32>
    %57 = vector.shape_cast %56 : vector<2x16x16x3xf32> to vector<512x3xf32>
    %58 = arith.truncf %57 : vector<512x3xf32> to vector<512x3xbf16>
    %c0_67 = arith.constant 0 : index
    %c7 = arith.constant 7 : index
    %c0_68 = arith.constant 0 : index
    %c0_69 = arith.constant 0 : index
    %59 = vector.load %arg2[%c0_67, %c7, %c0_68, %c0_69] : memref<1x9x3x32xbf16, #tpu.memory_space<vmem>>, vector<1x1x3x32xbf16>
    %60 = vector.shape_cast %59 : vector<1x1x3x32xbf16> to vector<3x32xbf16>
    %cst_70 = arith.constant dense<0.000000e+00> : vector<512x32xf32>
    %61 = tpu.matmul %58, %60, %cst_70 {dimension_numbers = #tpu.dot_dimension_numbers<[1], [0], [0], [1], [0, 0, 1, 1], [], []>} : vector<512x3xbf16>, vector<3x32xbf16>, vector<512x32xf32> -> vector<512x32xf32>
    %62 = arith.addf %54, %61 : vector<512x32xf32>
    %c0_71 = arith.constant 0 : index
    %c0_72 = arith.constant 0 : index
    %c2_73 = arith.constant 2 : index
    %c2_74 = arith.constant 2 : index
    %c0_75 = arith.constant 0 : index
    %63 = vector.load %arg1[%c0_71, %c0_72, %c2_73, %c2_74, %c0_75] : memref<1x2x18x18x3xf32, #tpu.memory_space<vmem>>, vector<1x2x16x16x3xf32>
    %64 = vector.shape_cast %63 : vector<1x2x16x16x3xf32> to vector<2x16x16x3xf32>
    %65 = vector.shape_cast %64 : vector<2x16x16x3xf32> to vector<512x3xf32>
    %66 = arith.truncf %65 : vector<512x3xf32> to vector<512x3xbf16>
    %c0_76 = arith.constant 0 : index
    %c8 = arith.constant 8 : index
    %c0_77 = arith.constant 0 : index
    %c0_78 = arith.constant 0 : index
    %67 = vector.load %arg2[%c0_76, %c8, %c0_77, %c0_78] : memref<1x9x3x32xbf16, #tpu.memory_space<vmem>>, vector<1x1x3x32xbf16>
    %68 = vector.shape_cast %67 : vector<1x1x3x32xbf16> to vector<3x32xbf16>
    %cst_79 = arith.constant dense<0.000000e+00> : vector<512x32xf32>
    %69 = tpu.matmul %66, %68, %cst_79 {dimension_numbers = #tpu.dot_dimension_numbers<[1], [0], [0], [1], [0, 0, 1, 1], [], []>} : vector<512x3xbf16>, vector<3x32xbf16>, vector<512x32xf32> -> vector<512x32xf32>
    %70 = arith.addf %62, %69 : vector<512x32xf32>
    %c0_80 = arith.constant 0 : index
    %c0_81 = arith.constant 0 : index
    %c0_82 = arith.constant 0 : index
    %71 = vector.load %arg3[%c0_80, %c0_81, %c0_82] : memref<1x1x32xf32, #tpu.memory_space<vmem>>, vector<1x1x32xf32>
    %72 = vector.shape_cast %71 : vector<1x1x32xf32> to vector<1x32xf32>
    %73 = vector.broadcast %72 : vector<1x32xf32> to vector<512x32xf32>
    %74 = arith.addf %70, %73 : vector<512x32xf32>
    %cst_83 = arith.constant 0.000000e+00 : f32
    %75 = vector.broadcast %cst_83 : f32 to vector<512x32xf32>
    %76 = arith.maximumf %74, %75 : vector<512x32xf32>
    %77 = vector.shape_cast %76 : vector<512x32xf32> to vector<16x32x32xf32>
    %78 = vector.extract_strided_slice %77 {offsets = [0, 0, 0], sizes = [16, 16, 32], strides = [1, 1, 1]} : vector<16x32x32xf32> to vector<16x16x32xf32>
    %79 = vector.extract_strided_slice %77 {offsets = [0, 16, 0], sizes = [16, 16, 32], strides = [1, 1, 1]} : vector<16x32x32xf32> to vector<16x16x32xf32>
    %80 = arith.maximumf %78, %79 : vector<16x16x32xf32>
    %c0_84 = arith.constant 0 : index
    %c0_85 = arith.constant 0 : index
    %c0_86 = arith.constant 0 : index
    %81 = vector.load %arg9[%c0_84, %c0_85, %c0_86] : memref<16x16x32xf32, #tpu.memory_space<vmem>>, vector<16x16x32xf32>
    tpu.vector_store %arg9[%c0_84, %c0_85, %c0_86], %80 {strides = array<i32>} : memref<16x16x32xf32, #tpu.memory_space<vmem>>, vector<16x16x32xf32>,
    %c0_87 = arith.constant 0 : index
    %c0_88 = arith.constant 0 : index
    %c0_89 = arith.constant 0 : index
    %82 = tpu.strided_load %arg9[%c0_87, %c0_88, %c0_89] {strides = array<i32: 1, 2, 1>} : memref<16x16x32xf32, #tpu.memory_space<vmem>>, vector<16x8x32xf32>
    %c0_90 = arith.constant 0 : index
    %c1_91 = arith.constant 1 : index
    %c0_92 = arith.constant 0 : index
    %83 = tpu.strided_load %arg9[%c0_90, %c1_91, %c0_92] {strides = array<i32: 1, 2, 1>} : memref<16x16x32xf32, #tpu.memory_space<vmem>>, vector<16x8x32xf32>
    %84 = arith.maximumf %82, %83 : vector<16x8x32xf32>
    %cst_93 = arith.constant 0.000000e+00 : f32
    %85 = vector.broadcast %cst_93 : f32 to vector<2x10x10x32xf32>
    %c0_94 = arith.constant 0 : index
    %c0_95 = arith.constant 0 : index
    %c0_96 = arith.constant 0 : index
    %c0_97 = arith.constant 0 : index
    %86 = vector.load %arg10[%c0_94, %c0_95, %c0_96, %c0_97] : memref<2x10x10x32xf32, #tpu.memory_space<vmem>>, vector<2x10x10x32xf32>
    tpu.vector_store %arg10[%c0_94, %c0_95, %c0_96, %c0_97], %85 {strides = array<i32>} : memref<2x10x10x32xf32, #tpu.memory_space<vmem>>, vector<2x10x10x32xf32>,
    %87 = vector.shape_cast %84 : vector<16x8x32xf32> to vector<2x8x8x32xf32>
    %c0_98 = arith.constant 0 : index
    %c1_99 = arith.constant 1 : index
    %c1_100 = arith.constant 1 : index
    %c0_101 = arith.constant 0 : index
    %88 = vector.load %arg10[%c0_98, %c1_99, %c1_100, %c0_101] : memref<2x10x10x32xf32, #tpu.memory_space<vmem>>, vector<2x8x8x32xf32>
    tpu.vector_store %arg10[%c0_98, %c1_99, %c1_100, %c0_101], %87 {strides = array<i32>} : memref<2x10x10x32xf32, #tpu.memory_space<vmem>>, vector<2x8x8x32xf32>,
    %c0_102 = arith.constant 0 : index
    %c0_103 = arith.constant 0 : index
    %c0_104 = arith.constant 0 : index
    %c0_105 = arith.constant 0 : index
    %89 = vector.load %arg10[%c0_102, %c0_103, %c0_104, %c0_105] : memref<2x10x10x32xf32, #tpu.memory_space<vmem>>, vector<2x8x8x32xf32>
    %90 = vector.shape_cast %89 : vector<2x8x8x32xf32> to vector<128x32xf32>
    %91 = arith.truncf %90 : vector<128x32xf32> to vector<128x32xbf16>
    %c0_106 = arith.constant 0 : index
    %c0_107 = arith.constant 0 : index
    %c0_108 = arith.constant 0 : index
    %c0_109 = arith.constant 0 : index
    %92 = vector.load %arg4[%c0_106, %c0_107, %c0_108, %c0_109] : memref<1x9x32x64xbf16, #tpu.memory_space<vmem>>, vector<1x1x32x64xbf16>
    %93 = vector.shape_cast %92 : vector<1x1x32x64xbf16> to vector<32x64xbf16>
    %cst_110 = arith.constant dense<0.000000e+00> : vector<128x64xf32>
    %94 = tpu.matmul %91, %93, %cst_110 {dimension_numbers = #tpu.dot_dimension_numbers<[1], [0], [0], [1], [0, 0, 1, 1], [], []>} : vector<128x32xbf16>, vector<32x64xbf16>, vector<128x64xf32> -> vector<128x64xf32>
    %c0_111 = arith.constant 0 : index
    %c0_112 = arith.constant 0 : index
    %c1_113 = arith.constant 1 : index
    %c0_114 = arith.constant 0 : index
    %95 = vector.load %arg10[%c0_111, %c0_112, %c1_113, %c0_114] : memref<2x10x10x32xf32, #tpu.memory_space<vmem>>, vector<2x8x8x32xf32>
    %96 = vector.shape_cast %95 : vector<2x8x8x32xf32> to vector<128x32xf32>
    %97 = arith.truncf %96 : vector<128x32xf32> to vector<128x32xbf16>
    %c0_115 = arith.constant 0 : index
    %c1_116 = arith.constant 1 : index
    %c0_117 = arith.constant 0 : index
    %c0_118 = arith.constant 0 : index
    %98 = vector.load %arg4[%c0_115, %c1_116, %c0_117, %c0_118] : memref<1x9x32x64xbf16, #tpu.memory_space<vmem>>, vector<1x1x32x64xbf16>
    %99 = vector.shape_cast %98 : vector<1x1x32x64xbf16> to vector<32x64xbf16>
    %cst_119 = arith.constant dense<0.000000e+00> : vector<128x64xf32>
    %100 = tpu.matmul %97, %99, %cst_119 {dimension_numbers = #tpu.dot_dimension_numbers<[1], [0], [0], [1], [0, 0, 1, 1], [], []>} : vector<128x32xbf16>, vector<32x64xbf16>, vector<128x64xf32> -> vector<128x64xf32>
    %101 = arith.addf %94, %100 : vector<128x64xf32>
    %c0_120 = arith.constant 0 : index
    %c0_121 = arith.constant 0 : index
    %c2_122 = arith.constant 2 : index
    %c0_123 = arith.constant 0 : index
    %102 = vector.load %arg10[%c0_120, %c0_121, %c2_122, %c0_123] : memref<2x10x10x32xf32, #tpu.memory_space<vmem>>, vector<2x8x8x32xf32>
    %103 = vector.shape_cast %102 : vector<2x8x8x32xf32> to vector<128x32xf32>
    %104 = arith.truncf %103 : vector<128x32xf32> to vector<128x32xbf16>
    %c0_124 = arith.constant 0 : index
    %c2_125 = arith.constant 2 : index
    %c0_126 = arith.constant 0 : index
    %c0_127 = arith.constant 0 : index
    %105 = vector.load %arg4[%c0_124, %c2_125, %c0_126, %c0_127] : memref<1x9x32x64xbf16, #tpu.memory_space<vmem>>, vector<1x1x32x64xbf16>
    %106 = vector.shape_cast %105 : vector<1x1x32x64xbf16> to vector<32x64xbf16>
    %cst_128 = arith.constant dense<0.000000e+00> : vector<128x64xf32>
    %107 = tpu.matmul %104, %106, %cst_128 {dimension_numbers = #tpu.dot_dimension_numbers<[1], [0], [0], [1], [0, 0, 1, 1], [], []>} : vector<128x32xbf16>, vector<32x64xbf16>, vector<128x64xf32> -> vector<128x64xf32>
    %108 = arith.addf %101, %107 : vector<128x64xf32>
    %c0_129 = arith.constant 0 : index
    %c1_130 = arith.constant 1 : index
    %c0_131 = arith.constant 0 : index
    %c0_132 = arith.constant 0 : index
    %109 = vector.load %arg10[%c0_129, %c1_130, %c0_131, %c0_132] : memref<2x10x10x32xf32, #tpu.memory_space<vmem>>, vector<2x8x8x32xf32>
    %110 = vector.shape_cast %109 : vector<2x8x8x32xf32> to vector<128x32xf32>
    %111 = arith.truncf %110 : vector<128x32xf32> to vector<128x32xbf16>
    %c0_133 = arith.constant 0 : index
    %c3_134 = arith.constant 3 : index
    %c0_135 = arith.constant 0 : index
    %c0_136 = arith.constant 0 : index
    %112 = vector.load %arg4[%c0_133, %c3_134, %c0_135, %c0_136] : memref<1x9x32x64xbf16, #tpu.memory_space<vmem>>, vector<1x1x32x64xbf16>
    %113 = vector.shape_cast %112 : vector<1x1x32x64xbf16> to vector<32x64xbf16>
    %cst_137 = arith.constant dense<0.000000e+00> : vector<128x64xf32>
    %114 = tpu.matmul %111, %113, %cst_137 {dimension_numbers = #tpu.dot_dimension_numbers<[1], [0], [0], [1], [0, 0, 1, 1], [], []>} : vector<128x32xbf16>, vector<32x64xbf16>, vector<128x64xf32> -> vector<128x64xf32>
    %115 = arith.addf %108, %114 : vector<128x64xf32>
    %c0_138 = arith.constant 0 : index
    %c1_139 = arith.constant 1 : index
    %c1_140 = arith.constant 1 : index
    %c0_141 = arith.constant 0 : index
    %116 = vector.load %arg10[%c0_138, %c1_139, %c1_140, %c0_141] : memref<2x10x10x32xf32, #tpu.memory_space<vmem>>, vector<2x8x8x32xf32>
    %117 = vector.shape_cast %116 : vector<2x8x8x32xf32> to vector<128x32xf32>
    %118 = arith.truncf %117 : vector<128x32xf32> to vector<128x32xbf16>
    %c0_142 = arith.constant 0 : index
    %c4_143 = arith.constant 4 : index
    %c0_144 = arith.constant 0 : index
    %c0_145 = arith.constant 0 : index
    %119 = vector.load %arg4[%c0_142, %c4_143, %c0_144, %c0_145] : memref<1x9x32x64xbf16, #tpu.memory_space<vmem>>, vector<1x1x32x64xbf16>
    %120 = vector.shape_cast %119 : vector<1x1x32x64xbf16> to vector<32x64xbf16>
    %cst_146 = arith.constant dense<0.000000e+00> : vector<128x64xf32>
    %121 = tpu.matmul %118, %120, %cst_146 {dimension_numbers = #tpu.dot_dimension_numbers<[1], [0], [0], [1], [0, 0, 1, 1], [], []>} : vector<128x32xbf16>, vector<32x64xbf16>, vector<128x64xf32> -> vector<128x64xf32>
    %122 = arith.addf %115, %121 : vector<128x64xf32>
    %c0_147 = arith.constant 0 : index
    %c1_148 = arith.constant 1 : index
    %c2_149 = arith.constant 2 : index
    %c0_150 = arith.constant 0 : index
    %123 = vector.load %arg10[%c0_147, %c1_148, %c2_149, %c0_150] : memref<2x10x10x32xf32, #tpu.memory_space<vmem>>, vector<2x8x8x32xf32>
    %124 = vector.shape_cast %123 : vector<2x8x8x32xf32> to vector<128x32xf32>
    %125 = arith.truncf %124 : vector<128x32xf32> to vector<128x32xbf16>
    %c0_151 = arith.constant 0 : index
    %c5_152 = arith.constant 5 : index
    %c0_153 = arith.constant 0 : index
    %c0_154 = arith.constant 0 : index
    %126 = vector.load %arg4[%c0_151, %c5_152, %c0_153, %c0_154] : memref<1x9x32x64xbf16, #tpu.memory_space<vmem>>, vector<1x1x32x64xbf16>
    %127 = vector.shape_cast %126 : vector<1x1x32x64xbf16> to vector<32x64xbf16>
    %cst_155 = arith.constant dense<0.000000e+00> : vector<128x64xf32>
    %128 = tpu.matmul %125, %127, %cst_155 {dimension_numbers = #tpu.dot_dimension_numbers<[1], [0], [0], [1], [0, 0, 1, 1], [], []>} : vector<128x32xbf16>, vector<32x64xbf16>, vector<128x64xf32> -> vector<128x64xf32>
    %129 = arith.addf %122, %128 : vector<128x64xf32>
    %c0_156 = arith.constant 0 : index
    %c2_157 = arith.constant 2 : index
    %c0_158 = arith.constant 0 : index
    %c0_159 = arith.constant 0 : index
    %130 = vector.load %arg10[%c0_156, %c2_157, %c0_158, %c0_159] : memref<2x10x10x32xf32, #tpu.memory_space<vmem>>, vector<2x8x8x32xf32>
    %131 = vector.shape_cast %130 : vector<2x8x8x32xf32> to vector<128x32xf32>
    %132 = arith.truncf %131 : vector<128x32xf32> to vector<128x32xbf16>
    %c0_160 = arith.constant 0 : index
    %c6_161 = arith.constant 6 : index
    %c0_162 = arith.constant 0 : index
    %c0_163 = arith.constant 0 : index
    %133 = vector.load %arg4[%c0_160, %c6_161, %c0_162, %c0_163] : memref<1x9x32x64xbf16, #tpu.memory_space<vmem>>, vector<1x1x32x64xbf16>
    %134 = vector.shape_cast %133 : vector<1x1x32x64xbf16> to vector<32x64xbf16>
    %cst_164 = arith.constant dense<0.000000e+00> : vector<128x64xf32>
    %135 = tpu.matmul %132, %134, %cst_164 {dimension_numbers = #tpu.dot_dimension_numbers<[1], [0], [0], [1], [0, 0, 1, 1], [], []>} : vector<128x32xbf16>, vector<32x64xbf16>, vector<128x64xf32> -> vector<128x64xf32>
    %136 = arith.addf %129, %135 : vector<128x64xf32>
    %c0_165 = arith.constant 0 : index
    %c2_166 = arith.constant 2 : index
    %c1_167 = arith.constant 1 : index
    %c0_168 = arith.constant 0 : index
    %137 = vector.load %arg10[%c0_165, %c2_166, %c1_167, %c0_168] : memref<2x10x10x32xf32, #tpu.memory_space<vmem>>, vector<2x8x8x32xf32>
    %138 = vector.shape_cast %137 : vector<2x8x8x32xf32> to vector<128x32xf32>
    %139 = arith.truncf %138 : vector<128x32xf32> to vector<128x32xbf16>
    %c0_169 = arith.constant 0 : index
    %c7_170 = arith.constant 7 : index
    %c0_171 = arith.constant 0 : index
    %c0_172 = arith.constant 0 : index
    %140 = vector.load %arg4[%c0_169, %c7_170, %c0_171, %c0_172] : memref<1x9x32x64xbf16, #tpu.memory_space<vmem>>, vector<1x1x32x64xbf16>
    %141 = vector.shape_cast %140 : vector<1x1x32x64xbf16> to vector<32x64xbf16>
    %cst_173 = arith.constant dense<0.000000e+00> : vector<128x64xf32>
    %142 = tpu.matmul %139, %141, %cst_173 {dimension_numbers = #tpu.dot_dimension_numbers<[1], [0], [0], [1], [0, 0, 1, 1], [], []>} : vector<128x32xbf16>, vector<32x64xbf16>, vector<128x64xf32> -> vector<128x64xf32>
    %143 = arith.addf %136, %142 : vector<128x64xf32>
    %c0_174 = arith.constant 0 : index
    %c2_175 = arith.constant 2 : index
    %c2_176 = arith.constant 2 : index
    %c0_177 = arith.constant 0 : index
    %144 = vector.load %arg10[%c0_174, %c2_175, %c2_176, %c0_177] : memref<2x10x10x32xf32, #tpu.memory_space<vmem>>, vector<2x8x8x32xf32>
    %145 = vector.shape_cast %144 : vector<2x8x8x32xf32> to vector<128x32xf32>
    %146 = arith.truncf %145 : vector<128x32xf32> to vector<128x32xbf16>
    %c0_178 = arith.constant 0 : index
    %c8_179 = arith.constant 8 : index
    %c0_180 = arith.constant 0 : index
    %c0_181 = arith.constant 0 : index
    %147 = vector.load %arg4[%c0_178, %c8_179, %c0_180, %c0_181] : memref<1x9x32x64xbf16, #tpu.memory_space<vmem>>, vector<1x1x32x64xbf16>
    %148 = vector.shape_cast %147 : vector<1x1x32x64xbf16> to vector<32x64xbf16>
    %cst_182 = arith.constant dense<0.000000e+00> : vector<128x64xf32>
    %149 = tpu.matmul %146, %148, %cst_182 {dimension_numbers = #tpu.dot_dimension_numbers<[1], [0], [0], [1], [0, 0, 1, 1], [], []>} : vector<128x32xbf16>, vector<32x64xbf16>, vector<128x64xf32> -> vector<128x64xf32>
    %150 = arith.addf %143, %149 : vector<128x64xf32>
    %c0_183 = arith.constant 0 : index
    %c0_184 = arith.constant 0 : index
    %c0_185 = arith.constant 0 : index
    %151 = vector.load %arg5[%c0_183, %c0_184, %c0_185] : memref<1x1x64xf32, #tpu.memory_space<vmem>>, vector<1x1x64xf32>
    %152 = vector.shape_cast %151 : vector<1x1x64xf32> to vector<1x64xf32>
    %153 = vector.broadcast %152 : vector<1x64xf32> to vector<128x64xf32>
    %154 = arith.addf %150, %153 : vector<128x64xf32>
    %cst_186 = arith.constant 0.000000e+00 : f32
    %155 = vector.broadcast %cst_186 : f32 to vector<128x64xf32>
    %156 = arith.maximumf %154, %155 : vector<128x64xf32>
    %157 = vector.shape_cast %156 : vector<128x64xf32> to vector<8x16x64xf32>
    %158 = vector.extract_strided_slice %157 {offsets = [0, 0, 0], sizes = [8, 8, 64], strides = [1, 1, 1]} : vector<8x16x64xf32> to vector<8x8x64xf32>
    %159 = vector.extract_strided_slice %157 {offsets = [0, 8, 0], sizes = [8, 8, 64], strides = [1, 1, 1]} : vector<8x16x64xf32> to vector<8x8x64xf32>
    %160 = arith.maximumf %158, %159 : vector<8x8x64xf32>
    %161 = vector.shape_cast %160 : vector<8x8x64xf32> to vector<2x4x8x64xf32>
    %162 = vector.extract_strided_slice %161 {offsets = [0, 0, 0, 0], sizes = [2, 1, 1, 64], strides = [1, 1, 1, 1]} : vector<2x4x8x64xf32> to vector<2x1x1x64xf32>
    %163 = vector.shape_cast %162 : vector<2x1x1x64xf32> to vector<2x64xf32>
    %164 = vector.extract_strided_slice %161 {offsets = [0, 0, 1, 0], sizes = [2, 1, 1, 64], strides = [1, 1, 1, 1]} : vector<2x4x8x64xf32> to vector<2x1x1x64xf32>
    %165 = vector.shape_cast %164 : vector<2x1x1x64xf32> to vector<2x64xf32>
    %166 = arith.maximumf %163, %165 : vector<2x64xf32>
    %167 = arith.truncf %166 : vector<2x64xf32> to vector<2x64xbf16>
    %c0_187 = arith.constant 0 : index
    %c0_188 = arith.constant 0 : index
    %c0_189 = arith.constant 0 : index
    %c0_190 = arith.constant 0 : index
    %168 = vector.load %arg6[%c0_187, %c0_188, %c0_189, %c0_190] : memref<1x16x64x128xbf16, #tpu.memory_space<vmem>>, vector<1x1x64x128xbf16>
    %169 = vector.shape_cast %168 : vector<1x1x64x128xbf16> to vector<64x128xbf16>
    %cst_191 = arith.constant dense<0.000000e+00> : vector<2x128xf32>
    %170 = tpu.matmul %167, %169, %cst_191 {dimension_numbers = #tpu.dot_dimension_numbers<[1], [0], [0], [1], [0, 0, 1, 1], [], []>} : vector<2x64xbf16>, vector<64x128xbf16>, vector<2x128xf32> -> vector<2x128xf32>
    %171 = vector.extract_strided_slice %161 {offsets = [0, 0, 2, 0], sizes = [2, 1, 1, 64], strides = [1, 1, 1, 1]} : vector<2x4x8x64xf32> to vector<2x1x1x64xf32>
    %172 = vector.shape_cast %171 : vector<2x1x1x64xf32> to vector<2x64xf32>
    %173 = vector.extract_strided_slice %161 {offsets = [0, 0, 3, 0], sizes = [2, 1, 1, 64], strides = [1, 1, 1, 1]} : vector<2x4x8x64xf32> to vector<2x1x1x64xf32>
    %174 = vector.shape_cast %173 : vector<2x1x1x64xf32> to vector<2x64xf32>
    %175 = arith.maximumf %172, %174 : vector<2x64xf32>
    %176 = arith.truncf %175 : vector<2x64xf32> to vector<2x64xbf16>
    %c0_192 = arith.constant 0 : index
    %c1_193 = arith.constant 1 : index
    %c0_194 = arith.constant 0 : index
    %c0_195 = arith.constant 0 : index
    %177 = vector.load %arg6[%c0_192, %c1_193, %c0_194, %c0_195] : memref<1x16x64x128xbf16, #tpu.memory_space<vmem>>, vector<1x1x64x128xbf16>
    %178 = vector.shape_cast %177 : vector<1x1x64x128xbf16> to vector<64x128xbf16>
    %cst_196 = arith.constant dense<0.000000e+00> : vector<2x128xf32>
    %179 = tpu.matmul %176, %178, %cst_196 {dimension_numbers = #tpu.dot_dimension_numbers<[1], [0], [0], [1], [0, 0, 1, 1], [], []>} : vector<2x64xbf16>, vector<64x128xbf16>, vector<2x128xf32> -> vector<2x128xf32>
    %180 = arith.addf %170, %179 : vector<2x128xf32>
    %181 = vector.extract_strided_slice %161 {offsets = [0, 0, 4, 0], sizes = [2, 1, 1, 64], strides = [1, 1, 1, 1]} : vector<2x4x8x64xf32> to vector<2x1x1x64xf32>
    %182 = vector.shape_cast %181 : vector<2x1x1x64xf32> to vector<2x64xf32>
    %183 = vector.extract_strided_slice %161 {offsets = [0, 0, 5, 0], sizes = [2, 1, 1, 64], strides = [1, 1, 1, 1]} : vector<2x4x8x64xf32> to vector<2x1x1x64xf32>
    %184 = vector.shape_cast %183 : vector<2x1x1x64xf32> to vector<2x64xf32>
    %185 = arith.maximumf %182, %184 : vector<2x64xf32>
    %186 = arith.truncf %185 : vector<2x64xf32> to vector<2x64xbf16>
    %c0_197 = arith.constant 0 : index
    %c2_198 = arith.constant 2 : index
    %c0_199 = arith.constant 0 : index
    %c0_200 = arith.constant 0 : index
    %187 = vector.load %arg6[%c0_197, %c2_198, %c0_199, %c0_200] : memref<1x16x64x128xbf16, #tpu.memory_space<vmem>>, vector<1x1x64x128xbf16>
    %188 = vector.shape_cast %187 : vector<1x1x64x128xbf16> to vector<64x128xbf16>
    %cst_201 = arith.constant dense<0.000000e+00> : vector<2x128xf32>
    %189 = tpu.matmul %186, %188, %cst_201 {dimension_numbers = #tpu.dot_dimension_numbers<[1], [0], [0], [1], [0, 0, 1, 1], [], []>} : vector<2x64xbf16>, vector<64x128xbf16>, vector<2x128xf32> -> vector<2x128xf32>
    %190 = arith.addf %180, %189 : vector<2x128xf32>
    %191 = vector.extract_strided_slice %161 {offsets = [0, 0, 6, 0], sizes = [2, 1, 1, 64], strides = [1, 1, 1, 1]} : vector<2x4x8x64xf32> to vector<2x1x1x64xf32>
    %192 = vector.shape_cast %191 : vector<2x1x1x64xf32> to vector<2x64xf32>
    %193 = vector.extract_strided_slice %161 {offsets = [0, 0, 7, 0], sizes = [2, 1, 1, 64], strides = [1, 1, 1, 1]} : vector<2x4x8x64xf32> to vector<2x1x1x64xf32>
    %194 = vector.shape_cast %193 : vector<2x1x1x64xf32> to vector<2x64xf32>
    %195 = arith.maximumf %192, %194 : vector<2x64xf32>
    %196 = arith.truncf %195 : vector<2x64xf32> to vector<2x64xbf16>
    %c0_202 = arith.constant 0 : index
    %c3_203 = arith.constant 3 : index
    %c0_204 = arith.constant 0 : index
    %c0_205 = arith.constant 0 : index
    %197 = vector.load %arg6[%c0_202, %c3_203, %c0_204, %c0_205] : memref<1x16x64x128xbf16, #tpu.memory_space<vmem>>, vector<1x1x64x128xbf16>
    %198 = vector.shape_cast %197 : vector<1x1x64x128xbf16> to vector<64x128xbf16>
    %cst_206 = arith.constant dense<0.000000e+00> : vector<2x128xf32>
    %199 = tpu.matmul %196, %198, %cst_206 {dimension_numbers = #tpu.dot_dimension_numbers<[1], [0], [0], [1], [0, 0, 1, 1], [], []>} : vector<2x64xbf16>, vector<64x128xbf16>, vector<2x128xf32> -> vector<2x128xf32>
    %200 = arith.addf %190, %199 : vector<2x128xf32>
    %201 = vector.extract_strided_slice %161 {offsets = [0, 1, 0, 0], sizes = [2, 1, 1, 64], strides = [1, 1, 1, 1]} : vector<2x4x8x64xf32> to vector<2x1x1x64xf32>
    %202 = vector.shape_cast %201 : vector<2x1x1x64xf32> to vector<2x64xf32>
    %203 = vector.extract_strided_slice %161 {offsets = [0, 1, 1, 0], sizes = [2, 1, 1, 64], strides = [1, 1, 1, 1]} : vector<2x4x8x64xf32> to vector<2x1x1x64xf32>
    %204 = vector.shape_cast %203 : vector<2x1x1x64xf32> to vector<2x64xf32>
    %205 = arith.maximumf %202, %204 : vector<2x64xf32>
    %206 = arith.truncf %205 : vector<2x64xf32> to vector<2x64xbf16>
    %c0_207 = arith.constant 0 : index
    %c4_208 = arith.constant 4 : index
    %c0_209 = arith.constant 0 : index
    %c0_210 = arith.constant 0 : index
    %207 = vector.load %arg6[%c0_207, %c4_208, %c0_209, %c0_210] : memref<1x16x64x128xbf16, #tpu.memory_space<vmem>>, vector<1x1x64x128xbf16>
    %208 = vector.shape_cast %207 : vector<1x1x64x128xbf16> to vector<64x128xbf16>
    %cst_211 = arith.constant dense<0.000000e+00> : vector<2x128xf32>
    %209 = tpu.matmul %206, %208, %cst_211 {dimension_numbers = #tpu.dot_dimension_numbers<[1], [0], [0], [1], [0, 0, 1, 1], [], []>} : vector<2x64xbf16>, vector<64x128xbf16>, vector<2x128xf32> -> vector<2x128xf32>
    %210 = arith.addf %200, %209 : vector<2x128xf32>
    %211 = vector.extract_strided_slice %161 {offsets = [0, 1, 2, 0], sizes = [2, 1, 1, 64], strides = [1, 1, 1, 1]} : vector<2x4x8x64xf32> to vector<2x1x1x64xf32>
    %212 = vector.shape_cast %211 : vector<2x1x1x64xf32> to vector<2x64xf32>
    %213 = vector.extract_strided_slice %161 {offsets = [0, 1, 3, 0], sizes = [2, 1, 1, 64], strides = [1, 1, 1, 1]} : vector<2x4x8x64xf32> to vector<2x1x1x64xf32>
    %214 = vector.shape_cast %213 : vector<2x1x1x64xf32> to vector<2x64xf32>
    %215 = arith.maximumf %212, %214 : vector<2x64xf32>
    %216 = arith.truncf %215 : vector<2x64xf32> to vector<2x64xbf16>
    %c0_212 = arith.constant 0 : index
    %c5_213 = arith.constant 5 : index
    %c0_214 = arith.constant 0 : index
    %c0_215 = arith.constant 0 : index
    %217 = vector.load %arg6[%c0_212, %c5_213, %c0_214, %c0_215] : memref<1x16x64x128xbf16, #tpu.memory_space<vmem>>, vector<1x1x64x128xbf16>
    %218 = vector.shape_cast %217 : vector<1x1x64x128xbf16> to vector<64x128xbf16>
    %cst_216 = arith.constant dense<0.000000e+00> : vector<2x128xf32>
    %219 = tpu.matmul %216, %218, %cst_216 {dimension_numbers = #tpu.dot_dimension_numbers<[1], [0], [0], [1], [0, 0, 1, 1], [], []>} : vector<2x64xbf16>, vector<64x128xbf16>, vector<2x128xf32> -> vector<2x128xf32>
    %220 = arith.addf %210, %219 : vector<2x128xf32>
    %221 = vector.extract_strided_slice %161 {offsets = [0, 1, 4, 0], sizes = [2, 1, 1, 64], strides = [1, 1, 1, 1]} : vector<2x4x8x64xf32> to vector<2x1x1x64xf32>
    %222 = vector.shape_cast %221 : vector<2x1x1x64xf32> to vector<2x64xf32>
    %223 = vector.extract_strided_slice %161 {offsets = [0, 1, 5, 0], sizes = [2, 1, 1, 64], strides = [1, 1, 1, 1]} : vector<2x4x8x64xf32> to vector<2x1x1x64xf32>
    %224 = vector.shape_cast %223 : vector<2x1x1x64xf32> to vector<2x64xf32>
    %225 = arith.maximumf %222, %224 : vector<2x64xf32>
    %226 = arith.truncf %225 : vector<2x64xf32> to vector<2x64xbf16>
    %c0_217 = arith.constant 0 : index
    %c6_218 = arith.constant 6 : index
    %c0_219 = arith.constant 0 : index
    %c0_220 = arith.constant 0 : index
    %227 = vector.load %arg6[%c0_217, %c6_218, %c0_219, %c0_220] : memref<1x16x64x128xbf16, #tpu.memory_space<vmem>>, vector<1x1x64x128xbf16>
    %228 = vector.shape_cast %227 : vector<1x1x64x128xbf16> to vector<64x128xbf16>
    %cst_221 = arith.constant dense<0.000000e+00> : vector<2x128xf32>
    %229 = tpu.matmul %226, %228, %cst_221 {dimension_numbers = #tpu.dot_dimension_numbers<[1], [0], [0], [1], [0, 0, 1, 1], [], []>} : vector<2x64xbf16>, vector<64x128xbf16>, vector<2x128xf32> -> vector<2x128xf32>
    %230 = arith.addf %220, %229 : vector<2x128xf32>
    %231 = vector.extract_strided_slice %161 {offsets = [0, 1, 6, 0], sizes = [2, 1, 1, 64], strides = [1, 1, 1, 1]} : vector<2x4x8x64xf32> to vector<2x1x1x64xf32>
    %232 = vector.shape_cast %231 : vector<2x1x1x64xf32> to vector<2x64xf32>
    %233 = vector.extract_strided_slice %161 {offsets = [0, 1, 7, 0], sizes = [2, 1, 1, 64], strides = [1, 1, 1, 1]} : vector<2x4x8x64xf32> to vector<2x1x1x64xf32>
    %234 = vector.shape_cast %233 : vector<2x1x1x64xf32> to vector<2x64xf32>
    %235 = arith.maximumf %232, %234 : vector<2x64xf32>
    %236 = arith.truncf %235 : vector<2x64xf32> to vector<2x64xbf16>
    %c0_222 = arith.constant 0 : index
    %c7_223 = arith.constant 7 : index
    %c0_224 = arith.constant 0 : index
    %c0_225 = arith.constant 0 : index
    %237 = vector.load %arg6[%c0_222, %c7_223, %c0_224, %c0_225] : memref<1x16x64x128xbf16, #tpu.memory_space<vmem>>, vector<1x1x64x128xbf16>
    %238 = vector.shape_cast %237 : vector<1x1x64x128xbf16> to vector<64x128xbf16>
    %cst_226 = arith.constant dense<0.000000e+00> : vector<2x128xf32>
    %239 = tpu.matmul %236, %238, %cst_226 {dimension_numbers = #tpu.dot_dimension_numbers<[1], [0], [0], [1], [0, 0, 1, 1], [], []>} : vector<2x64xbf16>, vector<64x128xbf16>, vector<2x128xf32> -> vector<2x128xf32>
    %240 = arith.addf %230, %239 : vector<2x128xf32>
    %241 = vector.extract_strided_slice %161 {offsets = [0, 2, 0, 0], sizes = [2, 1, 1, 64], strides = [1, 1, 1, 1]} : vector<2x4x8x64xf32> to vector<2x1x1x64xf32>
    %242 = vector.shape_cast %241 : vector<2x1x1x64xf32> to vector<2x64xf32>
    %243 = vector.extract_strided_slice %161 {offsets = [0, 2, 1, 0], sizes = [2, 1, 1, 64], strides = [1, 1, 1, 1]} : vector<2x4x8x64xf32> to vector<2x1x1x64xf32>
    %244 = vector.shape_cast %243 : vector<2x1x1x64xf32> to vector<2x64xf32>
    %245 = arith.maximumf %242, %244 : vector<2x64xf32>
    %246 = arith.truncf %245 : vector<2x64xf32> to vector<2x64xbf16>
    %c0_227 = arith.constant 0 : index
    %c8_228 = arith.constant 8 : index
    %c0_229 = arith.constant 0 : index
    %c0_230 = arith.constant 0 : index
    %247 = vector.load %arg6[%c0_227, %c8_228, %c0_229, %c0_230] : memref<1x16x64x128xbf16, #tpu.memory_space<vmem>>, vector<1x1x64x128xbf16>
    %248 = vector.shape_cast %247 : vector<1x1x64x128xbf16> to vector<64x128xbf16>
    %cst_231 = arith.constant dense<0.000000e+00> : vector<2x128xf32>
    %249 = tpu.matmul %246, %248, %cst_231 {dimension_numbers = #tpu.dot_dimension_numbers<[1], [0], [0], [1], [0, 0, 1, 1], [], []>} : vector<2x64xbf16>, vector<64x128xbf16>, vector<2x128xf32> -> vector<2x128xf32>
    %250 = arith.addf %240, %249 : vector<2x128xf32>
    %251 = vector.extract_strided_slice %161 {offsets = [0, 2, 2, 0], sizes = [2, 1, 1, 64], strides = [1, 1, 1, 1]} : vector<2x4x8x64xf32> to vector<2x1x1x64xf32>
    %252 = vector.shape_cast %251 : vector<2x1x1x64xf32> to vector<2x64xf32>
    %253 = vector.extract_strided_slice %161 {offsets = [0, 2, 3, 0], sizes = [2, 1, 1, 64], strides = [1, 1, 1, 1]} : vector<2x4x8x64xf32> to vector<2x1x1x64xf32>
    %254 = vector.shape_cast %253 : vector<2x1x1x64xf32> to vector<2x64xf32>
    %255 = arith.maximumf %252, %254 : vector<2x64xf32>
    %256 = arith.truncf %255 : vector<2x64xf32> to vector<2x64xbf16>
    %c0_232 = arith.constant 0 : index
    %c9 = arith.constant 9 : index
    %c0_233 = arith.constant 0 : index
    %c0_234 = arith.constant 0 : index
    %257 = vector.load %arg6[%c0_232, %c9, %c0_233, %c0_234] : memref<1x16x64x128xbf16, #tpu.memory_space<vmem>>, vector<1x1x64x128xbf16>
    %258 = vector.shape_cast %257 : vector<1x1x64x128xbf16> to vector<64x128xbf16>
    %cst_235 = arith.constant dense<0.000000e+00> : vector<2x128xf32>
    %259 = tpu.matmul %256, %258, %cst_235 {dimension_numbers = #tpu.dot_dimension_numbers<[1], [0], [0], [1], [0, 0, 1, 1], [], []>} : vector<2x64xbf16>, vector<64x128xbf16>, vector<2x128xf32> -> vector<2x128xf32>
    %260 = arith.addf %250, %259 : vector<2x128xf32>
    %261 = vector.extract_strided_slice %161 {offsets = [0, 2, 4, 0], sizes = [2, 1, 1, 64], strides = [1, 1, 1, 1]} : vector<2x4x8x64xf32> to vector<2x1x1x64xf32>
    %262 = vector.shape_cast %261 : vector<2x1x1x64xf32> to vector<2x64xf32>
    %263 = vector.extract_strided_slice %161 {offsets = [0, 2, 5, 0], sizes = [2, 1, 1, 64], strides = [1, 1, 1, 1]} : vector<2x4x8x64xf32> to vector<2x1x1x64xf32>
    %264 = vector.shape_cast %263 : vector<2x1x1x64xf32> to vector<2x64xf32>
    %265 = arith.maximumf %262, %264 : vector<2x64xf32>
    %266 = arith.truncf %265 : vector<2x64xf32> to vector<2x64xbf16>
    %c0_236 = arith.constant 0 : index
    %c10 = arith.constant 10 : index
    %c0_237 = arith.constant 0 : index
    %c0_238 = arith.constant 0 : index
    %267 = vector.load %arg6[%c0_236, %c10, %c0_237, %c0_238] : memref<1x16x64x128xbf16, #tpu.memory_space<vmem>>, vector<1x1x64x128xbf16>
    %268 = vector.shape_cast %267 : vector<1x1x64x128xbf16> to vector<64x128xbf16>
    %cst_239 = arith.constant dense<0.000000e+00> : vector<2x128xf32>
    %269 = tpu.matmul %266, %268, %cst_239 {dimension_numbers = #tpu.dot_dimension_numbers<[1], [0], [0], [1], [0, 0, 1, 1], [], []>} : vector<2x64xbf16>, vector<64x128xbf16>, vector<2x128xf32> -> vector<2x128xf32>
    %270 = arith.addf %260, %269 : vector<2x128xf32>
    %271 = vector.extract_strided_slice %161 {offsets = [0, 2, 6, 0], sizes = [2, 1, 1, 64], strides = [1, 1, 1, 1]} : vector<2x4x8x64xf32> to vector<2x1x1x64xf32>
    %272 = vector.shape_cast %271 : vector<2x1x1x64xf32> to vector<2x64xf32>
    %273 = vector.extract_strided_slice %161 {offsets = [0, 2, 7, 0], sizes = [2, 1, 1, 64], strides = [1, 1, 1, 1]} : vector<2x4x8x64xf32> to vector<2x1x1x64xf32>
    %274 = vector.shape_cast %273 : vector<2x1x1x64xf32> to vector<2x64xf32>
    %275 = arith.maximumf %272, %274 : vector<2x64xf32>
    %276 = arith.truncf %275 : vector<2x64xf32> to vector<2x64xbf16>
    %c0_240 = arith.constant 0 : index
    %c11 = arith.constant 11 : index
    %c0_241 = arith.constant 0 : index
    %c0_242 = arith.constant 0 : index
    %277 = vector.load %arg6[%c0_240, %c11, %c0_241, %c0_242] : memref<1x16x64x128xbf16, #tpu.memory_space<vmem>>, vector<1x1x64x128xbf16>
    %278 = vector.shape_cast %277 : vector<1x1x64x128xbf16> to vector<64x128xbf16>
    %cst_243 = arith.constant dense<0.000000e+00> : vector<2x128xf32>
    %279 = tpu.matmul %276, %278, %cst_243 {dimension_numbers = #tpu.dot_dimension_numbers<[1], [0], [0], [1], [0, 0, 1, 1], [], []>} : vector<2x64xbf16>, vector<64x128xbf16>, vector<2x128xf32> -> vector<2x128xf32>
    %280 = arith.addf %270, %279 : vector<2x128xf32>
    %281 = vector.extract_strided_slice %161 {offsets = [0, 3, 0, 0], sizes = [2, 1, 1, 64], strides = [1, 1, 1, 1]} : vector<2x4x8x64xf32> to vector<2x1x1x64xf32>
    %282 = vector.shape_cast %281 : vector<2x1x1x64xf32> to vector<2x64xf32>
    %283 = vector.extract_strided_slice %161 {offsets = [0, 3, 1, 0], sizes = [2, 1, 1, 64], strides = [1, 1, 1, 1]} : vector<2x4x8x64xf32> to vector<2x1x1x64xf32>
    %284 = vector.shape_cast %283 : vector<2x1x1x64xf32> to vector<2x64xf32>
    %285 = arith.maximumf %282, %284 : vector<2x64xf32>
    %286 = arith.truncf %285 : vector<2x64xf32> to vector<2x64xbf16>
    %c0_244 = arith.constant 0 : index
    %c12 = arith.constant 12 : index
    %c0_245 = arith.constant 0 : index
    %c0_246 = arith.constant 0 : index
    %287 = vector.load %arg6[%c0_244, %c12, %c0_245, %c0_246] : memref<1x16x64x128xbf16, #tpu.memory_space<vmem>>, vector<1x1x64x128xbf16>
    %288 = vector.shape_cast %287 : vector<1x1x64x128xbf16> to vector<64x128xbf16>
    %cst_247 = arith.constant dense<0.000000e+00> : vector<2x128xf32>
    %289 = tpu.matmul %286, %288, %cst_247 {dimension_numbers = #tpu.dot_dimension_numbers<[1], [0], [0], [1], [0, 0, 1, 1], [], []>} : vector<2x64xbf16>, vector<64x128xbf16>, vector<2x128xf32> -> vector<2x128xf32>
    %290 = arith.addf %280, %289 : vector<2x128xf32>
    %291 = vector.extract_strided_slice %161 {offsets = [0, 3, 2, 0], sizes = [2, 1, 1, 64], strides = [1, 1, 1, 1]} : vector<2x4x8x64xf32> to vector<2x1x1x64xf32>
    %292 = vector.shape_cast %291 : vector<2x1x1x64xf32> to vector<2x64xf32>
    %293 = vector.extract_strided_slice %161 {offsets = [0, 3, 3, 0], sizes = [2, 1, 1, 64], strides = [1, 1, 1, 1]} : vector<2x4x8x64xf32> to vector<2x1x1x64xf32>
    %294 = vector.shape_cast %293 : vector<2x1x1x64xf32> to vector<2x64xf32>
    %295 = arith.maximumf %292, %294 : vector<2x64xf32>
    %296 = arith.truncf %295 : vector<2x64xf32> to vector<2x64xbf16>
    %c0_248 = arith.constant 0 : index
    %c13 = arith.constant 13 : index
    %c0_249 = arith.constant 0 : index
    %c0_250 = arith.constant 0 : index
    %297 = vector.load %arg6[%c0_248, %c13, %c0_249, %c0_250] : memref<1x16x64x128xbf16, #tpu.memory_space<vmem>>, vector<1x1x64x128xbf16>
    %298 = vector.shape_cast %297 : vector<1x1x64x128xbf16> to vector<64x128xbf16>
    %cst_251 = arith.constant dense<0.000000e+00> : vector<2x128xf32>
    %299 = tpu.matmul %296, %298, %cst_251 {dimension_numbers = #tpu.dot_dimension_numbers<[1], [0], [0], [1], [0, 0, 1, 1], [], []>} : vector<2x64xbf16>, vector<64x128xbf16>, vector<2x128xf32> -> vector<2x128xf32>
    %300 = arith.addf %290, %299 : vector<2x128xf32>
    %301 = vector.extract_strided_slice %161 {offsets = [0, 3, 4, 0], sizes = [2, 1, 1, 64], strides = [1, 1, 1, 1]} : vector<2x4x8x64xf32> to vector<2x1x1x64xf32>
    %302 = vector.shape_cast %301 : vector<2x1x1x64xf32> to vector<2x64xf32>
    %303 = vector.extract_strided_slice %161 {offsets = [0, 3, 5, 0], sizes = [2, 1, 1, 64], strides = [1, 1, 1, 1]} : vector<2x4x8x64xf32> to vector<2x1x1x64xf32>
    %304 = vector.shape_cast %303 : vector<2x1x1x64xf32> to vector<2x64xf32>
    %305 = arith.maximumf %302, %304 : vector<2x64xf32>
    %306 = arith.truncf %305 : vector<2x64xf32> to vector<2x64xbf16>
    %c0_252 = arith.constant 0 : index
    %c14 = arith.constant 14 : index
    %c0_253 = arith.constant 0 : index
    %c0_254 = arith.constant 0 : index
    %307 = vector.load %arg6[%c0_252, %c14, %c0_253, %c0_254] : memref<1x16x64x128xbf16, #tpu.memory_space<vmem>>, vector<1x1x64x128xbf16>
    %308 = vector.shape_cast %307 : vector<1x1x64x128xbf16> to vector<64x128xbf16>
    %cst_255 = arith.constant dense<0.000000e+00> : vector<2x128xf32>
    %309 = tpu.matmul %306, %308, %cst_255 {dimension_numbers = #tpu.dot_dimension_numbers<[1], [0], [0], [1], [0, 0, 1, 1], [], []>} : vector<2x64xbf16>, vector<64x128xbf16>, vector<2x128xf32> -> vector<2x128xf32>
    %310 = arith.addf %300, %309 : vector<2x128xf32>
    %311 = vector.extract_strided_slice %161 {offsets = [0, 3, 6, 0], sizes = [2, 1, 1, 64], strides = [1, 1, 1, 1]} : vector<2x4x8x64xf32> to vector<2x1x1x64xf32>
    %312 = vector.shape_cast %311 : vector<2x1x1x64xf32> to vector<2x64xf32>
    %313 = vector.extract_strided_slice %161 {offsets = [0, 3, 7, 0], sizes = [2, 1, 1, 64], strides = [1, 1, 1, 1]} : vector<2x4x8x64xf32> to vector<2x1x1x64xf32>
    %314 = vector.shape_cast %313 : vector<2x1x1x64xf32> to vector<2x64xf32>
    %315 = arith.maximumf %312, %314 : vector<2x64xf32>
    %316 = arith.truncf %315 : vector<2x64xf32> to vector<2x64xbf16>
    %c0_256 = arith.constant 0 : index
    %c15 = arith.constant 15 : index
    %c0_257 = arith.constant 0 : index
    %c0_258 = arith.constant 0 : index
    %317 = vector.load %arg6[%c0_256, %c15, %c0_257, %c0_258] : memref<1x16x64x128xbf16, #tpu.memory_space<vmem>>, vector<1x1x64x128xbf16>
    %318 = vector.shape_cast %317 : vector<1x1x64x128xbf16> to vector<64x128xbf16>
    %cst_259 = arith.constant dense<0.000000e+00> : vector<2x128xf32>
    %319 = tpu.matmul %316, %318, %cst_259 {dimension_numbers = #tpu.dot_dimension_numbers<[1], [0], [0], [1], [0, 0, 1, 1], [], []>} : vector<2x64xbf16>, vector<64x128xbf16>, vector<2x128xf32> -> vector<2x128xf32>
    %320 = arith.addf %310, %319 : vector<2x128xf32>
    %c0_260 = arith.constant 0 : index
    %c0_261 = arith.constant 0 : index
    %c0_262 = arith.constant 0 : index
    %321 = vector.load %arg7[%c0_260, %c0_261, %c0_262] : memref<1x1x128xf32, #tpu.memory_space<vmem>>, vector<1x1x128xf32>
    %322 = vector.shape_cast %321 : vector<1x1x128xf32> to vector<1x128xf32>
    %323 = vector.broadcast %322 : vector<1x128xf32> to vector<2x128xf32>
    %324 = arith.addf %320, %323 : vector<2x128xf32>
    %cst_263 = arith.constant 0.000000e+00 : f32
    %325 = vector.broadcast %cst_263 : f32 to vector<2x128xf32>
    %326 = arith.maximumf %324, %325 : vector<2x128xf32>
    %c0_264 = arith.constant 0 : index
    %c0_265 = arith.constant 0 : index
    %c0_266 = arith.constant 0 : index
    %327 = vector.load %arg8[%c0_264, %c0_265, %c0_266] : memref<1x2x128xf32, #tpu.memory_space<vmem>>, vector<1x2x128xf32>
    %328 = vector.shape_cast %327 : vector<1x2x128xf32> to vector<2x128xf32>
    %329 = vector.shape_cast %326 : vector<2x128xf32> to vector<1x2x128xf32>
    tpu.vector_store %arg8[%c0_264, %c0_265, %c0_266], %329 {strides = array<i32>} : memref<1x2x128xf32, #tpu.memory_space<vmem>>, vector<1x2x128xf32>,
    return
  }
  func.func @transform_0(%arg0: i32) -> (i32, i32, i32, i32, i32) {
    %c0_i32 = arith.constant 0 : i32
    %c0_i32_0 = arith.constant 0 : i32
    %c0_i32_1 = arith.constant 0 : i32
    %c0_i32_2 = arith.constant 0 : i32
    %c0_i32_3 = arith.constant 0 : i32
    return %arg0, %c0_i32, %c0_i32_0, %c0_i32_1, %c0_i32_2 : i32, i32, i32, i32, i32
  }
  func.func @transform_1(%arg0: i32) -> (i32, i32, i32, i32) {
    %c0_i32 = arith.constant 0 : i32
    %c0_i32_0 = arith.constant 0 : i32
    %c0_i32_1 = arith.constant 0 : i32
    %c0_i32_2 = arith.constant 0 : i32
    return %arg0, %c0_i32, %c0_i32_0, %c0_i32_1 : i32, i32, i32, i32
  }
  func.func @transform_2(%arg0: i32) -> (i32, i32, i32) {
    %c0_i32 = arith.constant 0 : i32
    %c0_i32_0 = arith.constant 0 : i32
    %c0_i32_1 = arith.constant 0 : i32
    return %arg0, %c0_i32, %c0_i32_0 : i32, i32, i32
  }
  func.func @transform_3(%arg0: i32) -> (i32, i32, i32, i32) {
    %c0_i32 = arith.constant 0 : i32
    %c0_i32_0 = arith.constant 0 : i32
    %c0_i32_1 = arith.constant 0 : i32
    %c0_i32_2 = arith.constant 0 : i32
    return %arg0, %c0_i32, %c0_i32_0, %c0_i32_1 : i32, i32, i32, i32
  }
  func.func @transform_4(%arg0: i32) -> (i32, i32, i32) {
    %c0_i32 = arith.constant 0 : i32
    %c0_i32_0 = arith.constant 0 : i32
    %c0_i32_1 = arith.constant 0 : i32
    return %arg0, %c0_i32, %c0_i32_0 : i32, i32, i32
  }
  func.func @transform_5(%arg0: i32) -> (i32, i32, i32, i32) {
    %c0_i32 = arith.constant 0 : i32
    %c0_i32_0 = arith.constant 0 : i32
    %c0_i32_1 = arith.constant 0 : i32
    %c0_i32_2 = arith.constant 0 : i32
    return %arg0, %c0_i32, %c0_i32_0, %c0_i32_1 : i32, i32, i32, i32
  }
  func.func @transform_6(%arg0: i32) -> (i32, i32, i32) {
    %c0_i32 = arith.constant 0 : i32
    %c0_i32_0 = arith.constant 0 : i32
    %c0_i32_1 = arith.constant 0 : i32
    return %arg0, %c0_i32, %c0_i32_0 : i32, i32, i32
  }
  func.func @transform_7(%arg0: i32) -> (i32, i32, i32) {
    %c0_i32 = arith.constant 0 : i32
    %c0_i32_0 = arith.constant 0 : i32
    %c0_i32_1 = arith.constant 0 : i32
    return %arg0, %c0_i32, %c0_i32_0 : i32, i32, i32
  }
}

module attributes {stable_mosaic.version = 11 : i64} {
  func.func @_head_kernel(%arg0: i32, %arg1: memref<3x2x128xf32, #tpu.memory_space<vmem>>, %arg2: memref<3x128x128xbf16, #tpu.memory_space<vmem>>, %arg3: memref<1x128xf32, #tpu.memory_space<vmem>>, %arg4: memref<128x2xbf16, #tpu.memory_space<vmem>>, %arg5: memref<1x2xf32, #tpu.memory_space<vmem>>, %arg6: memref<2x2xf32, #tpu.memory_space<vmem>>) attributes {dimension_semantics = [#tpu.dimension_semantics<arbitrary>], iteration_bounds = array<i64: 1>, scalar_prefetch = 0 : i64, scratch_operands = 0 : i64, tpu.core_type = #tpu.core_type<tc>, window_params = [{pipeline_mode = #tpu.pipeline_mode<synchronous>, transform_indices = @transform_0, window_bounds = array<i64: 3, 2, 128>}, {pipeline_mode = #tpu.pipeline_mode<synchronous>, transform_indices = @transform_1, window_bounds = array<i64: 3, 128, 128>}, {pipeline_mode = #tpu.pipeline_mode<synchronous>, transform_indices = @transform_2, window_bounds = array<i64: 1, 128>}, {pipeline_mode = #tpu.pipeline_mode<synchronous>, transform_indices = @transform_3, window_bounds = array<i64: 128, 2>}, {pipeline_mode = #tpu.pipeline_mode<synchronous>, transform_indices = @transform_4, window_bounds = array<i64: 1, 2>}, {pipeline_mode = #tpu.pipeline_mode<synchronous>, transform_indices = @transform_5, window_bounds = array<i64: 2, 2>}]} {
    %c0 = arith.constant 0 : index
    %c0_0 = arith.constant 0 : index
    %c0_1 = arith.constant 0 : index
    %0 = vector.load %arg1[%c0, %c0_0, %c0_1] : memref<3x2x128xf32, #tpu.memory_space<vmem>>, vector<1x2x128xf32>
    %1 = vector.shape_cast %0 : vector<1x2x128xf32> to vector<2x128xf32>
    %2 = arith.truncf %1 : vector<2x128xf32> to vector<2x128xbf16>
    %c0_2 = arith.constant 0 : index
    %c0_3 = arith.constant 0 : index
    %c0_4 = arith.constant 0 : index
    %3 = vector.load %arg2[%c0_2, %c0_3, %c0_4] : memref<3x128x128xbf16, #tpu.memory_space<vmem>>, vector<1x128x128xbf16>
    %4 = vector.shape_cast %3 : vector<1x128x128xbf16> to vector<128x128xbf16>
    %cst = arith.constant dense<0.000000e+00> : vector<2x128xf32>
    %5 = tpu.matmul %2, %4, %cst {dimension_numbers = #tpu.dot_dimension_numbers<[1], [0], [0], [1], [0, 0, 1, 1], [], []>} : vector<2x128xbf16>, vector<128x128xbf16>, vector<2x128xf32> -> vector<2x128xf32>
    %c1 = arith.constant 1 : index
    %c0_5 = arith.constant 0 : index
    %c0_6 = arith.constant 0 : index
    %6 = vector.load %arg1[%c1, %c0_5, %c0_6] : memref<3x2x128xf32, #tpu.memory_space<vmem>>, vector<1x2x128xf32>
    %7 = vector.shape_cast %6 : vector<1x2x128xf32> to vector<2x128xf32>
    %8 = arith.truncf %7 : vector<2x128xf32> to vector<2x128xbf16>
    %c1_7 = arith.constant 1 : index
    %c0_8 = arith.constant 0 : index
    %c0_9 = arith.constant 0 : index
    %9 = vector.load %arg2[%c1_7, %c0_8, %c0_9] : memref<3x128x128xbf16, #tpu.memory_space<vmem>>, vector<1x128x128xbf16>
    %10 = vector.shape_cast %9 : vector<1x128x128xbf16> to vector<128x128xbf16>
    %cst_10 = arith.constant dense<0.000000e+00> : vector<2x128xf32>
    %11 = tpu.matmul %8, %10, %cst_10 {dimension_numbers = #tpu.dot_dimension_numbers<[1], [0], [0], [1], [0, 0, 1, 1], [], []>} : vector<2x128xbf16>, vector<128x128xbf16>, vector<2x128xf32> -> vector<2x128xf32>
    %12 = arith.addf %5, %11 : vector<2x128xf32>
    %c2 = arith.constant 2 : index
    %c0_11 = arith.constant 0 : index
    %c0_12 = arith.constant 0 : index
    %13 = vector.load %arg1[%c2, %c0_11, %c0_12] : memref<3x2x128xf32, #tpu.memory_space<vmem>>, vector<1x2x128xf32>
    %14 = vector.shape_cast %13 : vector<1x2x128xf32> to vector<2x128xf32>
    %15 = arith.truncf %14 : vector<2x128xf32> to vector<2x128xbf16>
    %c2_13 = arith.constant 2 : index
    %c0_14 = arith.constant 0 : index
    %c0_15 = arith.constant 0 : index
    %16 = vector.load %arg2[%c2_13, %c0_14, %c0_15] : memref<3x128x128xbf16, #tpu.memory_space<vmem>>, vector<1x128x128xbf16>
    %17 = vector.shape_cast %16 : vector<1x128x128xbf16> to vector<128x128xbf16>
    %cst_16 = arith.constant dense<0.000000e+00> : vector<2x128xf32>
    %18 = tpu.matmul %15, %17, %cst_16 {dimension_numbers = #tpu.dot_dimension_numbers<[1], [0], [0], [1], [0, 0, 1, 1], [], []>} : vector<2x128xbf16>, vector<128x128xbf16>, vector<2x128xf32> -> vector<2x128xf32>
    %19 = arith.addf %12, %18 : vector<2x128xf32>
    %c0_17 = arith.constant 0 : index
    %c0_18 = arith.constant 0 : index
    %20 = vector.load %arg3[%c0_17, %c0_18] : memref<1x128xf32, #tpu.memory_space<vmem>>, vector<1x128xf32>
    %21 = vector.broadcast %20 : vector<1x128xf32> to vector<2x128xf32>
    %22 = arith.addf %19, %21 : vector<2x128xf32>
    %cst_19 = arith.constant 0.000000e+00 : f32
    %23 = vector.broadcast %cst_19 : f32 to vector<2x128xf32>
    %24 = arith.maximumf %22, %23 : vector<2x128xf32>
    %25 = arith.truncf %24 : vector<2x128xf32> to vector<2x128xbf16>
    %c0_20 = arith.constant 0 : index
    %c0_21 = arith.constant 0 : index
    %26 = vector.load %arg4[%c0_20, %c0_21] : memref<128x2xbf16, #tpu.memory_space<vmem>>, vector<128x2xbf16>
    %cst_22 = arith.constant dense<0.000000e+00> : vector<2x2xf32>
    %27 = tpu.matmul %25, %26, %cst_22 {dimension_numbers = #tpu.dot_dimension_numbers<[1], [0], [0], [1], [0, 0, 1, 1], [], []>} : vector<2x128xbf16>, vector<128x2xbf16>, vector<2x2xf32> -> vector<2x2xf32>
    %c0_23 = arith.constant 0 : index
    %c0_24 = arith.constant 0 : index
    %28 = vector.load %arg5[%c0_23, %c0_24] : memref<1x2xf32, #tpu.memory_space<vmem>>, vector<1x2xf32>
    %29 = vector.broadcast %28 : vector<1x2xf32> to vector<2x2xf32>
    %30 = arith.addf %27, %29 : vector<2x2xf32>
    %c0_25 = arith.constant 0 : index
    %c0_26 = arith.constant 0 : index
    %31 = vector.load %arg6[%c0_25, %c0_26] : memref<2x2xf32, #tpu.memory_space<vmem>>, vector<2x2xf32>
    tpu.vector_store %arg6[%c0_25, %c0_26], %30 {strides = array<i32>} : memref<2x2xf32, #tpu.memory_space<vmem>>, vector<2x2xf32>,
    return
  }
  func.func @transform_0(%arg0: i32) -> (i32, i32, i32) {
    %c0_i32 = arith.constant 0 : i32
    %c0_i32_0 = arith.constant 0 : i32
    %c0_i32_1 = arith.constant 0 : i32
    %c0_i32_2 = arith.constant 0 : i32
    return %c0_i32, %c0_i32_0, %c0_i32_1 : i32, i32, i32
  }
  func.func @transform_1(%arg0: i32) -> (i32, i32, i32) {
    %c0_i32 = arith.constant 0 : i32
    %c0_i32_0 = arith.constant 0 : i32
    %c0_i32_1 = arith.constant 0 : i32
    %c0_i32_2 = arith.constant 0 : i32
    return %c0_i32, %c0_i32_0, %c0_i32_1 : i32, i32, i32
  }
  func.func @transform_2(%arg0: i32) -> (i32, i32) {
    %c0_i32 = arith.constant 0 : i32
    %c0_i32_0 = arith.constant 0 : i32
    %c0_i32_1 = arith.constant 0 : i32
    return %c0_i32, %c0_i32_0 : i32, i32
  }
  func.func @transform_3(%arg0: i32) -> (i32, i32) {
    %c0_i32 = arith.constant 0 : i32
    %c0_i32_0 = arith.constant 0 : i32
    %c0_i32_1 = arith.constant 0 : i32
    return %c0_i32, %c0_i32_0 : i32, i32
  }
  func.func @transform_4(%arg0: i32) -> (i32, i32) {
    %c0_i32 = arith.constant 0 : i32
    %c0_i32_0 = arith.constant 0 : i32
    %c0_i32_1 = arith.constant 0 : i32
    return %c0_i32, %c0_i32_0 : i32, i32
  }
  func.func @transform_5(%arg0: i32) -> (i32, i32) {
    %c0_i32 = arith.constant 0 : i32
    %c0_i32_0 = arith.constant 0 : i32
    %c0_i32_1 = arith.constant 0 : i32
    return %c0_i32, %c0_i32_0 : i32, i32
  }
}

</mosaic_0001>

<bundles_post_ra>
// kernel: three_stream_forward.3
= control target key start
LH: loop header
LB: loop body
LE: loop exit
PB: predicated region body
PF: predicated region fallthrough
CT: control target
= control target key end

     0   :  { %v725_v1 = vmov 0.0   ;;  %vm726_vm0 = vmmov 0   ;;  %s921_s0 = inlined_call_operand.vmem [shape: f32[3,2,128], index: 0, kind: input, shape index: {}]   ;;  %s922_s1 = inlined_call_operand.vmem [shape: bf16[3,128,128], index: 1, kind: input, shape index: {}]   ;;  %s923_s2 = inlined_call_operand.vmem [shape: f32[1,128], index: 2, kind: input, shape index: {}]   ;;  %s924_s3 = inlined_call_operand.vmem [shape: bf16[128,2], index: 3, kind: input, shape index: {}]   ;;  %s925_s4 = inlined_call_operand.vmem [shape: f32[1,2], index: 4, kind: input, shape index: {}]   ;;  %s926_s5 = inlined_call_operand.hbm [shape: f32[2,2], index: 5, kind: output, shape index: {}]  }
   0x1   :  { %v669_v0 = vld [vmem:[%s922_s1 + $0x40] sm:$0xff]   ;;  %586 = vmatprep.subr.bf16.mxu0 %v725_v1  ;;  %606 = vmatprep.subr.bf16.mxu1 %v725_v1  ;;  %v671_v3 = vld [vmem:[%s922_s1 + $0x48] sm:$0xff]   ;;  %v673_v5 = vld [vmem:[%s922_s1 + $0x50] sm:$0xff]  }
   0x2   :  { %v670_v2 = vld [vmem:[%s922_s1] sm:$0xff]   ;;  %587 = vmatpush3.bf16.msra.mxu0 %v669_v0  ;;  %602 = vmatprep.mubr.msk.bf16.mxu0 %vm726_vm0, %v725_v1  ;;  %v672_v4 = vld [vmem:[%s922_s1 + $0x8] sm:$0xff]   ;;  %v674_v6 = vld [vmem:[%s922_s1 + $0x10] sm:$0xff]  }
   0x3   :  { %607 = vmatpush3.bf16.msra.mxu1 %v670_v2  ;;  %588 = vmatprep.subr.bf16.mxu0 %v725_v1  ;;  %v675_v7 = vld [vmem:[%s922_s1 + $0x58] sm:$0xff]   ;;  %v677_v9 = vld [vmem:[%s922_s1 + $0x60] sm:$0xff]   ;;  %v679_v11 = vld [vmem:[%s922_s1 + $0x68] sm:$0xff]  }
   0x4   :  { %608 = vmatprep.subr.bf16.mxu1 %v725_v1  ;;  %622 = vmatprep.mubr.msk.bf16.mxu1 %vm726_vm0, %v725_v1  ;;  %v676_v8 = vld [vmem:[%s922_s1 + $0x18] sm:$0xff]   ;;  %v678_v10 = vld [vmem:[%s922_s1 + $0x20] sm:$0xff]   ;;  %v680_v12 = vld [vmem:[%s922_s1 + $0x28] sm:$0xff]  }
   0x5   :  { %v681_v13 = vld [vmem:[%s922_s1 + $0x70] sm:$0xff]   ;;  %v683_v15 = vld [vmem:[%s922_s1 + $0x78] sm:$0xff]   ;;  %v482_v16 = vld [vmem:[%s921_s0 + $0x2] sm:$0x3] }
   0x6   :  { %589 = vmatpush3.bf16.msra.mxu0 %v671_v3  ;;  %v682_v14 = vld [vmem:[%s922_s1 + $0x30] sm:$0xff]   ;;  %v684_v17 = vld [vmem:[%s922_s1 + $0x38] sm:$0xff]   ;;  %v22_v18 = vld [vmem:[%s921_s0] sm:$0x3]  ;;  %v42_v19 = vpack.c.bf16 %v482_v16, %v482_v16 }
   0x7   :  { %609 = vmatpush3.bf16.msra.mxu1 %v672_v4  ;;  %590 = vmatprep.subr.bf16.mxu0 %v725_v1  ;;  %v23_v20 = vpack.c.bf16 %v22_v18, %v22_v18  ;;  %v685_v21 = vld [vmem:[%s922_s1 + $0x80] sm:$0xff]  }
   0x8   :  { %610 = vmatprep.subr.bf16.mxu1 %v725_v1 }
   0xa   :  { %591 = vmatpush3.bf16.msra.mxu0 %v673_v5 }
   0xb   :  { %611 = vmatpush3.bf16.msra.mxu1 %v674_v6  ;;  %592 = vmatprep.subr.bf16.mxu0 %v725_v1 }
   0xc   :  { %612 = vmatprep.subr.bf16.mxu1 %v725_v1 }
   0xe   :  { %593 = vmatpush3.bf16.msra.mxu0 %v675_v7 }
   0xf   :  { %613 = vmatpush3.bf16.msra.mxu1 %v676_v8  ;;  %594 = vmatprep.subr.bf16.mxu0 %v725_v1 }
  0x10   :  { %614 = vmatprep.subr.bf16.mxu1 %v725_v1 }
  0x12   :  { %595 = vmatpush3.bf16.msra.mxu0 %v677_v9 }
  0x13   :  { %615 = vmatpush3.bf16.msra.mxu1 %v678_v10  ;;  %596 = vmatprep.subr.bf16.mxu0 %v725_v1 }
  0x14   :  { %616 = vmatprep.subr.bf16.mxu1 %v725_v1 }
  0x16   :  { %597 = vmatpush3.bf16.msra.mxu0 %v679_v11 }
  0x17   :  { %617 = vmatpush3.bf16.msra.mxu1 %v680_v12  ;;  %598 = vmatprep.subr.bf16.mxu0 %v725_v1 }
  0x18   :  { %618 = vmatprep.subr.bf16.mxu1 %v725_v1 }
  0x1a   :  { %599 = vmatpush3.bf16.msra.mxu0 %v681_v13 }
  0x1b   :  { %619 = vmatpush3.bf16.msra.mxu1 %v682_v14  ;;  %600 = vmatprep.subr.bf16.mxu0 %v725_v1 }
  0x1c   :  { %620 = vmatprep.subr.bf16.mxu1 %v725_v1 }
  0x1e   :  { %601 = vmatpush3.bf16.msra.mxu0 %v683_v15 }
  0x1f   :  { %10 = vsyncpa [#allocation3], 0  ;;  %621 = vmatpush3.bf16.msra.mxu1 %v684_v17  ;;  %626 = vmatprep.subr.bf16.mxu0 %v725_v1  ;;  %v686_v22 = vld [vmem:[%s922_s1 + $0x88] sm:$0xff]   ;;  %v687_v23 = vld [vmem:[%s922_s1 + $0x90] sm:$0xff]   ;;  %s727_s14 = smov [#allocation2]   ;;  %vm466_vm1 = vcmask 9216  }
  0x20   :  { %646 = vmatprep.subr.bf16.mxu1 %v725_v1  ;;  %v688_v24 = vld [vmem:[%s922_s1 + $0x98] sm:$0xff]   ;;  %v689_v25 = vld [vmem:[%s922_s1 + $0xa0] sm:$0xff]   ;;  %v690_v26 = vld [vmem:[%s922_s1 + $0xa8] sm:$0xff]   ;;  %s474_s15 = sshll.u32 %s727_s14, 4  ;;  %s475_s15 = int_to_ptr.vmem [resolvable:$true] %s474_s15 }
  0x21   :  { %603 = vmatmul.mubr.bf16.vlgmr.msra.gmra.mrb[0].mxu0 %v42_v19  ;;  %v691_v27 = vld [vmem:[%s922_s1 + $0xb0] sm:$0xff]   ;;  %v692_v28 = vld [vmem:[%s922_s1 + $0xb8] sm:$0xff]   ;;  %v515_v29 = vld [vmem:[%s921_s0 + $0x4] sm:$0x3]  ;;  %p706_p1 = scmp.lt.s32.totalorder %s475_s15, %s475_s15 }
  0x22   :  { %623 = vmatmul.mubr.bf16.vlgmr.msra.gmra.mrb[0].mxu1 %v23_v20  ;;  %627 = vmatpush3.bf16.msra.mxu0 %v685_v21  ;;  %v238_v30 = vpack.c.bf16 %v515_v29, %v515_v29  ;;  %v693_v31 = vld [vmem:[%s924_s3] sm:$0xff]   ;;  %v694_v32 = vld [vmem:[%s924_s3 + $0x8] sm:$0xff]   ;;  %v695_v33 = vld [vmem:[%s924_s3 + $0x10] sm:$0xff]  }
  0x23   :  { %628 = vmatprep.subr.bf16.mxu0 %v725_v1  ;;  %642 = vmatprep.mubr.msk.bf16.mxu0 %vm726_vm0, %v725_v1  ;;  %v696_v34 = vld [vmem:[%s924_s3 + $0x18] sm:$0xff]   ;;  %v697_v35 = vld [vmem:[%s924_s3 + $0x20] sm:$0xff]   ;;  %v698_v36 = vld [vmem:[%s924_s3 + $0x28] sm:$0xff]  }
  0x24   :  { %662 = vmatprep.mubr.msk.bf16.mxu1 %vm726_vm0, %v725_v1  ;;  %647 = vmatpush3.bf16.msra.mxu1 %v693_v31  ;;  %v699_v37 = vld [vmem:[%s924_s3 + $0x30] sm:$0xff]   ;;  %v700_v38 = vld [vmem:[%s924_s3 + $0x38] sm:$0xff]   ;;  %v540_v49 = vld [vmem:[%s923_s2] ss:$0 sm:$0xff]  ;;  %s701_s2 = scalar_lea.vmem %s475_s15, 32 }
  0x25   :  { %648 = vmatprep.subr.bf16.mxu1 %v725_v1  ;;  %v541_v57 = vld [vmem:[%s925_s4] ss:$0 sm:$0xff]  ;;  %p702_p0 = scmp.ne.s32.totalorder %s475_s15, %s701_s2  ;;  %p707_p2 = scmp.lt.s32.totalorder %s701_s2, %s701_s2 }
  0x26   :  { %629 = vmatpush3.bf16.msra.mxu0 %v686_v22 }
  0x27   :  { %630 = vmatprep.subr.bf16.mxu0 %v725_v1  ;;  %p708_p3 = por %p707_p2, %p706_p1 }
  0x28   :  { %649 = vmatpush3.bf16.msra.mxu1 %v694_v32 }
  0x29   :  { %650 = vmatprep.subr.bf16.mxu1 %v725_v1  ;;  %p709_p4 = pnand %p708_p3, %p702_p0 }
  0x2a   :  { %631 = vmatpush3.bf16.msra.mxu0 %v687_v23 }
  0x2b   :  { %632 = vmatprep.subr.bf16.mxu0 %v725_v1 }
  0x2c   :  { %651 = vmatpush3.bf16.msra.mxu1 %v695_v33 }
  0x2d   :  { %652 = vmatprep.subr.bf16.mxu1 %v725_v1 }
  0x2e   :  { %633 = vmatpush3.bf16.msra.mxu0 %v688_v24 }
  0x2f   :  { %634 = vmatprep.subr.bf16.mxu0 %v725_v1 }
  0x30   :  { %653 = vmatpush3.bf16.msra.mxu1 %v696_v34 }
  0x31   :  { %654 = vmatprep.subr.bf16.mxu1 %v725_v1 }
  0x32   :  { %635 = vmatpush3.bf16.msra.mxu0 %v689_v25 }
  0x33   :  { %636 = vmatprep.subr.bf16.mxu0 %v725_v1 }
  0x34   :  { %655 = vmatpush3.bf16.msra.mxu1 %v697_v35 }
  0x35   :  { %656 = vmatprep.subr.bf16.mxu1 %v725_v1 }
  0x36   :  { %637 = vmatpush3.bf16.msra.mxu0 %v690_v26 }
  0x37   :  { %638 = vmatprep.subr.bf16.mxu0 %v725_v1 }
  0x38   :  { %657 = vmatpush3.bf16.msra.mxu1 %v698_v36 }
  0x39   :  { %658 = vmatprep.subr.bf16.mxu1 %v725_v1 }
  0x3a   :  { %639 = vmatpush3.bf16.msra.mxu0 %v691_v27 }
  0x3b   :  { %640 = vmatprep.subr.bf16.mxu0 %v725_v1 }
  0x3c   :  { %659 = vmatpush3.bf16.msra.mxu1 %v699_v37 }
  0x3d   :  { %660 = vmatprep.subr.bf16.mxu1 %v725_v1 }
  0x3e   :  { %641 = vmatpush3.bf16.msra.mxu0 %v692_v28 }
  0x40   :  { %661 = vmatpush3.bf16.msra.mxu1 %v700_v38 }
  0x41   :  { %643 = vmatmul.mubr.bf16.vlgmr.msra.gmra.mrb[4].mxu0 %v238_v30 }
  0xf4   :  { %v142_v39 = vpop.f32.mrb[0].mxu0 }
  0xf5   :  { %v604_v40 = vpop.f32.mrb[1].mxu0  ;;  %v230_v41 = vpop.f32.mrb[0].mxu1 }
  0xf6   :  { %v231_v42 = vadd.f32 %v230_v41, %v142_v39  ;;  %v145_v43 = vpop.f32.mrb[2].mxu0  ;;  %v624_v44 = vpop.f32.mrb[1].mxu1 }
  0xf7   :  { %v605_v45 = vpop.f32.mrb[3].mxu0  ;;  %v233_v46 = vpop.f32.mrb[2].mxu1 }
  0xf8   :  { %v625_v47 = vpop.f32.mrb[3].mxu1 }
 0x114   :  { %v338_v48 = vpop.f32.mrb[4].mxu0 }
 0x115   :  { %v344_v50 = vadd.f32 %v338_v48, %v231_v42  ;;  %v644_v51 = vpop.f32.mrb[5].mxu0 }
 0x116   :  { %v341_v52 = vpop.f32.mrb[6].mxu0 }
 0x117   :  { %v352_v53 = vadd.f32 %v540_v49, %v344_v50  ;;  %v645_v54 = vpop.f32.mrb[7].mxu0 }
 0x119   :  { %v353_v55 = vmax.f32 %v352_v53, 0.0 }
 0x11b   :  { %v354_v56 = vpack.c.bf16 %v353_v55, %v353_v55 }
 0x11d   :  { %663 = vmatmul.mubr.bf16.vlgmr.msra.gmra.mrb[4].mxu1 %v354_v56 }
 0x1f0   :  { %v460_v58 = vpop.f32.mrb[4].mxu1 }
 0x1f1   :  { %v461_v59 = vadd.f32 %v541_v57, %v460_v58  ;;  %v664_v60 = vpop.f32.mrb[5].mxu1 }
 0x1f2   :  { %v463_v61 = vpop.f32.mrb[6].mxu1 }
 0x1f3   :  { %v665_v62 = vpop.f32.mrb[7].mxu1  ;;  %467 = vst.msk [vmem:[#allocation2] sm:$0x3] %vm466_vm1, %v461_v59 }
 0x1f4   :  { %712 = shalt.err (!%p709_p4)
}
 0x1f5   :  { %s713_s4 = scalar_lea.hbm %s926_s5, 32 }
 0x1f6   :  { %p714_p5 = scmp.ne.s32.totalorder %s926_s5, %s713_s4  ;;  %p717_p6 = scmp.lt.u32.totalorder %s713_s4, %s926_s5 }
 0x1f8   :  { %p719_p7 = pnand %p717_p6, %p714_p5 }
 0x1fa   :  { %722 = shalt.err (!%p719_p7)
}
 0x1fb   :  { %477 = dma.vmem_to_hbm [thread:$0]  %s475_s15, 32, %s926_s5, [#allocation3]  }
 0x1fc   :  { %723 = dma.done.wait [#allocation3], 32  }
 0x1fd   :  { %724 = vsyncadd [#allocation3], 4294967264 }
 0x1fe   :  { %481 = vsyncpa [#allocation3], 1 }

// kernel: three_stream_forward.2
= control target key start
LH: loop header
LB: loop body
LE: loop exit
PB: predicated region body
PF: predicated region fallthrough
CT: control target
= control target key end

     0   :  { %s11876_s24 = smov 0   ;;  %s13867_s0 = inlined_call_operand.vmem [shape: f32[3,2,18,18,3], index: 0, kind: input, shape index: {}]   ;;  %s13868_s1 = inlined_call_operand.vmem [shape: bf16[3,9,3,32], index: 1, kind: input, shape index: {}]   ;;  %s13869_s2 = inlined_call_operand.vmem [shape: f32[3,1,32], index: 2, kind: input, shape index: {}]   ;;  %s13870_s3 = inlined_call_operand.vmem [shape: bf16[3,9,32,64], index: 3, kind: input, shape index: {}]   ;;  %s13871_s4 = inlined_call_operand.vmem [shape: f32[3,1,64], index: 4, kind: input, shape index: {}]   ;;  %s13872_s5 = inlined_call_operand.vmem [shape: bf16[3,16,64,128], index: 5, kind: input, shape index: {}]   ;;  %s13873_s6 = inlined_call_operand.vmem [shape: f32[3,1,128], index: 6, kind: input, shape index: {}]   ;;  %s13874_s7 = inlined_call_operand.vmem [shape: f32[3,2,128], index: 7, kind: output, shape index: {}]  }
   0x1 LB: > { %s8635_s25 = sadd.s32 4294967295, %s11831_s24   ;;  %p8639_p0 = scmp.ge.s32.totalorder %s11831_s24, 1  ;;  %s11831_s24 = sphi %s11876_s24, %s17_s24  }
   0x2   : > { %p291_p1 = scmp.lt.s32.totalorder %s11831_s24, 4 }
   0x4   : > { %p292_p2 = pnand %p8639_p0, %p291_p1 }
   0x6   : > { %295 = sbr.rel (%p292_p2) target bundleno = 2043 (0x7fb), region = 48 }
   0xd   : > { %p346_p3 = scmp.lt.s32.totalorder %s8635_s25, 2  ;;  %vm672_vm0 = vcmask 1040384   ;;  %vm673_vm1 = vcmask 1041408   ;;  %v11833_v0 = vmov 65535   ;;  %vm575_vm2 = vcmask 23552  }
   0xe   : > { %v674_v1 = vsel %vm672_vm0, 4294967295, %v11833_v0  ;;  %vm5375_vm3 = vcmask 261120   ;;  %vm5488_vm4 = vcmask 254976   ;;  %vm11835_vm5 = vmmov 0  }
   0xf   : > { %s13929_s25 = smov (!%p346_p3, %s8635_s25), 2  ;;  %v11893_v2 = vsel %vm673_vm1, %v674_v1, 0  ;;  %vm7195_vm6 = vcmask 1041409   ;;  %vm7222_vm7 = vcmask 523264  }
  0x10   : > { %s11729_s26 = smul.u32 864, %s13929_s25  ;;  %s9653_s15 = sshll.u32 %s13929_s25, 9 }
  0x11   : > { %s11730_s27 = smul.u32 18, %s13929_s25  ;;  %s11986_s18 = scalar_lea.vmem %s13872_s5, %s9653_s15 }
  0x12   : > { %s11891_s30 = scalar_lea.vmem %s13867_s0, %s11729_s26  ;;  %s11731_s11 = smul.u32 144, %s13929_s25 }
  0x13   : > { %s11898_s10 = scalar_lea.vmem %s13868_s1, %s11730_s27  ;;  %v1356_v3 = vld [vmem:[%s11891_s30 + $0x2] sm:$0xff]  ;;  %v1357_v4 = vld [vmem:[%s11891_s30 + $0xa] sm:$0xff]  ;;  %v1358_v5 = vld [vmem:[%s11891_s30 + $0x1a] sm:$0xff]  ;;  %s358_s21 = scalar_lea.vmem %s13869_s2, %s13929_s25 }
  0x14   : > { %v8711_v6 = vld [vmem:[%s11898_s10 + $0x4] sm:$0x3]  ;;  %v1420_v7 = vpack.c.bf16 %v1357_v4, %v1356_v3  ;;  %v8808_v9 = vld [vmem:[%s11898_s10 + $0x6] sm:$0x3]  ;;  %v1360_v12 = vld [vmem:[%s11891_s30 + $0x32] sm:$0xff]  ;;  %s11958_s14 = scalar_lea.vmem %s13870_s3, %s11731_s11  ;;  %s366_s26 = scalar_lea.vmem %s13871_s4, %s13929_s25 }
  0x15   : > { %v1359_v8 = vld [vmem:[%s11891_s30 + $0x22] sm:$0xff]  ;;  %v11907_v10 = vand.u32 %v8711_v6, %v11893_v2  ;;  %v2102_v11 = vand.u32 %v8808_v9, %v11893_v2  ;;  %v1361_v13 = vld [vmem:[%s11891_s30 + $0x3a] sm:$0xff]  ;;  %v1362_v16 = vld [vmem:[%s11891_s30 + $0x4a] sm:$0xff]  ;;  %s374_s29 = scalar_lea.vmem %s13873_s6, %s13929_s25 }
  0x16   : > { %10255 = vmatprep.mubr.msk.bf16.mxu0 %vm575_vm2, %v1420_v7  ;;  %v11914_v14 = vpack.c.bf16 %v1359_v8, %v1358_v5  ;;  %v11917_v15 = vpack.c.bf16 %v1361_v13, %v1360_v12  ;;  %v1363_v17 = vld [vmem:[%s11891_s30 + $0x52] sm:$0xff]  ;;  %v1364_v18 = vld [vmem:[%s11891_s30 + $0x62] sm:$0xff]  ;;  %v1365_v19 = vld [vmem:[%s11891_s30 + $0x6a] sm:$0xff] }
  0x17   : > { %10253 = vmatprep.subr.bf16.mxu0 %v11907_v10  ;;  %v11927_v20 = vpack.c.bf16 %v1363_v17, %v1362_v16  ;;  %v11929_v21 = vpack.c.bf16 %v1365_v19, %v1364_v18  ;;  %v8905_v22 = vld [vmem:[%s11898_s10 + $0x8] sm:$0x3]  ;;  %v1366_v24 = vld [vmem:[%s11891_s30 + $0x7a] sm:$0xff]  ;;  %v1368_v26 = vld [vmem:[%s11891_s30 + $0x92] sm:$0xff] }
  0x18   : > { %10254 = vmatpush3.bf16.msra.mxu0 %v11907_v10  ;;  %v11935_v23 = vand.u32 %v8905_v22, %v11893_v2  ;;  %v1367_v25 = vld [vmem:[%s11891_s30 + $0x82] sm:$0xff]  ;;  %v1369_v27 = vld [vmem:[%s11891_s30 + $0x9a] sm:$0xff]  ;;  %v1370_v30 = vld [vmem:[%s11891_s30 + $0xaa] sm:$0xff] }
  0x19   : > { %10319 = vmatprep.subr.bf16.mxu0 %v2102_v11  ;;  %v11944_v28 = vpack.c.bf16 %v1367_v25, %v1366_v24  ;;  %v11946_v29 = vpack.c.bf16 %v1369_v27, %v1368_v26  ;;  %v1371_v31 = vld [vmem:[%s11891_s30 + $0xb2] sm:$0xff]  ;;  %v1372_v32 = vld [vmem:[%s11891_s30 + $0xc2] sm:$0xff]  ;;  %v1373_v33 = vld [vmem:[%s11891_s30 + $0xca] sm:$0xff] }
  0x1a   : > { %v11962_v34 = vpack.c.bf16 %v1371_v31, %v1370_v30  ;;  %v11964_v35 = vpack.c.bf16 %v1373_v33, %v1372_v32  ;;  %v1374_v36 = vld [vmem:[%s11891_s30 + $0xda] sm:$0xff]  ;;  %v1375_v37 = vld [vmem:[%s11891_s30 + $0xe2] sm:$0xff]  ;;  %v1376_v38 = vld [vmem:[%s11891_s30 + $0xf2] sm:$0xff] }
  0x1b   : > { %10256 = vmatmul.mubr.msk.bf16.vlgmr.msra.gmra.mrb[0].mxu0 %vm575_vm2, %v11914_v14  ;;  %v1377_v39 = vld [vmem:[%s11891_s30 + $0xfa] sm:$0xff]  ;;  %v11975_v40 = vpack.c.bf16 %v1375_v37, %v1374_v36  ;;  %v1378_v42 = vld [vmem:[%s11891_s30 + $0x10a] sm:$0xff]  ;;  %v1379_v43 = vld [vmem:[%s11891_s30 + $0x112] sm:$0xff] }
  0x1c   : > { %10320 = vmatpush3.bf16.msra.mxu0 %v2102_v11  ;;  %10259 = vmatprep.mubr.msk.bf16.mxu0 %vm575_vm2, %v11917_v15  ;;  %v11977_v41 = vpack.c.bf16 %v1377_v39, %v1376_v38  ;;  %v1380_v44 = vld [vmem:[%s11891_s30 + $0x122] sm:$0xff]  ;;  %v1381_v45 = vld [vmem:[%s11891_s30 + $0x12a] sm:$0xff]  ;;  %v11992_v46 = vpack.c.bf16 %v1379_v43, %v1378_v42  ;;  %v1382_v48 = vld [vmem:[%s11891_s30 + $0x13a] sm:$0xff] }
  0x1d   : > { %10385 = vmatprep.subr.bf16.mxu0 %v11935_v23  ;;  %v11994_v47 = vpack.c.bf16 %v1381_v45, %v1380_v44  ;;  %v1383_v49 = vld [vmem:[%s11891_s30 + $0x142] sm:$0xff]  ;;  %v1384_v50 = vld [vmem:[%s11891_s30 + $0x152] sm:$0xff]  ;;  %v1385_v51 = vld [vmem:[%s11891_s30 + $0x15a] sm:$0xff] }
  0x1e   : > { %v12004_v52 = vpack.c.bf16 %v1383_v49, %v1382_v48  ;;  %v12006_v53 = vpack.c.bf16 %v1385_v51, %v1384_v50  ;;  %v1386_v54 = vld [vmem:[%s11891_s30 + $0x16a] sm:$0xff]  ;;  %v1387_v55 = vld [vmem:[%s11891_s30 + $0x172] sm:$0xff]  ;;  %v1389_v57 = vld [vmem:[%s11891_s30 + $0x1ba] sm:$0xff] }
  0x1f   : > { %v1388_v56 = vld [vmem:[%s11891_s30 + $0x1b2] sm:$0xff]  ;;  %v12016_v58 = vpack.c.bf16 %v1387_v55, %v1386_v54  ;;  %v1390_v60 = vld [vmem:[%s11891_s30 + $0x1ca] sm:$0xff]  ;;  %v1392_v62 = vld [vmem:[%s11891_s30 + $0x1e2] sm:$0xff] }
  0x20   : > { %v1436_v59 = vpack.c.bf16 %v1389_v57, %v1388_v56  ;;  %v1391_v61 = vld [vmem:[%s11891_s30 + $0x1d2] sm:$0xff]  ;;  %v1393_v63 = vld [vmem:[%s11891_s30 + $0x1ea] sm:$0xff]  ;;  %v1394_v3 = vld [vmem:[%s11891_s30 + $0x1fa] sm:$0xff] }
  0x21   : > { %v12025_v0 = vpack.c.bf16 %v1391_v61, %v1390_v60  ;;  %v12027_v1 = vpack.c.bf16 %v1393_v63, %v1392_v62  ;;  %v1395_v4 = vld [vmem:[%s11891_s30 + $0x202] sm:$0xff]  ;;  %v8744_v5 = vld [vmem:[%s11891_s30 + $0x18] sm:$0xff]  ;;  %v8746_v9 = vld [vmem:[%s11891_s30 + $0x30] sm:$0xff] }
  0x22   : > { %v8745_v6 = vld [vmem:[%s11891_s30 + $0x20] sm:$0xff]  ;;  %v12037_v7 = vpack.c.bf16 %v1395_v4, %v1394_v3  ;;  %v8747_v11 = vld [vmem:[%s11891_s30 + $0x38] sm:$0xff]  ;;  %v8748_v12 = vld [vmem:[%s11891_s30 + $0x48] sm:$0xff] }
  0x23   : > { %10260 = vmatmul.mubr.msk.bf16.gmra.mrb[4].mxu0 %vm575_vm2, %v11927_v20  ;;  %v1971_v8 = vpack.c.bf16 %v8745_v6, %v8744_v5  ;;  %v8749_v13 = vld [vmem:[%s11891_s30 + $0x50] sm:$0xff]  ;;  %v12046_v16 = vpack.c.bf16 %v8747_v11, %v8746_v9  ;;  %v9002_v18 = vld [vmem:[%s11898_s10 + $0xa] sm:$0x3]  ;;  %v8750_v19 = vld [vmem:[%s11891_s30 + $0x60] sm:$0xff] }
  0x24   : > { %10263 = vmatprep.mubr.msk.bf16.mxu0 %vm575_vm2, %v11929_v21  ;;  %v12048_v17 = vpack.c.bf16 %v8749_v13, %v8748_v12  ;;  %v8751_v22 = vld [vmem:[%s11891_s30 + $0x68] sm:$0xff]  ;;  %v8752_v24 = vld [vmem:[%s11891_s30 + $0x78] sm:$0xff]  ;;  %v12060_v25 = vand.u32 %v9002_v18, %v11893_v2  ;;  %v8753_v26 = vld [vmem:[%s11891_s30 + $0x80] sm:$0xff] }
  0x25   : > { %v12064_v27 = vpack.c.bf16 %v8751_v22, %v8750_v19  ;;  %v12066_v30 = vpack.c.bf16 %v8753_v26, %v8752_v24  ;;  %v8755_v31 = vld [vmem:[%s11891_s30 + $0x98] sm:$0xff]  ;;  %v8756_v32 = vld [vmem:[%s11891_s30 + $0xa8] sm:$0xff]  ;;  %v8757_v33 = vld [vmem:[%s11891_s30 + $0xb0] sm:$0xff] }
  0x26   : > { %v1977_v37 = vpack.c.bf16 %v8757_v33, %v8756_v32  ;;  %v8758_v38 = vld [vmem:[%s11891_s30 + $0xc0] sm:$0xff]  ;;  %v8759_v39 = vld [vmem:[%s11891_s30 + $0xc8] sm:$0xff]  ;;  %v8760_v42 = vld [vmem:[%s11891_s30 + $0xd8] sm:$0xff] }
  0x27   : > { %v8761_v43 = vld [vmem:[%s11891_s30 + $0xe0] sm:$0xff]  ;;  %v1978_v44 = vpack.c.bf16 %v8759_v39, %v8758_v38  ;;  %v8762_v48 = vld [vmem:[%s11891_s30 + $0xf0] sm:$0xff]  ;;  %v8763_v49 = vld [vmem:[%s11891_s30 + $0xf8] sm:$0xff] }
  0x28   : > { %v1979_v45 = vpack.c.bf16 %v8761_v43, %v8760_v42  ;;  %v8764_v50 = vld [vmem:[%s11891_s30 + $0x108] sm:$0xff]  ;;  %v8765_v51 = vld [vmem:[%s11891_s30 + $0x110] sm:$0xff]  ;;  %v1980_v54 = vpack.c.bf16 %v8763_v49, %v8762_v48  ;;  %v8766_v56 = vld [vmem:[%s11891_s30 + $0x120] sm:$0xff] }
  0x29   : > { %v1981_v55 = vpack.c.bf16 %v8765_v51, %v8764_v50  ;;  %v8767_v57 = vld [vmem:[%s11891_s30 + $0x128] sm:$0xff]  ;;  %v8769_v60 = vld [vmem:[%s11891_s30 + $0x140] sm:$0xff]  ;;  %v8770_v63 = vld [vmem:[%s11891_s30 + $0x150] sm:$0xff] }
  0x2a   : > { %v1982_v61 = vpack.c.bf16 %v8767_v57, %v8766_v56  ;;  %v8771_v3 = vld [vmem:[%s11891_s30 + $0x158] sm:$0xff]  ;;  %v8772_v4 = vld [vmem:[%s11891_s30 + $0x168] sm:$0xff]  ;;  %v8773_v5 = vld [vmem:[%s11891_s30 + $0x170] sm:$0xff] }
  0x2b   : > { %10264 = vmatmul.mubr.msk.bf16.gmra.mrb[8].mxu0 %vm575_vm2, %v11944_v28  ;;  %v1984_v6 = vpack.c.bf16 %v8771_v3, %v8770_v63  ;;  %v8774_v9 = vld [vmem:[%s11891_s30 + $0x180] sm:$0xff]  ;;  %v8775_v11 = vld [vmem:[%s11891_s30 + $0x188] sm:$0xff]  ;;  %v8777_v13 = vld [vmem:[%s11891_s30 + $0x1d0] sm:$0xff] }
  0x2c   : > { %10267 = vmatprep.mubr.msk.bf16.mxu0 %vm575_vm2, %v11946_v29  ;;  %v8776_v12 = vld [vmem:[%s11891_s30 + $0x1c8] sm:$0xff]  ;;  %v1986_v18 = vpack.c.bf16 %v8775_v11, %v8774_v9  ;;  %v8778_v22 = vld [vmem:[%s11891_s30 + $0x1e0] sm:$0xff]  ;;  %v8780_v26 = vld [vmem:[%s11891_s30 + $0x1f8] sm:$0xff] }
  0x2d   : > { %v1987_v19 = vpack.c.bf16 %v8777_v13, %v8776_v12  ;;  %v8779_v24 = vld [vmem:[%s11891_s30 + $0x1e8] sm:$0xff]  ;;  %v8782_v33 = vld [vmem:[%s11891_s30 + $0x210] sm:$0xff]  ;;  %v8786_v43 = vld [vmem:[%s11891_s30 + $0x240] sm:$0xff] }
  0x2e   : > { %v8785_v38 = vld [vmem:[%s11891_s30 + $0x230] sm:$0xff]  ;;  %v8789_v48 = vld [vmem:[%s11891_s30 + $0x260] sm:$0xff] }
  0x2f   : > { %v8790_v51 = vld [vmem:[%s11891_s30 + $0x270] sm:$0xff]  ;;  %v8797_v63 = vld [vmem:[%s11891_s30 + $0x2c0] sm:$0xff] }
  0x30   : > { %v8793_v56 = vld [vmem:[%s11891_s30 + $0x290] sm:$0xff]  ;;  %v8802_v13 = vld [vmem:[%s11891_s30 + $0x300] sm:$0xff] }
  0x31   : > { %v8801_v9 = vld [vmem:[%s11891_s30 + $0x2f0] sm:$0xff] }
  0x33   : > { %10268 = vmatmul.mubr.msk.bf16.gmra.mrb[12].mxu0 %vm575_vm2, %v11962_v34 }
  0x34   : > { %10271 = vmatprep.mubr.msk.bf16.mxu0 %vm575_vm2, %v11964_v35 }
  0x3b   : > { %10272 = vmatmul.mubr.msk.bf16.gmra.mrb[16].mxu0 %vm575_vm2, %v11975_v40 }
  0x3c   : > { %10275 = vmatprep.mubr.msk.bf16.mxu0 %vm575_vm2, %v11977_v41 }
  0x43   : > { %10276 = vmatmul.mubr.msk.bf16.gmra.mrb[20].mxu0 %vm575_vm2, %v11992_v46 }
  0x44   : > { %10279 = vmatprep.mubr.msk.bf16.mxu0 %vm575_vm2, %v11994_v47 }
  0x4b   : > { %10280 = vmatmul.mubr.msk.bf16.gmra.mrb[24].mxu0 %vm575_vm2, %v12004_v52 }
  0x4c   : > { %10283 = vmatprep.mubr.msk.bf16.mxu0 %vm575_vm2, %v12006_v53 }
  0x53   : > { %10284 = vmatmul.mubr.msk.bf16.gmra.mrb[28].mxu0 %vm575_vm2, %v12016_v58 }
  0x54   : > { %10287 = vmatprep.mubr.msk.bf16.mxu0 %vm575_vm2, %v1436_v59  ;;  %v8768_v59 = vld [vmem:[%s11891_s30 + $0x138] sm:$0xff] }
  0x55   : > { %v1983_v62 = vpack.c.bf16 %v8769_v60, %v8768_v59  ;;  %v8794_v60 = vld [vmem:[%s11891_s30 + $0x2a0] sm:$0xff] }
  0x5b   : > { %10288 = vmatmul.mubr.msk.bf16.gmra.mrb[32].mxu0 %vm575_vm2, %v12025_v0 }
  0x5c   : > { %10291 = vmatprep.mubr.msk.bf16.mxu0 %vm575_vm2, %v12027_v1 }
  0x63   : > { %10292 = vmatmul.mubr.msk.bf16.gmra.mrb[36].mxu0 %vm575_vm2, %v12037_v7 }
  0x64   : > { %10321 = vmatprep.mubr.msk.bf16.mxu0 %vm575_vm2, %v1971_v8  ;;  %v1985_v8 = vpack.c.bf16 %v8773_v5, %v8772_v4  ;;  %v8798_v5 = vld [vmem:[%s11891_s30 + $0x2d0] sm:$0xff] }
  0x6b   : > { %10322 = vmatmul.mubr.msk.bf16.vlgmr.msra.gmra.mrb[0].mxu0 %vm575_vm2, %v12046_v16 }
  0x6c   : > { %10386 = vmatpush3.bf16.msra.mxu0 %v11935_v23  ;;  %10325 = vmatprep.mubr.msk.bf16.mxu0 %vm575_vm2, %v12048_v17  ;;  %v8754_v23 = vld [vmem:[%s11891_s30 + $0x90] sm:$0xff] }
  0x6d   : > { %10451 = vmatprep.subr.bf16.mxu0 %v12060_v25  ;;  %v1976_v36 = vpack.c.bf16 %v8755_v31, %v8754_v23  ;;  %v8781_v23 = vld [vmem:[%s11891_s30 + $0x200] sm:$0xff]  ;;  %v1988_v31 = vpack.c.bf16 %v8779_v24, %v8778_v22 }
  0x6e   : > { %v1989_v32 = vpack.c.bf16 %v8781_v23, %v8780_v26  ;;  %v8805_v22 = vld [vmem:[%s11891_s30 + $0x320] sm:$0xff]  ;;  %v8806_v23 = vld [vmem:[%s11891_s30 + $0x330] sm:$0xff] }
  0x73   : > { %10326 = vmatmul.mubr.msk.bf16.gmra.mrb[4].mxu0 %vm575_vm2, %v12064_v27 }
  0x74   : > { %10329 = vmatprep.mubr.msk.bf16.mxu0 %vm575_vm2, %v12066_v30 }
  0x7b   : > { %10330 = vmatmul.mubr.msk.bf16.gmra.mrb[8].mxu0 %vm575_vm2, %v1976_v36  ;;  %v8783_v36 = vld [vmem:[%s11891_s30 + $0x218] sm:$0xff] }
  0x7c   : > { %10333 = vmatprep.mubr.msk.bf16.mxu0 %vm575_vm2, %v1977_v37  ;;  %v8784_v37 = vld [vmem:[%s11891_s30 + $0x228] sm:$0xff]  ;;  %v1990_v39 = vpack.c.bf16 %v8783_v36, %v8782_v33 }
  0x7d   : > { %v1991_v42 = vpack.c.bf16 %v8785_v38, %v8784_v37  ;;  %v8842_v33 = vld [vmem:[%s11891_s30 + $0x21] sm:$0xff]  ;;  %v8843_v38 = vld [vmem:[%s11891_s30 + $0x31] sm:$0xff] }
  0x83   : > { %10334 = vmatmul.mubr.msk.bf16.gmra.mrb[12].mxu0 %vm575_vm2, %v1978_v44  ;;  %v8787_v44 = vld [vmem:[%s11891_s30 + $0x248] sm:$0xff] }
  0x84   : > { %10337 = vmatprep.mubr.msk.bf16.mxu0 %vm575_vm2, %v1979_v45  ;;  %v8788_v45 = vld [vmem:[%s11891_s30 + $0x258] sm:$0xff]  ;;  %v1992_v49 = vpack.c.bf16 %v8787_v44, %v8786_v43 }
  0x85   : > { %v1993_v50 = vpack.c.bf16 %v8789_v48, %v8788_v45  ;;  %v8846_v43 = vld [vmem:[%s11891_s30 + $0x51] sm:$0xff]  ;;  %v9099_v48 = vld [vmem:[%s11898_s10 + $0xc] sm:$0x3] }
  0x8b   : > { %10338 = vmatmul.mubr.msk.bf16.gmra.mrb[16].mxu0 %vm575_vm2, %v1980_v54  ;;  %v8791_v54 = vld [vmem:[%s11891_s30 + $0x278] sm:$0xff] }
  0x8c   : > { %10341 = vmatprep.mubr.msk.bf16.mxu0 %vm575_vm2, %v1981_v55  ;;  %v8792_v55 = vld [vmem:[%s11891_s30 + $0x288] sm:$0xff]  ;;  %v1994_v57 = vpack.c.bf16 %v8791_v54, %v8790_v51  ;;  %v12167_v51 = vand.u32 %v9099_v48, %v11893_v2  ;;  %v8849_v54 = vld [vmem:[%s11891_s30 + $0x79] sm:$0xff] }
  0x8d   : > { %v1995_v59 = vpack.c.bf16 %v8793_v56, %v8792_v55  ;;  %v8850_v55 = vld [vmem:[%s11891_s30 + $0x81] sm:$0xff]  ;;  %v8869_v48 = vld [vmem:[%s11891_s30 + $0x169] sm:$0xff] }
  0x93   : > { %10342 = vmatmul.mubr.msk.bf16.gmra.mrb[20].mxu0 %vm575_vm2, %v1982_v61  ;;  %v8795_v61 = vld [vmem:[%s11891_s30 + $0x2a8] sm:$0xff] }
  0x94   : > { %10345 = vmatprep.mubr.msk.bf16.mxu0 %vm575_vm2, %v1983_v62  ;;  %v8796_v62 = vld [vmem:[%s11891_s30 + $0x2b8] sm:$0xff]  ;;  %v1996_v3 = vpack.c.bf16 %v8795_v61, %v8794_v60  ;;  %v8853_v60 = vld [vmem:[%s11891_s30 + $0xa9] sm:$0xff] }
  0x95   : > { %v1997_v4 = vpack.c.bf16 %v8797_v63, %v8796_v62  ;;  %v8854_v61 = vld [vmem:[%s11891_s30 + $0xb1] sm:$0xff] }
  0x96   : > { %v2527_v63 = vpack.c.bf16 %v8854_v61, %v8853_v60  ;;  %v8876_v61 = vld [vmem:[%s11891_s30 + $0x1e9] sm:$0xff] }
  0x9b   : > { %10346 = vmatmul.mubr.msk.bf16.gmra.mrb[24].mxu0 %vm575_vm2, %v1984_v6  ;;  %v8799_v6 = vld [vmem:[%s11891_s30 + $0x2d8] sm:$0xff] }
  0x9c   : > { %10349 = vmatprep.mubr.msk.bf16.mxu0 %vm575_vm2, %v1985_v8  ;;  %v8800_v8 = vld [vmem:[%s11891_s30 + $0x2e8] sm:$0xff]  ;;  %v1998_v11 = vpack.c.bf16 %v8799_v6, %v8798_v5  ;;  %v8857_v5 = vld [vmem:[%s11891_s30 + $0xd9] sm:$0xff] }
  0x9d   : > { %v1999_v12 = vpack.c.bf16 %v8801_v9, %v8800_v8  ;;  %v8858_v6 = vld [vmem:[%s11891_s30 + $0xe1] sm:$0xff] }
  0x9e   : > { %v2529_v9 = vpack.c.bf16 %v8858_v6, %v8857_v5  ;;  %v8880_v6 = vld [vmem:[%s11891_s30 + $0x219] sm:$0xff] }
  0xa3   : > { %10350 = vmatmul.mubr.msk.bf16.gmra.mrb[28].mxu0 %vm575_vm2, %v1986_v18  ;;  %v8803_v18 = vld [vmem:[%s11891_s30 + $0x308] sm:$0xff] }
  0xa4   : > { %10353 = vmatprep.mubr.msk.bf16.mxu0 %vm575_vm2, %v1987_v19  ;;  %v8804_v19 = vld [vmem:[%s11891_s30 + $0x318] sm:$0xff]  ;;  %v2000_v24 = vpack.c.bf16 %v8803_v18, %v8802_v13  ;;  %v477_v13 = vld [vmem:[%s11891_s30 + $0x1] sm:$0xff]  ;;  %v478_v18 = vld [vmem:[%s11891_s30 + $0x9] sm:$0xff] }
  0xa5   : > { %v2001_v26 = vpack.c.bf16 %v8805_v22, %v8804_v19  ;;  %v8859_v19 = vld [vmem:[%s11891_s30 + $0xf1] sm:$0xff]  ;;  %v8860_v22 = vld [vmem:[%s11891_s30 + $0xf9] sm:$0xff] }
  0xab   : > { %10354 = vmatmul.mubr.msk.bf16.gmra.mrb[32].mxu0 %vm575_vm2, %v1988_v31  ;;  %v8807_v31 = vld [vmem:[%s11891_s30 + $0x338] sm:$0xff] }
  0xac   : > { %10357 = vmatprep.mubr.msk.bf16.mxu0 %vm575_vm2, %v1989_v32  ;;  %v8841_v32 = vld [vmem:[%s11891_s30 + $0x19] sm:$0xff]  ;;  %v2002_v36 = vpack.c.bf16 %v8807_v31, %v8806_v23  ;;  %v8862_v23 = vld [vmem:[%s11891_s30 + $0x111] sm:$0xff]  ;;  %v2530_v31 = vpack.c.bf16 %v8860_v22, %v8859_v19  ;;  %v8886_v22 = vld [vmem:[%s11891_s30 + $0x261] sm:$0xff] }
  0xad   : > { %v2521_v37 = vpack.c.bf16 %v8842_v33, %v8841_v32  ;;  %v8863_v33 = vld [vmem:[%s11891_s30 + $0x121] sm:$0xff]  ;;  %v8885_v19 = vld [vmem:[%s11891_s30 + $0x259] sm:$0xff] }
  0xb3   : > { %10358 = vmatmul.mubr.msk.bf16.gmra.mrb[36].mxu0 %vm575_vm2, %v1990_v39  ;;  %v8844_v39 = vld [vmem:[%s11891_s30 + $0x39] sm:$0xff] }
  0xb4   : > { %10361 = vmatprep.mubr.msk.bf16.mxu0 %vm575_vm2, %v1991_v42  ;;  %v8845_v42 = vld [vmem:[%s11891_s30 + $0x49] sm:$0xff]  ;;  %v2522_v44 = vpack.c.bf16 %v8844_v39, %v8843_v38  ;;  %v8865_v38 = vld [vmem:[%s11891_s30 + $0x139] sm:$0xff]  ;;  %v8866_v39 = vld [vmem:[%s11891_s30 + $0x141] sm:$0xff] }
  0xb5   : > { %v2523_v45 = vpack.c.bf16 %v8846_v43, %v8845_v42  ;;  %v2533_v43 = vpack.c.bf16 %v8866_v39, %v8865_v38  ;;  %v509_v39 = vld [vmem:[%s11891_s30 + $0x1b1] sm:$0xff] }
  0xbb   : > { %10362 = vmatmul.mubr.msk.bf16.gmra.mrb[40].mxu0 %vm575_vm2, %v1992_v49  ;;  %v8847_v49 = vld [vmem:[%s11891_s30 + $0x61] sm:$0xff] }
  0xbc   : > { %10365 = vmatprep.mubr.msk.bf16.mxu0 %vm575_vm2, %v1993_v50  ;;  %v8848_v50 = vld [vmem:[%s11891_s30 + $0x69] sm:$0xff] }
  0xbd   : > { %v2524_v56 = vpack.c.bf16 %v8848_v50, %v8847_v49  ;;  %v8870_v49 = vld [vmem:[%s11891_s30 + $0x171] sm:$0xff] }
  0xc3   : > { %10366 = vmatmul.mubr.msk.bf16.gmra.mrb[44].mxu0 %vm575_vm2, %v1994_v57  ;;  %v2525_v57 = vpack.c.bf16 %v8850_v55, %v8849_v54  ;;  %v2535_v54 = vpack.c.bf16 %v8870_v49, %v8869_v48  ;;  %v8872_v55 = vld [vmem:[%s11891_s30 + $0x189] sm:$0xff]  ;;  %v8893_v48 = vld [vmem:[%s11891_s30 + $0x2b9] sm:$0xff]  ;;  %v8894_v49 = vld [vmem:[%s11891_s30 + $0x2c1] sm:$0xff] }
  0xc4   : > { %10369 = vmatprep.mubr.msk.bf16.mxu0 %vm575_vm2, %v1995_v59  ;;  %v8852_v59 = vld [vmem:[%s11891_s30 + $0x99] sm:$0xff] }
  0xcb   : > { %10370 = vmatmul.mubr.msk.bf16.gmra.mrb[48].mxu0 %vm575_vm2, %v1996_v3  ;;  %v8855_v3 = vld [vmem:[%s11891_s30 + $0xc1] sm:$0xff] }
  0xcc   : > { %10373 = vmatprep.mubr.msk.bf16.mxu0 %vm575_vm2, %v1997_v4  ;;  %v8856_v4 = vld [vmem:[%s11891_s30 + $0xc9] sm:$0xff] }
  0xcd   : > { %v2528_v8 = vpack.c.bf16 %v8856_v4, %v8855_v3  ;;  %v8878_v3 = vld [vmem:[%s11891_s30 + $0x201] sm:$0xff] }
  0xd3   : > { %10374 = vmatmul.mubr.msk.bf16.gmra.mrb[52].mxu0 %vm575_vm2, %v1998_v11  ;;  %v8646_v11 = vld [vmem:[%s11898_s10 + $0x2] sm:$0x3] }
  0xd4   : > { %10377 = vmatprep.mubr.msk.bf16.mxu0 %vm575_vm2, %v1999_v12  ;;  %v677_v12 = vand.u32 %v8646_v11, %v11893_v2  ;;  %v8882_v11 = vld [vmem:[%s11891_s30 + $0x231] sm:$0xff] }
  0xd6   : > { %10121 = vmatprep.subr.bf16.mxu1 %v677_v12 }
  0xd7   : > { %10122 = vmatpush3.bf16.msra.mxu1 %v677_v12 }
  0xdb   : > { %10378 = vmatmul.mubr.msk.bf16.gmra.mrb[56].mxu0 %vm575_vm2, %v2000_v24  ;;  %v541_v24 = vpack.c.bf16 %v478_v18, %v477_v13  ;;  %v8884_v18 = vld [vmem:[%s11891_s30 + $0x249] sm:$0xff] }
  0xdc   : > { %10381 = vmatprep.mubr.msk.bf16.mxu0 %vm575_vm2, %v2001_v26  ;;  %v8861_v26 = vld [vmem:[%s11891_s30 + $0x109] sm:$0xff] }
  0xdd   : > { %10123 = vmatprep.mubr.msk.bf16.mxu1 %vm575_vm2, %v541_v24  ;;  %v2531_v32 = vpack.c.bf16 %v8862_v23, %v8861_v26  ;;  %v2543_v26 = vpack.c.bf16 %v8886_v22, %v8885_v19  ;;  %v8887_v23 = vld [vmem:[%s11891_s30 + $0x271] sm:$0xff] }
  0xde   : > { %10124 = vmatmul.mubr.msk.bf16.vlgmr.msra.gmra.mrb[0].mxu1 %vm575_vm2, %v2521_v37  ;;  %v390_v22 = vld [vmem:[%s11891_s30 + $0x78] sm:$0xff] }
  0xdf   : > { %10127 = vmatprep.mubr.msk.bf16.mxu1 %vm575_vm2, %v2522_v44 }
  0xe3   : > { %10382 = vmatmul.mubr.msk.bf16.gmra.mrb[60].mxu0 %vm575_vm2, %v2002_v36  ;;  %v8864_v36 = vld [vmem:[%s11891_s30 + $0x129] sm:$0xff] }
  0xe4   : > { %10387 = vmatprep.mubr.msk.bf16.mxu0 %vm575_vm2, %v2521_v37  ;;  %v2532_v42 = vpack.c.bf16 %v8864_v36, %v8863_v33  ;;  %v8867_v37 = vld [vmem:[%s11891_s30 + $0x151] sm:$0xff] }
  0xe5   : > { %v8890_v33 = vld [vmem:[%s11891_s30 + $0x291] sm:$0xff] }
  0xe6   : > { %10128 = vmatmul.mubr.msk.bf16.gmra.mrb[4].mxu1 %vm575_vm2, %v2523_v45 }
  0xe7   : > { %10131 = vmatprep.mubr.msk.bf16.mxu1 %vm575_vm2, %v2524_v56 }
  0xeb   : > { %10388 = vmatmul.mubr.msk.bf16.vlgmr.msra.gmra.mrb[0].mxu0 %vm575_vm2, %v2522_v44  ;;  %v8868_v44 = vld [vmem:[%s11891_s30 + $0x159] sm:$0xff] }
  0xec   : > { %10452 = vmatpush3.bf16.msra.mxu0 %v12060_v25  ;;  %10391 = vmatprep.mubr.msk.bf16.mxu0 %vm575_vm2, %v2523_v45  ;;  %v8851_v25 = vld [vmem:[%s11891_s30 + $0x91] sm:$0xff]  ;;  %v2534_v50 = vpack.c.bf16 %v8868_v44, %v8867_v37  ;;  %v8871_v45 = vld [vmem:[%s11891_s30 + $0x181] sm:$0xff]  ;;  %v8892_v37 = vld [vmem:[%s11891_s30 + $0x2a9] sm:$0xff] }
  0xed   : > { %10517 = vmatprep.subr.bf16.mxu0 %v12167_v51  ;;  %v2526_v62 = vpack.c.bf16 %v8852_v59, %v8851_v25  ;;  %v8874_v25 = vld [vmem:[%s11891_s30 + $0x1d1] sm:$0xff]  ;;  %v2536_v59 = vpack.c.bf16 %v8872_v55, %v8871_v45  ;;  %v8896_v55 = vld [vmem:[%s11891_s30 + $0x2d9] sm:$0xff] }
  0xee   : > { %10132 = vmatmul.mubr.msk.bf16.gmra.mrb[8].mxu1 %vm575_vm2, %v2525_v57  ;;  %v8895_v45 = vld [vmem:[%s11891_s30 + $0x2d1] sm:$0xff] }
  0xef   : > { %10135 = vmatprep.mubr.msk.bf16.mxu1 %vm575_vm2, %v2526_v62 }
  0xf3   : > { %10392 = vmatmul.mubr.msk.bf16.gmra.mrb[4].mxu0 %vm575_vm2, %v2524_v56  ;;  %v8873_v56 = vld [vmem:[%s11891_s30 + $0x1c9] sm:$0xff] }
  0xf4   : > { %10395 = vmatprep.mubr.msk.bf16.mxu0 %vm575_vm2, %v2525_v57  ;;  %v2537_v60 = vpack.c.bf16 %v8874_v25, %v8873_v56  ;;  %v8875_v57 = vld [vmem:[%s11891_s30 + $0x1e1] sm:$0xff]  ;;  %v8897_v56 = vld [vmem:[%s11891_s30 + $0x2e9] sm:$0xff]  ;;  %v8898_v25 = vld [vmem:[%s11891_s30 + $0x2f1] sm:$0xff] }
  0xf5   : > { %v2538_v4 = vpack.c.bf16 %v8876_v61, %v8875_v57  ;;  %v2549_v57 = vpack.c.bf16 %v8898_v25, %v8897_v56  ;;  %v8900_v61 = vld [vmem:[%s11891_s30 + $0x309] sm:$0xff]  ;;  %v9055_v56 = vld [vmem:[%s11891_s30 + $0x120] sm:$0xff] }
  0xf6   : > { %10136 = vmatmul.mubr.msk.bf16.gmra.mrb[12].mxu1 %vm575_vm2, %v2527_v63  ;;  %v9056_v25 = vld [vmem:[%s11891_s30 + $0x128] sm:$0xff] }
  0xf7   : > { %10139 = vmatprep.mubr.msk.bf16.mxu1 %vm575_vm2, %v2528_v8 }
  0xfb   : > { %10396 = vmatmul.mubr.msk.bf16.gmra.mrb[8].mxu0 %vm575_vm2, %v2526_v62  ;;  %v8877_v62 = vld [vmem:[%s11891_s30 + $0x1f9] sm:$0xff] }
  0xfc   : > { %10399 = vmatprep.mubr.msk.bf16.mxu0 %vm575_vm2, %v2527_v63  ;;  %v2539_v5 = vpack.c.bf16 %v8878_v3, %v8877_v62  ;;  %v8879_v63 = vld [vmem:[%s11891_s30 + $0x211] sm:$0xff]  ;;  %v8901_v62 = vld [vmem:[%s11891_s30 + $0x319] sm:$0xff]  ;;  %v8902_v3 = vld [vmem:[%s11891_s30 + $0x321] sm:$0xff] }
  0xfd   : > { %v2540_v12 = vpack.c.bf16 %v8880_v6, %v8879_v63  ;;  %v2551_v63 = vpack.c.bf16 %v8902_v3, %v8901_v62  ;;  %v8904_v6 = vld [vmem:[%s11891_s30 + $0x339] sm:$0xff] }
  0xfe   : > { %10140 = vmatmul.mubr.msk.bf16.gmra.mrb[16].mxu1 %vm575_vm2, %v2529_v9  ;;  %v9057_v3 = vld [vmem:[%s11891_s30 + $0x138] sm:$0xff] }
  0xff   : > { %10143 = vmatprep.mubr.msk.bf16.mxu1 %vm575_vm2, %v2530_v31 }
 0x103   : > { %10400 = vmatmul.mubr.msk.bf16.gmra.mrb[12].mxu0 %vm575_vm2, %v2528_v8  ;;  %v8881_v8 = vld [vmem:[%s11891_s30 + $0x229] sm:$0xff] }
 0x104   : > { %10403 = vmatprep.mubr.msk.bf16.mxu0 %vm575_vm2, %v2529_v9  ;;  %v2541_v13 = vpack.c.bf16 %v8882_v11, %v8881_v8  ;;  %v8883_v9 = vld [vmem:[%s11891_s30 + $0x241] sm:$0xff]  ;;  %v9196_v11 = vld [vmem:[%s11898_s10 + $0xe] sm:$0x3] }
 0x105   : > { %v2542_v24 = vpack.c.bf16 %v8884_v18, %v8883_v9  ;;  %v387_v18 = vld [vmem:[%s11891_s30 + $0x50] sm:$0xff] }
 0x106   : > { %10144 = vmatmul.mubr.msk.bf16.gmra.mrb[20].mxu1 %vm575_vm2, %v2531_v32 }
 0x107   : > { %10147 = vmatprep.mubr.msk.bf16.mxu1 %vm575_vm2, %v2532_v42 }
 0x10b   : > { %10404 = vmatmul.mubr.msk.bf16.gmra.mrb[16].mxu0 %vm575_vm2, %v2530_v31  ;;  %v8888_v31 = vld [vmem:[%s11891_s30 + $0x279] sm:$0xff] }
 0x10c   : > { %10407 = vmatprep.mubr.msk.bf16.mxu0 %vm575_vm2, %v2531_v32  ;;  %v8889_v32 = vld [vmem:[%s11891_s30 + $0x289] sm:$0xff]  ;;  %v2544_v36 = vpack.c.bf16 %v8888_v31, %v8887_v23  ;;  %v391_v23 = vld [vmem:[%s11891_s30 + $0x80] sm:$0xff] }
 0x10d   : > { %v2545_v38 = vpack.c.bf16 %v8890_v33, %v8889_v32  ;;  %v449_v31 = vpack.c.bf16 %v391_v23, %v390_v22  ;;  %v9046_v33 = vld [vmem:[%s11891_s30 + $0xb0] sm:$0xff]  ;;  %v413_v22 = vld [vmem:[%s11891_s30 + $0x1b8] sm:$0xff] }
 0x10e   : > { %10148 = vmatmul.mubr.msk.bf16.gmra.mrb[24].mxu1 %vm575_vm2, %v2533_v43 }
 0x10f   : > { %10151 = vmatprep.mubr.msk.bf16.mxu1 %vm575_vm2, %v2534_v50 }
 0x113   : > { %10408 = vmatmul.mubr.msk.bf16.gmra.mrb[20].mxu0 %vm575_vm2, %v2532_v42  ;;  %v510_v42 = vld [vmem:[%s11891_s30 + $0x1b9] sm:$0xff] }
 0x114   : > { %10411 = vmatprep.mubr.msk.bf16.mxu0 %vm575_vm2, %v2533_v43  ;;  %v8891_v43 = vld [vmem:[%s11891_s30 + $0x2a1] sm:$0xff]  ;;  %v557_v44 = vpack.c.bf16 %v510_v42, %v509_v39 }
 0x115   : > { %v9048_v39 = vld [vmem:[%s11891_s30 + $0xc8] sm:$0xff] }
 0x116   : > { %10152 = vmatmul.mubr.msk.bf16.gmra.mrb[28].mxu1 %vm575_vm2, %v2535_v54 }
 0x117   : > { %10155 = vmatprep.mubr.msk.bf16.mxu1 %vm575_vm2, %v557_v44  ;;  %v9051_v44 = vld [vmem:[%s11891_s30 + $0xf0] sm:$0xff] }
 0x11b   : > { %10412 = vmatmul.mubr.msk.bf16.gmra.mrb[24].mxu0 %vm575_vm2, %v2534_v50  ;;  %v2546_v50 = vpack.c.bf16 %v8892_v37, %v8891_v43 }
 0x11c   : > { %10415 = vmatprep.mubr.msk.bf16.mxu0 %vm575_vm2, %v2535_v54  ;;  %v2547_v54 = vpack.c.bf16 %v8894_v49, %v8893_v48  ;;  %v9052_v48 = vld [vmem:[%s11891_s30 + $0xf8] sm:$0xff] }
 0x11e   : > { %10156 = vmatmul.mubr.msk.bf16.gmra.mrb[32].mxu1 %vm575_vm2, %v2537_v60 }
 0x11f   : > { %10159 = vmatprep.mubr.msk.bf16.mxu1 %vm575_vm2, %v2538_v4 }
 0x123   : > { %10416 = vmatmul.mubr.msk.bf16.gmra.mrb[28].mxu0 %vm575_vm2, %v2536_v59  ;;  %v2548_v59 = vpack.c.bf16 %v8896_v55, %v8895_v45  ;;  %v9053_v45 = vld [vmem:[%s11891_s30 + $0x108] sm:$0xff]  ;;  %v8977_v55 = vld [vmem:[%s11891_s30 + $0x21a] sm:$0xff] }
 0x124   : > { %10419 = vmatprep.mubr.msk.bf16.mxu0 %vm575_vm2, %v2537_v60  ;;  %v8899_v60 = vld [vmem:[%s11891_s30 + $0x301] sm:$0xff] }
 0x126   : > { %10160 = vmatmul.mubr.msk.bf16.gmra.mrb[36].mxu1 %vm575_vm2, %v2539_v5 }
 0x127   : > { %10163 = vmatprep.mubr.msk.bf16.mxu1 %vm575_vm2, %v2540_v12 }
 0x12b   : > { %10420 = vmatmul.mubr.msk.bf16.gmra.mrb[32].mxu0 %vm575_vm2, %v2538_v4  ;;  %v2550_v4 = vpack.c.bf16 %v8900_v61, %v8899_v60  ;;  %v12402_v61 = vpack.c.bf16 %v9056_v25, %v9055_v56 }
 0x12c   : > { %10423 = vmatprep.mubr.msk.bf16.mxu0 %vm575_vm2, %v2539_v5  ;;  %v8903_v5 = vld [vmem:[%s11891_s30 + $0x331] sm:$0xff] }
 0x12d   : > { %v2552_v8 = vpack.c.bf16 %v8904_v6, %v8903_v5  ;;  %v9059_v5 = vld [vmem:[%s11891_s30 + $0x150] sm:$0xff]  ;;  %v9060_v6 = vld [vmem:[%s11891_s30 + $0x158] sm:$0xff] }
 0x12e   : > { %10164 = vmatmul.mubr.msk.bf16.gmra.mrb[40].mxu1 %vm575_vm2, %v2541_v13 }
 0x12f   : > { %10167 = vmatprep.mubr.msk.bf16.mxu1 %vm575_vm2, %v2542_v24 }
 0x133   : > { %10424 = vmatmul.mubr.msk.bf16.gmra.mrb[36].mxu0 %vm575_vm2, %v2540_v12  ;;  %v12297_v12 = vand.u32 %v9196_v11, %v11893_v2  ;;  %v8983_v11 = vld [vmem:[%s11891_s30 + $0x262] sm:$0xff] }
 0x134   : > { %10427 = vmatprep.mubr.msk.bf16.mxu0 %vm575_vm2, %v2541_v13  ;;  %v386_v13 = vld [vmem:[%s11891_s30 + $0x48] sm:$0xff] }
 0x135   : > { %v447_v19 = vpack.c.bf16 %v387_v18, %v386_v13 }
 0x136   : > { %10168 = vmatmul.mubr.msk.bf16.gmra.mrb[44].mxu1 %vm575_vm2, %v2543_v26 }
 0x137   : > { %10171 = vmatprep.mubr.msk.bf16.mxu1 %vm575_vm2, %v2544_v36 }
 0x13b   : > { %10428 = vmatmul.mubr.msk.bf16.gmra.mrb[40].mxu0 %vm575_vm2, %v2542_v24  ;;  %v9044_v24 = vld [vmem:[%s11891_s30 + $0x98] sm:$0xff] }
 0x13c   : > { %10431 = vmatprep.mubr.msk.bf16.mxu0 %vm575_vm2, %v2543_v26 }
 0x13e   : > { %10172 = vmatmul.mubr.msk.bf16.gmra.mrb[48].mxu1 %vm575_vm2, %v2545_v38 }
 0x13f   : > { %10175 = vmatprep.mubr.msk.bf16.mxu1 %vm575_vm2, %v2546_v50 }
 0x143   : > { %10432 = vmatmul.mubr.msk.bf16.gmra.mrb[44].mxu0 %vm575_vm2, %v2544_v36  ;;  %v8969_v36 = vld [vmem:[%s11891_s30 + $0x18a] sm:$0xff] }
 0x144   : > { %10435 = vmatprep.mubr.msk.bf16.mxu0 %vm575_vm2, %v2545_v38  ;;  %v9047_v38 = vld [vmem:[%s11891_s30 + $0xc0] sm:$0xff] }
 0x145   : > { %v12365_v37 = vpack.c.bf16 %v9048_v39, %v9047_v38 }
 0x146   : > { %10176 = vmatmul.mubr.msk.bf16.gmra.mrb[52].mxu1 %vm575_vm2, %v2547_v54 }
 0x147   : > { %10179 = vmatprep.mubr.msk.bf16.mxu1 %vm575_vm2, %v2548_v59 }
 0x14b   : > { %10436 = vmatmul.mubr.msk.bf16.gmra.mrb[48].mxu0 %vm575_vm2, %v2546_v50  ;;  %v12380_v50 = vpack.c.bf16 %v9052_v48, %v9051_v44  ;;  %v8993_v44 = vld [vmem:[%s11891_s30 + $0x2da] sm:$0xff]  ;;  %v9071_v48 = vld [vmem:[%s11891_s30 + $0x210] sm:$0xff] }
 0x14c   : > { %10439 = vmatprep.mubr.msk.bf16.mxu0 %vm575_vm2, %v2547_v54  ;;  %v8976_v54 = vld [vmem:[%s11891_s30 + $0x212] sm:$0xff] }
 0x14d   : > { %v12400_v60 = vpack.c.bf16 %v8977_v55, %v8976_v54  ;;  %v9072_v54 = vld [vmem:[%s11891_s30 + $0x218] sm:$0xff] }
 0x14e   : > { %10180 = vmatmul.mubr.msk.bf16.gmra.mrb[56].mxu1 %vm575_vm2, %v2549_v57  ;;  %v12492_v25 = vpack.c.bf16 %v9072_v54, %v9071_v48 }
 0x14f   : > { %10183 = vmatprep.mubr.msk.bf16.mxu1 %vm575_vm2, %v2550_v4 }
 0x153   : > { %10440 = vmatmul.mubr.msk.bf16.gmra.mrb[52].mxu0 %vm575_vm2, %v2548_v59  ;;  %v8978_v59 = vld [vmem:[%s11891_s30 + $0x22a] sm:$0xff] }
 0x154   : > { %10443 = vmatprep.mubr.msk.bf16.mxu0 %vm575_vm2, %v2549_v57  ;;  %v8979_v57 = vld [vmem:[%s11891_s30 + $0x232] sm:$0xff] }
 0x155   : > { %v12404_v62 = vpack.c.bf16 %v8979_v57, %v8978_v59  ;;  %v8996_v57 = vld [vmem:[%s11891_s30 + $0x302] sm:$0xff] }
 0x156   : > { %10184 = vmatmul.mubr.msk.bf16.gmra.mrb[60].mxu1 %vm575_vm2, %v2551_v63 }
 0x15b   : > { %10444 = vmatmul.mubr.msk.bf16.gmra.mrb[56].mxu0 %vm575_vm2, %v2550_v4  ;;  %v9058_v4 = vld [vmem:[%s11891_s30 + $0x140] sm:$0xff] }
 0x15c   : > { %10447 = vmatprep.mubr.msk.bf16.mxu0 %vm575_vm2, %v2551_v63  ;;  %v8981_v63 = vld [vmem:[%s11891_s30 + $0x24a] sm:$0xff] }
 0x163   : > { %10448 = vmatmul.mubr.msk.bf16.gmra.mrb[60].mxu0 %vm575_vm2, %v2552_v8  ;;  %v8982_v8 = vld [vmem:[%s11891_s30 + $0x25a] sm:$0xff] }
 0x164   : > { %10453 = vmatprep.mubr.msk.bf16.mxu0 %vm575_vm2, %v11914_v14  ;;  %v476_v14 = vld [vmem:[%s11898_s10] sm:$0x3] }
 0x16b   : > { %10454 = vmatmul.mubr.msk.bf16.vlgmr.msra.gmra.mrb[0].mxu0 %vm575_vm2, %v11917_v15  ;;  %v1065_v15 = vand.u32 %v11893_v2, %v476_v14  ;;  %v12422_v14 = vpack.c.bf16 %v9058_v4, %v9057_v3  ;;  %v9074_v3 = vld [vmem:[%s11891_s30 + $0x230] sm:$0xff] }
 0x16c   : > { %10518 = vmatpush3.bf16.msra.mxu0 %v12167_v51  ;;  %10457 = vmatprep.mubr.msk.bf16.mxu0 %vm575_vm2, %v11927_v20  ;;  %v380_v20 = vld [vmem:[%s11891_s30] sm:$0xff]  ;;  %v8997_v4 = vld [vmem:[%s11891_s30 + $0x30a] sm:$0xff] }
 0x16d   : > { %10583 = vmatprep.subr.bf16.mxu0 %v12297_v12  ;;  %10187 = vmatprep.subr.bf16.mxu1 %v1065_v15 }
 0x16e   : > { %10188 = vmatpush3.bf16.msra.mxu1 %v1065_v15 }
 0x16f   : > { %11087 = vmatprep.subr.bf16.mxu1 %v11907_v10 }
 0x173   : > { %10458 = vmatmul.mubr.msk.bf16.gmra.mrb[4].mxu0 %vm575_vm2, %v11929_v21  ;;  %v381_v21 = vld [vmem:[%s11891_s30 + $0x8] sm:$0xff] }
 0x174   : > { %10461 = vmatprep.mubr.msk.bf16.mxu0 %vm575_vm2, %v11944_v28  ;;  %v382_v28 = vld [vmem:[%s11891_s30 + $0x18] sm:$0xff] }
 0x17b   : > { %10462 = vmatmul.mubr.msk.bf16.gmra.mrb[8].mxu0 %vm575_vm2, %v11946_v29  ;;  %v444_v29 = vpack.c.bf16 %v381_v21, %v380_v20  ;;  %v12426_v20 = vpack.c.bf16 %v9060_v6, %v9059_v5  ;;  %v12428_v21 = vpack.c.bf16 %v8983_v11, %v8982_v8  ;;  %v9076_v5 = vld [vmem:[%s11891_s30 + $0x248] sm:$0xff]  ;;  %v8998_v6 = vld [vmem:[%s11891_s30 + $0x31a] sm:$0xff] }
 0x17c   : > { %10465 = vmatprep.mubr.msk.bf16.mxu0 %vm575_vm2, %v11962_v34  ;;  %v383_v34 = vld [vmem:[%s11891_s30 + $0x20] sm:$0xff] }
 0x17d   : > { %v445_v51 = vpack.c.bf16 %v383_v34, %v382_v28  ;;  %10189 = vmatprep.mubr.msk.bf16.mxu1 %vm575_vm2, %v444_v29  ;;  %v9061_v28 = vld [vmem:[%s11891_s30 + $0x168] sm:$0xff]  ;;  %v9062_v29 = vld [vmem:[%s11891_s30 + $0x170] sm:$0xff] }
 0x17e   : > { %v8984_v34 = vld [vmem:[%s11891_s30 + $0x272] sm:$0xff]  ;;  %v12444_v13 = vpack.c.bf16 %v9062_v29, %v9061_v28  ;;  %v8999_v8 = vld [vmem:[%s11891_s30 + $0x322] sm:$0xff]  ;;  %v12514_v28 = vpack.c.bf16 %v8997_v4, %v8996_v57 }
 0x17f   : > { %10190 = vmatmul.mubr.msk.bf16.vlgmr.msra.gmra.mrb[0].mxu1 %vm575_vm2, %v445_v51  ;;  %v8985_v51 = vld [vmem:[%s11891_s30 + $0x27a] sm:$0xff]  ;;  %v9140_v4 = vld [vmem:[%s11891_s30 + $0x91] sm:$0xff] }
 0x180   : > { %11088 = vmatpush3.bf16.msra.mxu1 %v11907_v10  ;;  %v388_v10 = vld [vmem:[%s11891_s30 + $0x60] sm:$0xff] }
 0x183   : > { %10466 = vmatmul.mubr.msk.bf16.gmra.mrb[12].mxu0 %vm575_vm2, %v11964_v35  ;;  %v384_v35 = vld [vmem:[%s11891_s30 + $0x30] sm:$0xff] }
 0x184   : > { %10469 = vmatprep.mubr.msk.bf16.mxu0 %vm575_vm2, %v11975_v40  ;;  %v385_v40 = vld [vmem:[%s11891_s30 + $0x38] sm:$0xff] }
 0x185   : > { %v446_v9 = vpack.c.bf16 %v385_v40, %v384_v35  ;;  %v8986_v35 = vld [vmem:[%s11891_s30 + $0x28a] sm:$0xff]  ;;  %v8987_v40 = vld [vmem:[%s11891_s30 + $0x292] sm:$0xff] }
 0x186   : > { %v12448_v18 = vpack.c.bf16 %v8987_v40, %v8986_v35  ;;  %v9077_v35 = vld [vmem:[%s11891_s30 + $0x258] sm:$0xff]  ;;  %v9078_v40 = vld [vmem:[%s11891_s30 + $0x260] sm:$0xff] }
 0x187   : > { %10193 = vmatprep.mubr.msk.bf16.mxu1 %vm575_vm2, %v446_v9  ;;  %v12446_v9 = vpack.c.bf16 %v8985_v51, %v8984_v34  ;;  %v12518_v34 = vpack.c.bf16 %v8999_v8, %v8998_v6  ;;  %v9000_v51 = vld [vmem:[%s11891_s30 + $0x332] sm:$0xff]  ;;  %v9142_v8 = vld [vmem:[%s11891_s30 + $0xa9] sm:$0xff] }
 0x188   : > { %10194 = vmatmul.mubr.msk.bf16.gmra.mrb[4].mxu1 %vm575_vm2, %v447_v19  ;;  %v8988_v19 = vld [vmem:[%s11891_s30 + $0x2a2] sm:$0xff] }
 0x18b   : > { %10470 = vmatmul.mubr.msk.bf16.gmra.mrb[16].mxu0 %vm575_vm2, %v11977_v41  ;;  %v389_v41 = vld [vmem:[%s11891_s30 + $0x68] sm:$0xff] }
 0x18c   : > { %10473 = vmatprep.mubr.msk.bf16.mxu0 %vm575_vm2, %v11992_v46  ;;  %v9043_v46 = vld [vmem:[%s11891_s30 + $0x90] sm:$0xff]  ;;  %v448_v26 = vpack.c.bf16 %v389_v41, %v388_v10 }
 0x18d   : > { %v12348_v32 = vpack.c.bf16 %v9044_v24, %v9043_v46  ;;  %v8989_v10 = vld [vmem:[%s11891_s30 + $0x2aa] sm:$0xff]  ;;  %v9067_v24 = vld [vmem:[%s11891_s30 + $0x1e0] sm:$0xff] }
 0x18e   : > { %10197 = vmatprep.mubr.msk.bf16.mxu1 %vm575_vm2, %v448_v26  ;;  %v412_v41 = vld [vmem:[%s11891_s30 + $0x1b0] sm:$0xff]  ;;  %v414_v46 = vld [vmem:[%s11891_s30 + $0x1c8] sm:$0xff] }
 0x18f   : > { %v9068_v26 = vld [vmem:[%s11891_s30 + $0x1e8] sm:$0xff]  ;;  %v460_v23 = vpack.c.bf16 %v413_v22, %v412_v41  ;;  %v9080_v41 = vld [vmem:[%s11891_s30 + $0x278] sm:$0xff]  ;;  %v12534_v22 = vpack.c.bf16 %v9078_v40, %v9077_v35 }
 0x190   : > { %10198 = vmatmul.mubr.msk.bf16.gmra.mrb[8].mxu1 %vm575_vm2, %v449_v31  ;;  %v415_v31 = vld [vmem:[%s11891_s30 + $0x1d0] sm:$0xff]  ;;  %v12469_v38 = vpack.c.bf16 %v9068_v26, %v9067_v24  ;;  %v9081_v26 = vld [vmem:[%s11891_s30 + $0x288] sm:$0xff]  ;;  %v9146_v35 = vld [vmem:[%s11891_s30 + $0xd9] sm:$0xff] }
 0x191   : > { %10201 = vmatprep.mubr.msk.bf16.mxu1 %vm575_vm2, %v12348_v32  ;;  %v9147_v40 = vld [vmem:[%s11891_s30 + $0xe1] sm:$0xff] }
 0x193   : > { %10474 = vmatmul.mubr.msk.bf16.gmra.mrb[20].mxu0 %vm575_vm2, %v11994_v47  ;;  %v8968_v47 = vld [vmem:[%s11891_s30 + $0x182] sm:$0xff] }
 0x194   : > { %10477 = vmatprep.mubr.msk.bf16.mxu0 %vm575_vm2, %v12004_v52  ;;  %v9045_v52 = vld [vmem:[%s11891_s30 + $0xa8] sm:$0xff]  ;;  %v3086_v43 = vpack.c.bf16 %v8969_v36, %v8968_v47  ;;  %v8990_v47 = vld [vmem:[%s11891_s30 + $0x2ba] sm:$0xff]  ;;  %v12467_v36 = vpack.c.bf16 %v8989_v10, %v8988_v19  ;;  %v9079_v10 = vld [vmem:[%s11891_s30 + $0x270] sm:$0xff] }
 0x195   : > { %v12363_v42 = vpack.c.bf16 %v9046_v33, %v9045_v52  ;;  %v8991_v52 = vld [vmem:[%s11891_s30 + $0x2c2] sm:$0xff]  ;;  %v461_v33 = vpack.c.bf16 %v415_v31, %v414_v46  ;;  %v9001_v19 = vld [vmem:[%s11891_s30 + $0x33a] sm:$0xff]  ;;  %v12536_v24 = vpack.c.bf16 %v9080_v41, %v9079_v10  ;;  %v4179_v41 = vpack.c.bf16 %v9147_v40, %v9146_v35 }
 0x196   : > { %v12471_v39 = vpack.c.bf16 %v8991_v52, %v8990_v47  ;;  %v3102_v46 = vpack.c.bf16 %v9001_v19, %v9000_v51  ;;  %v9083_v31 = vld [vmem:[%s11891_s30 + $0x2a0] sm:$0xff]  ;;  %v9084_v47 = vld [vmem:[%s11891_s30 + $0x2a8] sm:$0xff]  ;;  %v9148_v19 = vld [vmem:[%s11891_s30 + $0xf1] sm:$0xff] }
 0x197   : > { %v9149_v10 = vld [vmem:[%s11891_s30 + $0xf9] sm:$0xff]  ;;  %v9175_v35 = vld [vmem:[%s11891_s30 + $0x261] sm:$0xff] }
 0x198   : > { %10202 = vmatmul.mubr.msk.bf16.gmra.mrb[12].mxu1 %vm575_vm2, %v12363_v42 }
 0x199   : > { %10205 = vmatprep.mubr.msk.bf16.mxu1 %vm575_vm2, %v12365_v37 }
 0x19b   : > { %10478 = vmatmul.mubr.msk.bf16.gmra.mrb[24].mxu0 %vm575_vm2, %v12006_v53  ;;  %v9049_v53 = vld [vmem:[%s11891_s30 + $0xd8] sm:$0xff] }
 0x19c   : > { %10481 = vmatprep.mubr.msk.bf16.mxu0 %vm575_vm2, %v12016_v58  ;;  %v9050_v58 = vld [vmem:[%s11891_s30 + $0xe0] sm:$0xff] }
 0x19d   : > { %v12378_v49 = vpack.c.bf16 %v9050_v58, %v9049_v53  ;;  %v9069_v53 = vld [vmem:[%s11891_s30 + $0x1f8] sm:$0xff]  ;;  %v9070_v58 = vld [vmem:[%s11891_s30 + $0x200] sm:$0xff] }
 0x19e   : > { %v12488_v55 = vpack.c.bf16 %v9070_v58, %v9069_v53  ;;  %v9086_v53 = vld [vmem:[%s11891_s30 + $0x2c0] sm:$0xff]  ;;  %v9087_v58 = vld [vmem:[%s11891_s30 + $0x2d0] sm:$0xff] }
 0x1a0   : > { %10206 = vmatmul.mubr.msk.bf16.gmra.mrb[16].mxu1 %vm575_vm2, %v12378_v49 }
 0x1a1   : > { %10209 = vmatprep.mubr.msk.bf16.mxu1 %vm575_vm2, %v12380_v50 }
 0x1a3   : > { %10482 = vmatmul.mubr.msk.bf16.gmra.mrb[28].mxu0 %vm575_vm2, %v3086_v43  ;;  %v8992_v43 = vld [vmem:[%s11891_s30 + $0x2d2] sm:$0xff] }
 0x1a4   : > { %10485 = vmatprep.mubr.msk.bf16.mxu0 %vm575_vm2, %v12025_v0  ;;  %v9054_v0 = vld [vmem:[%s11891_s30 + $0x110] sm:$0xff]  ;;  %v12490_v56 = vpack.c.bf16 %v8993_v44, %v8992_v43  ;;  %v9085_v43 = vld [vmem:[%s11891_s30 + $0x2b8] sm:$0xff] }
 0x1a5   : > { %v9088_v44 = vld [vmem:[%s11891_s30 + $0x2d8] sm:$0xff]  ;;  %v3647_v54 = vpack.c.bf16 %v9086_v53, %v9085_v43  ;;  %v9155_v43 = vld [vmem:[%s11891_s30 + $0x141] sm:$0xff] }
 0x1ab   : > { %10486 = vmatmul.mubr.msk.bf16.gmra.mrb[32].mxu0 %vm575_vm2, %v12027_v1  ;;  %v12398_v1 = vpack.c.bf16 %v9054_v0, %v9053_v45  ;;  %v8994_v45 = vld [vmem:[%s11891_s30 + $0x2ea] sm:$0xff]  ;;  %v8995_v0 = vld [vmem:[%s11891_s30 + $0x2f2] sm:$0xff] }
 0x1ac   : > { %10489 = vmatprep.mubr.msk.bf16.mxu0 %vm575_vm2, %v12037_v7  ;;  %v8980_v7 = vld [vmem:[%s11891_s30 + $0x242] sm:$0xff]  ;;  %v12494_v59 = vpack.c.bf16 %v8995_v0, %v8994_v45 }
 0x1ad   : > { %10210 = vmatmul.mubr.msk.bf16.gmra.mrb[20].mxu1 %vm575_vm2, %v12398_v1  ;;  %v12424_v15 = vpack.c.bf16 %v8981_v63, %v8980_v7  ;;  %v9073_v7 = vld [vmem:[%s11891_s30 + $0x228] sm:$0xff]  ;;  %v9075_v63 = vld [vmem:[%s11891_s30 + $0x240] sm:$0xff] }
 0x1ae   : > { %10213 = vmatprep.mubr.msk.bf16.mxu1 %vm575_vm2, %v12402_v61  ;;  %v12512_v11 = vpack.c.bf16 %v9074_v3, %v9073_v7  ;;  %v12516_v29 = vpack.c.bf16 %v9076_v5, %v9075_v63  ;;  %v9092_v45 = vld [vmem:[%s11891_s30 + $0x308] sm:$0xff]  ;;  %v9093_v7 = vld [vmem:[%s11891_s30 + $0x318] sm:$0xff]  ;;  %v9094_v3 = vld [vmem:[%s11891_s30 + $0x320] sm:$0xff] }
 0x1af   : > { %v9141_v63 = vld [vmem:[%s11891_s30 + $0x99] sm:$0xff] }
 0x1b0   : > { %v4176_v6 = vpack.c.bf16 %v9141_v63, %v9140_v4  ;;  %v9171_v4 = vld [vmem:[%s11891_s30 + $0x231] sm:$0xff] }
 0x1b3   : > { %10490 = vmatmul.mubr.msk.bf16.gmra.mrb[36].mxu0 %vm575_vm2, %v12400_v60 }
 0x1b4   : > { %10493 = vmatprep.mubr.msk.bf16.mxu0 %vm575_vm2, %v12404_v62 }
 0x1b5   : > { %10214 = vmatmul.mubr.msk.bf16.gmra.mrb[24].mxu1 %vm575_vm2, %v12422_v14 }
 0x1b6   : > { %10217 = vmatprep.mubr.msk.bf16.mxu1 %vm575_vm2, %v12426_v20 }
 0x1bb   : > { %10494 = vmatmul.mubr.msk.bf16.gmra.mrb[40].mxu0 %vm575_vm2, %v12424_v15 }
 0x1bc   : > { %10497 = vmatprep.mubr.msk.bf16.mxu0 %vm575_vm2, %v12428_v21 }
 0x1bd   : > { %10218 = vmatmul.mubr.msk.bf16.gmra.mrb[28].mxu1 %vm575_vm2, %v12444_v13 }
 0x1be   : > { %10221 = vmatprep.mubr.msk.bf16.mxu1 %vm575_vm2, %v460_v23  ;;  %v9082_v23 = vld [vmem:[%s11891_s30 + $0x290] sm:$0xff] }
 0x1bf   : > { %v12549_v52 = vpack.c.bf16 %v9082_v23, %v9081_v26  ;;  %v9152_v26 = vld [vmem:[%s11891_s30 + $0x121] sm:$0xff]  ;;  %v9153_v23 = vld [vmem:[%s11891_s30 + $0x129] sm:$0xff] }
 0x1c3   : > { %10498 = vmatmul.mubr.msk.bf16.gmra.mrb[44].mxu0 %vm575_vm2, %v12446_v9 }
 0x1c4   : > { %10501 = vmatprep.mubr.msk.bf16.mxu0 %vm575_vm2, %v12448_v18 }
 0x1c5   : > { %10222 = vmatmul.mubr.msk.bf16.gmra.mrb[32].mxu1 %vm575_vm2, %v461_v33  ;;  %v12551_v33 = vpack.c.bf16 %v9084_v47, %v9083_v31  ;;  %v4182_v47 = vpack.c.bf16 %v9153_v23, %v9152_v26  ;;  %v9178_v23 = vld [vmem:[%s11891_s30 + $0x289] sm:$0xff] }
 0x1c6   : > { %10225 = vmatprep.mubr.msk.bf16.mxu1 %vm575_vm2, %v12469_v38 }
 0x1cb   : > { %10502 = vmatmul.mubr.msk.bf16.gmra.mrb[48].mxu0 %vm575_vm2, %v12467_v36 }
 0x1cc   : > { %10505 = vmatprep.mubr.msk.bf16.mxu0 %vm575_vm2, %v12471_v39 }
 0x1cd   : > { %10226 = vmatmul.mubr.msk.bf16.gmra.mrb[36].mxu1 %vm575_vm2, %v12488_v55 }
 0x1ce   : > { %10229 = vmatprep.mubr.msk.bf16.mxu1 %vm575_vm2, %v12492_v25 }
 0x1d3   : > { %10506 = vmatmul.mubr.msk.bf16.gmra.mrb[52].mxu0 %vm575_vm2, %v12490_v56 }
 0x1d4   : > { %10509 = vmatprep.mubr.msk.bf16.mxu0 %vm575_vm2, %v12494_v59 }
 0x1d5   : > { %10230 = vmatmul.mubr.msk.bf16.gmra.mrb[40].mxu1 %vm575_vm2, %v12512_v11 }
 0x1d6   : > { %10233 = vmatprep.mubr.msk.bf16.mxu1 %vm575_vm2, %v12516_v29 }
 0x1db   : > { %10510 = vmatmul.mubr.msk.bf16.gmra.mrb[56].mxu0 %vm575_vm2, %v12514_v28 }
 0x1dc   : > { %10513 = vmatprep.mubr.msk.bf16.mxu0 %vm575_vm2, %v12518_v34 }
 0x1dd   : > { %10234 = vmatmul.mubr.msk.bf16.gmra.mrb[44].mxu1 %vm575_vm2, %v12534_v22 }
 0x1de   : > { %10237 = vmatprep.mubr.msk.bf16.mxu1 %vm575_vm2, %v12536_v24 }
 0x1e3   : > { %10514 = vmatmul.mubr.msk.bf16.gmra.mrb[60].mxu0 %vm575_vm2, %v3102_v46  ;;  %v9150_v46 = vld [vmem:[%s11891_s30 + $0x109] sm:$0xff] }
 0x1e4   : > { %10519 = vmatprep.mubr.msk.bf16.mxu0 %vm575_vm2, %v12046_v16  ;;  %v9293_v16 = vld [vmem:[%s11898_s10 + $0x10] sm:$0x3] }
 0x1e5   : > { %10238 = vmatmul.mubr.msk.bf16.gmra.mrb[48].mxu1 %vm575_vm2, %v12549_v52  ;;  %v12568_v48 = vand.u32 %v9293_v16, %v11893_v2  ;;  %v9091_v2 = vld [vmem:[%s11891_s30 + $0x300] sm:$0xff]  ;;  %v9156_v16 = vld [vmem:[%s11891_s30 + $0x151] sm:$0xff] }
 0x1e6   : > { %10241 = vmatprep.mubr.msk.bf16.mxu1 %vm575_vm2, %v12551_v33  ;;  %v3650_v57 = vpack.c.bf16 %v9092_v45, %v9091_v2  ;;  %v9159_v2 = vld [vmem:[%s11891_s30 + $0x171] sm:$0xff] }
 0x1eb   : > { %10520 = vmatmul.mubr.msk.bf16.vlgmr.msra.gmra.mrb[0].mxu0 %vm575_vm2, %v12048_v17  ;;  %v3648_v17 = vpack.c.bf16 %v9088_v44, %v9087_v58  ;;  %v9157_v58 = vld [vmem:[%s11891_s30 + $0x159] sm:$0xff] }
 0x1ec   : > { %10584 = vmatpush3.bf16.msra.mxu0 %v12297_v12  ;;  %10523 = vmatprep.mubr.msk.bf16.mxu0 %vm575_vm2, %v12064_v27  ;;  %v9089_v12 = vld [vmem:[%s11891_s30 + $0x2e8] sm:$0xff]  ;;  %v9090_v27 = vld [vmem:[%s11891_s30 + $0x2f0] sm:$0xff] }
 0x1ed   : > { %10649 = vmatprep.subr.bf16.mxu0 %v12568_v48  ;;  %10242 = vmatmul.mubr.msk.bf16.gmra.mrb[52].mxu1 %vm575_vm2, %v3647_v54  ;;  %v3649_v0 = vpack.c.bf16 %v9090_v27, %v9089_v12  ;;  %v9158_v27 = vld [vmem:[%s11891_s30 + $0x169] sm:$0xff] }
 0x1ee   : > { %10245 = vmatprep.mubr.msk.bf16.mxu1 %vm575_vm2, %v3648_v17 }
 0x1f3   : > { %10524 = vmatmul.mubr.msk.bf16.gmra.mrb[4].mxu0 %vm575_vm2, %v12066_v30  ;;  %v3651_v30 = vpack.c.bf16 %v9094_v3, %v9093_v7 }
 0x1f4   : > { %10527 = vmatprep.mubr.msk.bf16.mxu0 %vm575_vm2, %v12348_v32  ;;  %v9063_v32 = vld [vmem:[%s11891_s30 + $0x180] sm:$0xff] }
 0x1f5   : > { %10246 = vmatmul.mubr.msk.bf16.gmra.mrb[56].mxu1 %vm575_vm2, %v3649_v0 }
 0x1f6   : > { %10249 = vmatprep.mubr.msk.bf16.mxu1 %vm575_vm2, %v3650_v57 }
 0x1fb   : > { %10528 = vmatmul.mubr.msk.bf16.gmra.mrb[8].mxu0 %vm575_vm2, %v12363_v42  ;;  %v9064_v42 = vld [vmem:[%s11891_s30 + $0x188] sm:$0xff] }
 0x1fc   : > { %10531 = vmatprep.mubr.msk.bf16.mxu0 %vm575_vm2, %v12365_v37  ;;  %v3636_v37 = vpack.c.bf16 %v9064_v42, %v9063_v32 }
 0x1fd   : > { %10250 = vmatmul.mubr.msk.bf16.gmra.mrb[60].mxu1 %vm575_vm2, %v3651_v30 }
 0x1fe   : > { %10295 = vmatprep.mubr.msk.bf16.mxu1 %vm575_vm2, %v12400_v60  ;;  %v9095_v60 = vld [vmem:[%s11891_s30 + $0x330] sm:$0xff] }
 0x203   : > { %10532 = vmatmul.mubr.msk.bf16.gmra.mrb[12].mxu0 %vm575_vm2, %v12378_v49  ;;  %v9065_v49 = vld [vmem:[%s11891_s30 + $0x198] sm:$0xff] }
 0x204   : > { %10535 = vmatprep.mubr.msk.bf16.mxu0 %vm575_vm2, %v12380_v50  ;;  %v9066_v50 = vld [vmem:[%s11891_s30 + $0x1a0] sm:$0xff] }
 0x205   : > { %10296 = vmatmul.mubr.msk.bf16.vlgmr.msra.gmra.mrb[40].mxu1 %vm575_vm2, %v12404_v62 }
 0x206   : > { %10299 = vmatprep.mubr.msk.bf16.mxu1 %vm575_vm2, %v12424_v15  ;;  %v9098_v15 = vld [vmem:[%s11891_s30 + $0x350] sm:$0xff] }
 0x20b   : > { %10536 = vmatmul.mubr.msk.bf16.gmra.mrb[16].mxu0 %vm575_vm2, %v12398_v1  ;;  %v3637_v1 = vpack.c.bf16 %v9066_v50, %v9065_v49  ;;  %v9163_v49 = vld [vmem:[%s11891_s30 + $0x1a1] sm:$0xff] }
 0x20c   : > { %10539 = vmatprep.mubr.msk.bf16.mxu0 %vm575_vm2, %v12402_v61  ;;  %v9096_v61 = vld [vmem:[%s11891_s30 + $0x338] sm:$0xff] }
 0x20d   : > { %10300 = vmatmul.mubr.msk.bf16.gmra.mrb[44].mxu1 %vm575_vm2, %v12428_v21  ;;  %v3652_v62 = vpack.c.bf16 %v9096_v61, %v9095_v60  ;;  %v9133_v21 = vld [vmem:[%s11891_s30 + $0x39] sm:$0xff]  ;;  %v9165_v60 = vld [vmem:[%s11891_s30 + $0x1e9] sm:$0xff] }
 0x20e   : > { %10303 = vmatprep.mubr.msk.bf16.mxu1 %vm575_vm2, %v12446_v9 }
 0x213   : > { %10540 = vmatmul.mubr.msk.bf16.gmra.mrb[20].mxu0 %vm575_vm2, %v12422_v14  ;;  %v9097_v14 = vld [vmem:[%s11891_s30 + $0x348] sm:$0xff] }
 0x214   : > { %10543 = vmatprep.mubr.msk.bf16.mxu0 %vm575_vm2, %v12426_v20  ;;  %v9132_v20 = vld [vmem:[%s11891_s30 + $0x31] sm:$0xff] }
 0x215   : > { %10304 = vmatmul.mubr.msk.bf16.gmra.mrb[48].mxu1 %vm575_vm2, %v12448_v18  ;;  %v4172_v9 = vpack.c.bf16 %v9133_v21, %v9132_v20  ;;  %v9134_v18 = vld [vmem:[%s11891_s30 + $0x49] sm:$0xff]  ;;  %v9166_v21 = vld [vmem:[%s11891_s30 + $0x1f9] sm:$0xff] }
 0x216   : > { %10307 = vmatprep.mubr.msk.bf16.mxu1 %vm575_vm2, %v12467_v36  ;;  %v9135_v36 = vld [vmem:[%s11891_s30 + $0x51] sm:$0xff] }
 0x21b   : > { %10544 = vmatmul.mubr.msk.bf16.gmra.mrb[24].mxu0 %vm575_vm2, %v12444_v13  ;;  %v3653_v13 = vpack.c.bf16 %v9098_v15, %v9097_v14 }
 0x21c   : > { %10547 = vmatprep.mubr.msk.bf16.mxu0 %vm575_vm2, %v3636_v37  ;;  %v9162_v37 = vld [vmem:[%s11891_s30 + $0x199] sm:$0xff] }
 0x21d   : > { %10308 = vmatmul.mubr.msk.bf16.gmra.mrb[52].mxu1 %vm575_vm2, %v12471_v39  ;;  %v9137_v39 = vld [vmem:[%s11891_s30 + $0x69] sm:$0xff]  ;;  %v4187_v14 = vpack.c.bf16 %v9163_v49, %v9162_v37 }
 0x21e   : > { %10311 = vmatprep.mubr.msk.bf16.mxu1 %vm575_vm2, %v12490_v56 }
 0x223   : > { %10548 = vmatmul.mubr.msk.bf16.gmra.mrb[28].mxu0 %vm575_vm2, %v3637_v1  ;;  %v9164_v1 = vld [vmem:[%s11891_s30 + $0x1e1] sm:$0xff] }
 0x224   : > { %10551 = vmatprep.mubr.msk.bf16.mxu0 %vm575_vm2, %v12469_v38  ;;  %v9136_v38 = vld [vmem:[%s11891_s30 + $0x61] sm:$0xff]  ;;  %v4188_v15 = vpack.c.bf16 %v9165_v60, %v9164_v1 }
 0x225   : > { %10312 = vmatmul.mubr.msk.bf16.gmra.mrb[56].mxu1 %vm575_vm2, %v12494_v59  ;;  %v4174_v56 = vpack.c.bf16 %v9137_v39, %v9136_v38  ;;  %v9139_v59 = vld [vmem:[%s11891_s30 + $0x81] sm:$0xff] }
 0x226   : > { %10315 = vmatprep.mubr.msk.bf16.mxu1 %vm575_vm2, %v12514_v28  ;;  %v9144_v28 = vld [vmem:[%s11891_s30 + $0xc1] sm:$0xff] }
 0x22b   : > { %10552 = vmatmul.mubr.msk.bf16.gmra.mrb[32].mxu0 %vm575_vm2, %v12488_v55  ;;  %v4173_v55 = vpack.c.bf16 %v9135_v36, %v9134_v18  ;;  %v9168_v18 = vld [vmem:[%s11891_s30 + $0x211] sm:$0xff]  ;;  %v9169_v36 = vld [vmem:[%s11891_s30 + $0x219] sm:$0xff] }
 0x22c   : > { %10555 = vmatprep.mubr.msk.bf16.mxu0 %vm575_vm2, %v12492_v25  ;;  %v9138_v25 = vld [vmem:[%s11891_s30 + $0x79] sm:$0xff] }
 0x22d   : > { %10316 = vmatmul.mubr.msk.bf16.gmra.mrb[60].mxu1 %vm575_vm2, %v12518_v34  ;;  %v4175_v5 = vpack.c.bf16 %v9139_v59, %v9138_v25  ;;  %v9170_v59 = vld [vmem:[%s11891_s30 + $0x229] sm:$0xff] }
 0x233   : > { %10556 = vmatmul.mubr.msk.bf16.gmra.mrb[36].mxu0 %vm575_vm2, %v12512_v11  ;;  %v9143_v11 = vld [vmem:[%s11891_s30 + $0xb1] sm:$0xff] }
 0x234   : > { %10559 = vmatprep.mubr.msk.bf16.mxu0 %vm575_vm2, %v12516_v29  ;;  %v9145_v29 = vld [vmem:[%s11891_s30 + $0xc9] sm:$0xff]  ;;  %v4177_v34 = vpack.c.bf16 %v9143_v11, %v9142_v8 }
 0x235   : > { %v4178_v51 = vpack.c.bf16 %v9145_v29, %v9144_v28  ;;  %v4191_v28 = vpack.c.bf16 %v9171_v4, %v9170_v59 }
 0x23b   : > { %10560 = vmatmul.mubr.msk.bf16.gmra.mrb[40].mxu0 %vm575_vm2, %v12534_v22  ;;  %v4180_v22 = vpack.c.bf16 %v9149_v10, %v9148_v19  ;;  %v9176_v19 = vld [vmem:[%s11891_s30 + $0x271] sm:$0xff]  ;;  %v9177_v10 = vld [vmem:[%s11891_s30 + $0x279] sm:$0xff] }
 0x23c   : > { %10563 = vmatprep.mubr.msk.bf16.mxu0 %vm575_vm2, %v12536_v24  ;;  %v9151_v24 = vld [vmem:[%s11891_s30 + $0x111] sm:$0xff] }
 0x23d   : > { %v4181_v31 = vpack.c.bf16 %v9151_v24, %v9150_v46  ;;  %v4194_v24 = vpack.c.bf16 %v9177_v10, %v9176_v19 }
 0x243   : > { %10564 = vmatmul.mubr.msk.bf16.gmra.mrb[44].mxu0 %vm575_vm2, %v12549_v52 }
 0x244   : > { %10567 = vmatprep.mubr.msk.bf16.mxu0 %vm575_vm2, %v12551_v33  ;;  %v9154_v33 = vld [vmem:[%s11891_s30 + $0x139] sm:$0xff] }
 0x24b   : > { %10568 = vmatmul.mubr.msk.bf16.gmra.mrb[48].mxu0 %vm575_vm2, %v3647_v54  ;;  %v4183_v54 = vpack.c.bf16 %v9155_v43, %v9154_v33  ;;  %v9180_v33 = vld [vmem:[%s11891_s30 + $0x2a1] sm:$0xff]  ;;  %v9181_v43 = vld [vmem:[%s11891_s30 + $0x2a9] sm:$0xff] }
 0x24c   : > { %10571 = vmatprep.mubr.msk.bf16.mxu0 %vm575_vm2, %v3648_v17  ;;  %v4184_v17 = vpack.c.bf16 %v9157_v58, %v9156_v16 }
 0x252   : > { %v12696_v52 = vpop.f32.mrb[0].mxu1 }
 0x253   : > { %10572 = vmatmul.mubr.msk.bf16.gmra.mrb[52].mxu0 %vm575_vm2, %v3649_v0  ;;  %v12701_v53 = vpop.f32.mrb[1].mxu1  ;;  %v9160_v0 = vld [vmem:[%s11891_s30 + $0x181] sm:$0xff] }
 0x254   : > { %10575 = vmatprep.mubr.msk.bf16.mxu0 %vm575_vm2, %v3650_v57  ;;  %v12705_v44 = vpop.f32.mrb[2].mxu1  ;;  %v9161_v57 = vld [vmem:[%s11891_s30 + $0x189] sm:$0xff] }
 0x255   : > { %v4186_v32 = vpack.c.bf16 %v9161_v57, %v9160_v0  ;;  %v9183_v0 = vld [vmem:[%s11891_s30 + $0x2c1] sm:$0xff] }
 0x25b   : > { %10576 = vmatmul.mubr.msk.bf16.gmra.mrb[56].mxu0 %vm575_vm2, %v3651_v30  ;;  %v4185_v30 = vpack.c.bf16 %v9159_v2, %v9158_v27  ;;  %v9182_v2 = vld [vmem:[%s11891_s30 + $0x2b9] sm:$0xff] }
 0x25c   : > { %10579 = vmatprep.mubr.msk.bf16.mxu0 %vm575_vm2, %v3652_v62  ;;  %v4197_v1 = vpack.c.bf16 %v9183_v0, %v9182_v2 }
 0x263   : > { %10580 = vmatmul.mubr.msk.bf16.gmra.mrb[60].mxu0 %vm575_vm2, %v3653_v13  ;;  %v9167_v13 = vld [vmem:[%s11891_s30 + $0x201] sm:$0xff] }
 0x264   : > { %10585 = vmatprep.mubr.msk.bf16.mxu0 %vm575_vm2, %v4172_v9 }
 0x26b   : > { %10586 = vmatmul.mubr.msk.bf16.vlgmr.msra.gmra.mrb[0].mxu0 %vm575_vm2, %v4173_v55  ;;  %v4189_v55 = vpack.c.bf16 %v9167_v13, %v9166_v21  ;;  %v9187_v21 = vld [vmem:[%s11891_s30 + $0x2f1] sm:$0xff] }
 0x26c   : > { %10650 = vmatpush3.bf16.msra.mxu0 %v12568_v48  ;;  %10589 = vmatprep.mubr.msk.bf16.mxu0 %vm575_vm2, %v4174_v56  ;;  %v12707_v48 = vpop.f32.mrb[3].mxu1  ;;  %v4190_v56 = vpack.c.bf16 %v9169_v36, %v9168_v18  ;;  %v9188_v18 = vld [vmem:[%s11891_s30 + $0x301] sm:$0xff]  ;;  %v9189_v36 = vld [vmem:[%s11891_s30 + $0x309] sm:$0xff] }
 0x26d   : > { %v12710_v12 = vpop.f32.mrb[4].mxu1  ;;  %v4200_v4 = vpack.c.bf16 %v9189_v36, %v9188_v18  ;;  %v9233_v18 = vld [vmem:[%s11891_s30 + $0x62] sm:$0xff]  ;;  %v9234_v36 = vld [vmem:[%s11891_s30 + $0x6a] sm:$0xff] }
 0x26e   : > { %v12715_v45 = vpop.f32.mrb[5].mxu1 }
 0x26f   : > { %v12719_v7 = vpop.f32.mrb[6].mxu1 }
 0x270   : > { %v12721_v3 = vpop.f32.mrb[7].mxu1 }
 0x271   : > { %v12724_v42 = vpop.f32.mrb[8].mxu1 }
 0x272   : > { %v12729_v50 = vpop.f32.mrb[9].mxu1 }
 0x273   : > { %10590 = vmatmul.mubr.msk.bf16.gmra.mrb[4].mxu0 %vm575_vm2, %v4175_v5  ;;  %v12733_v61 = vpop.f32.mrb[10].mxu1  ;;  %v9172_v5 = vld [vmem:[%s11891_s30 + $0x241] sm:$0xff] }
 0x274   : > { %10593 = vmatprep.mubr.msk.bf16.mxu0 %vm575_vm2, %v4176_v6  ;;  %v12735_v62 = vpop.f32.mrb[11].mxu1  ;;  %v9173_v6 = vld [vmem:[%s11891_s30 + $0x249] sm:$0xff] }
 0x275   : > { %v12738_v20 = vpop.f32.mrb[12].mxu1  ;;  %v4192_v29 = vpack.c.bf16 %v9173_v6, %v9172_v5  ;;  %v9190_v6 = vld [vmem:[%s11891_s30 + $0x319] sm:$0xff] }
 0x276   : > { %v12743_v9 = vpop.f32.mrb[13].mxu1 }
 0x277   : > { %v12747_v38 = vpop.f32.mrb[14].mxu1 }
 0x278   : > { %v12749_v39 = vpop.f32.mrb[15].mxu1 }
 0x279   : > { %v12752_v25 = vpop.f32.mrb[16].mxu1 }
 0x27a   : > { %v12757_v63 = vpop.f32.mrb[17].mxu1 }
 0x27b   : > { %10594 = vmatmul.mubr.msk.bf16.gmra.mrb[8].mxu0 %vm575_vm2, %v4177_v34  ;;  %v12761_v8 = vpop.f32.mrb[18].mxu1 }
 0x27c   : > { %10597 = vmatprep.mubr.msk.bf16.mxu0 %vm575_vm2, %v4178_v51  ;;  %v12763_v11 = vpop.f32.mrb[19].mxu1  ;;  %v9174_v51 = vld [vmem:[%s11891_s30 + $0x259] sm:$0xff] }
 0x27d   : > { %v4193_v46 = vpack.c.bf16 %v9175_v35, %v9174_v51  ;;  %v9192_v51 = vld [vmem:[%s11891_s30 + $0x331] sm:$0xff]  ;;  %v9193_v35 = vld [vmem:[%s11891_s30 + $0x339] sm:$0xff] }
 0x280   : > { %v12766_v34 = vpop.f32.mrb[20].mxu1 }
 0x281   : > { %v12771_v40 = vpop.f32.mrb[21].mxu1 }
 0x283   : > { %10598 = vmatmul.mubr.msk.bf16.gmra.mrb[12].mxu0 %vm575_vm2, %v4179_v41  ;;  %v12775_v41 = vpop.f32.mrb[22].mxu1 }
 0x284   : > { %10601 = vmatprep.mubr.msk.bf16.mxu0 %vm575_vm2, %v4180_v22  ;;  %v12777_v22 = vpop.f32.mrb[23].mxu1 }
 0x288   : > { %v12780_v26 = vpop.f32.mrb[24].mxu1 }
 0x28b   : > { %10602 = vmatmul.mubr.msk.bf16.gmra.mrb[16].mxu0 %vm575_vm2, %v4181_v31  ;;  %v9179_v31 = vld [vmem:[%s11891_s30 + $0x291] sm:$0xff] }
 0x28c   : > { %10605 = vmatprep.mubr.msk.bf16.mxu0 %vm575_vm2, %v4182_v47  ;;  %v12785_v47 = vpop.f32.mrb[25].mxu1 }
 0x28d   : > { %v12789_v16 = vpop.f32.mrb[26].mxu1 }
 0x28e   : > { %v12791_v58 = vpop.f32.mrb[27].mxu1 }
 0x290   : > { %v12794_v27 = vpop.f32.mrb[28].mxu1 }
 0x291   : > { %v12799_v57 = vpop.f32.mrb[29].mxu1 }
 0x292   : > { %v12803_v37 = vpop.f32.mrb[30].mxu1 }
 0x293   : > { %10606 = vmatmul.mubr.msk.bf16.gmra.mrb[20].mxu0 %vm575_vm2, %v4183_v54  ;;  %v4195_v54 = vpack.c.bf16 %v9179_v31, %v9178_v23  ;;  %v12805_v49 = vpop.f32.mrb[31].mxu1  ;;  %v9194_v31 = vld [vmem:[%s11891_s30 + $0x349] sm:$0xff] }
 0x294   : > { %10609 = vmatprep.mubr.msk.bf16.mxu0 %vm575_vm2, %v4184_v17  ;;  %v4196_v17 = vpack.c.bf16 %v9181_v43, %v9180_v33  ;;  %v9195_v33 = vld [vmem:[%s11891_s30 + $0x351] sm:$0xff] }
 0x29b   : > { %10610 = vmatmul.mubr.msk.bf16.gmra.mrb[24].mxu0 %vm575_vm2, %v4185_v30  ;;  %v9184_v30 = vld [vmem:[%s11891_s30 + $0x2d1] sm:$0xff] }
 0x29c   : > { %10613 = vmatprep.mubr.msk.bf16.mxu0 %vm575_vm2, %v4186_v32  ;;  %v9185_v32 = vld [vmem:[%s11891_s30 + $0x2d9] sm:$0xff] }
 0x29d   : > { %v4198_v60 = vpack.c.bf16 %v9185_v32, %v9184_v30  ;;  %v4203_v30 = vpack.c.bf16 %v9195_v33, %v9194_v31  ;;  %v9237_v31 = vld [vmem:[%s11891_s30 + $0x92] sm:$0xff]  ;;  %v9238_v33 = vld [vmem:[%s11891_s30 + $0x9a] sm:$0xff] }
 0x2a3   : > { %10614 = vmatmul.mubr.msk.bf16.gmra.mrb[28].mxu0 %vm575_vm2, %v4187_v14  ;;  %v12808_v14 = vpop.f32.mrb[32].mxu1 }
 0x2a4   : > { %10617 = vmatprep.mubr.msk.bf16.mxu0 %vm575_vm2, %v4188_v15  ;;  %v9186_v15 = vld [vmem:[%s11891_s30 + $0x2e9] sm:$0xff]  ;;  %v12813_v13 = vpop.f32.mrb[33].mxu1 }
 0x2a5   : > { %v4199_v59 = vpack.c.bf16 %v9187_v21, %v9186_v15  ;;  %v9232_v15 = vld [vmem:[%s11891_s30 + $0x52] sm:$0xff] }
 0x2ab   : > { %10618 = vmatmul.mubr.msk.bf16.gmra.mrb[32].mxu0 %vm575_vm2, %v4189_v55  ;;  %v12817_v55 = vpop.f32.mrb[34].mxu1 }
 0x2ac   : > { %10621 = vmatprep.mubr.msk.bf16.mxu0 %vm575_vm2, %v4190_v56  ;;  %v12819_v56 = vpop.f32.mrb[35].mxu1 }
 0x2ad   : > { %v12822_v5 = vpop.f32.mrb[36].mxu1 }
 0x2b3   : > { %10622 = vmatmul.mubr.msk.bf16.gmra.mrb[36].mxu0 %vm575_vm2, %v4191_v28  ;;  %v9191_v28 = vld [vmem:[%s11891_s30 + $0x321] sm:$0xff] }
 0x2b4   : > { %10625 = vmatprep.mubr.msk.bf16.mxu0 %vm575_vm2, %v4192_v29  ;;  %v12827_v29 = vpop.f32.mrb[37].mxu1 }
 0x2b5   : > { %v12831_v19 = vpop.f32.mrb[38].mxu1 }
 0x2b6   : > { %v12833_v10 = vpop.f32.mrb[39].mxu1 }
 0x2bb   : > { %10626 = vmatmul.mubr.msk.bf16.gmra.mrb[40].mxu0 %vm575_vm2, %v4193_v46  ;;  %v4201_v46 = vpack.c.bf16 %v9191_v28, %v9190_v6  ;;  %v4724_v28 = vpack.c.bf16 %v9234_v36, %v9233_v18  ;;  %v9240_v18 = vld [vmem:[%s11891_s30 + $0xb2] sm:$0xff] }
 0x2bc   : > { %10629 = vmatprep.mubr.msk.bf16.mxu0 %vm575_vm2, %v4194_v24  ;;  %v4202_v24 = vpack.c.bf16 %v9193_v35, %v9192_v51  ;;  %v9235_v35 = vld [vmem:[%s11891_s30 + $0x7a] sm:$0xff] }
 0x2c3   : > { %10630 = vmatmul.mubr.msk.bf16.gmra.mrb[44].mxu0 %vm575_vm2, %v4195_v54  ;;  %v9229_v54 = vld [vmem:[%s11891_s30 + $0x32] sm:$0xff] }
 0x2c4   : > { %10633 = vmatprep.mubr.msk.bf16.mxu0 %vm575_vm2, %v4196_v17  ;;  %v9230_v17 = vld [vmem:[%s11891_s30 + $0x3a] sm:$0xff] }
 0x2c5   : > { %v4722_v32 = vpack.c.bf16 %v9230_v17, %v9229_v54 }
 0x2cb   : > { %10634 = vmatmul.mubr.msk.bf16.gmra.mrb[48].mxu0 %vm575_vm2, %v4197_v1 }
 0x2cc   : > { %10637 = vmatprep.mubr.msk.bf16.mxu0 %vm575_vm2, %v4198_v60  ;;  %v9231_v60 = vld [vmem:[%s11891_s30 + $0x4a] sm:$0xff] }
 0x2cd   : > { %v4723_v6 = vpack.c.bf16 %v9232_v15, %v9231_v60  ;;  %v9239_v15 = vld [vmem:[%s11891_s30 + $0xaa] sm:$0xff] }
 0x2d3   : > { %10638 = vmatmul.mubr.msk.bf16.gmra.mrb[52].mxu0 %vm575_vm2, %v4199_v59 }
 0x2d4   : > { %10641 = vmatprep.mubr.msk.bf16.mxu0 %vm575_vm2, %v4200_v4 }
 0x2d8   : > { %v12836_v23 = vpop.f32.mrb[40].mxu1 }
 0x2d9   : > { %v12841_v43 = vpop.f32.mrb[41].mxu1 }
 0x2da   : > { %v12845_v2 = vpop.f32.mrb[42].mxu1 }
 0x2db   : > { %10642 = vmatmul.mubr.msk.bf16.gmra.mrb[56].mxu0 %vm575_vm2, %v4201_v46  ;;  %v12847_v0 = vpop.f32.mrb[43].mxu1  ;;  %v9236_v46 = vld [vmem:[%s11891_s30 + $0x82] sm:$0xff] }
 0x2dc   : > { %10645 = vmatprep.mubr.msk.bf16.mxu0 %vm575_vm2, %v4202_v24 }
 0x2e0   : > { %v12850_v1 = vpop.f32.mrb[44].mxu1 }
 0x2e1   : > { %v12855_v21 = vpop.f32.mrb[45].mxu1 }
 0x2e2   : > { %v12859_v59 = vpop.f32.mrb[46].mxu1 }
 0x2e3   : > { %10646 = vmatmul.mubr.msk.bf16.gmra.mrb[60].mxu0 %vm575_vm2, %v4203_v30  ;;  %v12861_v4 = vpop.f32.mrb[47].mxu1  ;;  %v4725_v30 = vpack.c.bf16 %v9236_v46, %v9235_v35  ;;  %v4727_v46 = vpack.c.bf16 %v9240_v18, %v9239_v15 }
 0x2e4   : > { %10651 = vmatprep.mubr.msk.bf16.mxu0 %vm575_vm2, %v4722_v32  ;;  %v4726_v32 = vpack.c.bf16 %v9238_v33, %v9237_v31 }
 0x2e8   : > { %v12864_v51 = vpop.f32.mrb[48].mxu1 }
 0x2e9   : > { %13879 = vst [vmem:[#allocation4_spill] sm:$0xff] %v12864_v51  ;;  %v12869_v24 = vpop.f32.mrb[49].mxu1  ;;  %v9286_v51 = vld [vmem:[%s11891_s30 + $0x30a] sm:$0xff] }
 0x2ea   : > { %13880 = vst [vmem:[#allocation5_spill] sm:$0xff] %v12869_v24  ;;  %v12873_v54 = vpop.f32.mrb[50].mxu1  ;;  %v9285_v24 = vld [vmem:[%s11891_s30 + $0x302] sm:$0xff] }
 0x2eb   : > { %10652 = vmatmul.mubr.msk.bf16.vlgmr.msra.gmra.mrb[0].mxu0 %vm575_vm2, %v4723_v6  ;;  %13881 = vst [vmem:[#allocation6_spill] sm:$0xff] %v12873_v54  ;;  %v12875_v17 = vpop.f32.mrb[51].mxu1  ;;  %v9241_v6 = vld [vmem:[%s11891_s30 + $0xc2] sm:$0xff] }
 0x2ec   : > { %10655 = vmatprep.mubr.msk.bf16.mxu0 %vm575_vm2, %v4724_v28  ;;  %13882 = vst [vmem:[#allocation7_spill] sm:$0xff] %v12875_v17  ;;  %v9242_v28 = vld [vmem:[%s11891_s30 + $0xca] sm:$0xff] }
 0x2ed   : > { %v4728_v31 = vpack.c.bf16 %v9242_v28, %v9241_v6 }
 0x2f0   : > { %v12878_v60 = vpop.f32.mrb[52].mxu1 }
 0x2f1   : > { %13883 = vst [vmem:[#allocation8_spill] sm:$0xff] %v12878_v60  ;;  %v12883_v36 = vpop.f32.mrb[53].mxu1  ;;  %v9245_v60 = vld [vmem:[%s11891_s30 + $0xf2] sm:$0xff] }
 0x2f2   : > { %13884 = vst [vmem:[#allocation9_spill] sm:$0xff] %v12883_v36  ;;  %v12887_v54 = vpop.f32.mrb[54].mxu1 }
 0x2f3   : > { %10656 = vmatmul.mubr.msk.bf16.gmra.mrb[4].mxu0 %vm575_vm2, %v4725_v30  ;;  %13885 = vst [vmem:[#allocation10_spill] sm:$0xff] %v12887_v54  ;;  %v12889_v35 = vpop.f32.mrb[55].mxu1  ;;  %v9243_v30 = vld [vmem:[%s11891_s30 + $0xda] sm:$0xff] }
 0x2f4   : > { %10659 = vmatprep.mubr.msk.bf16.mxu0 %vm575_vm2, %v4726_v32  ;;  %13886 = vst [vmem:[#allocation11_spill] sm:$0xff] %v12889_v35  ;;  %v9244_v32 = vld [vmem:[%s11891_s30 + $0xe2] sm:$0xff]  ;;  %v9246_v54 = vld [vmem:[%s11891_s30 + $0xfa] sm:$0xff]  ;;  %v9284_v35 = vld [vmem:[%s11891_s30 + $0x2f2] sm:$0xff] }
 0x2f5   : > { %v4729_v18 = vpack.c.bf16 %v9244_v32, %v9243_v30  ;;  %v4730_v6 = vpack.c.bf16 %v9246_v54, %v9245_v60 }
 0x2f8   : > { %v12892_v33 = vpop.f32.mrb[56].mxu1 }
 0x2f9   : > { %13887 = vst [vmem:[#allocation12_spill] sm:$0xff] %v12892_v33  ;;  %v12897_v36 = vpop.f32.mrb[57].mxu1  ;;  %v9249_v33 = vld [vmem:[%s11891_s30 + $0x122] sm:$0xff] }
 0x2fa   : > { %13888 = vst [vmem:[#allocation13_spill] sm:$0xff] %v12897_v36  ;;  %v12901_v17 = vpop.f32.mrb[58].mxu1 }
 0x2fb   : > { %10660 = vmatmul.mubr.msk.bf16.gmra.mrb[8].mxu0 %vm575_vm2, %v4727_v46  ;;  %13889 = vst [vmem:[#allocation14_spill] sm:$0xff] %v12901_v17  ;;  %v12903_v15 = vpop.f32.mrb[59].mxu1  ;;  %v9247_v46 = vld [vmem:[%s11891_s30 + $0x10a] sm:$0xff] }
 0x2fc   : > { %10663 = vmatprep.mubr.msk.bf16.mxu0 %vm575_vm2, %v4728_v31  ;;  %13890 = vst [vmem:[#allocation15_spill] sm:$0xff] %v12903_v15  ;;  %v9248_v31 = vld [vmem:[%s11891_s30 + $0x112] sm:$0xff]  ;;  %v9250_v17 = vld [vmem:[%s11891_s30 + $0x12a] sm:$0xff] }
 0x2fd   : > { %v4731_v60 = vpack.c.bf16 %v9248_v31, %v9247_v46  ;;  %v4732_v32 = vpack.c.bf16 %v9250_v17, %v9249_v33  ;;  %v9255_v46 = vld [vmem:[%s11891_s30 + $0x16a] sm:$0xff]  ;;  %v9256_v17 = vld [vmem:[%s11891_s30 + $0x172] sm:$0xff]  ;;  %v9257_v33 = vld [vmem:[%s11891_s30 + $0x182] sm:$0xff] }
 0x2fe   : > { %v9258_v31 = vld [vmem:[%s11891_s30 + $0x18a] sm:$0xff] }
 0x300   : > { %v12906_v28 = vpop.f32.mrb[60].mxu1 }
 0x301   : > { %13891 = vst [vmem:[#allocation16_spill] sm:$0xff] %v12906_v28  ;;  %v12911_v36 = vpop.f32.mrb[61].mxu1  ;;  %v9254_v28 = vld [vmem:[%s11891_s30 + $0x15a] sm:$0xff] }
 0x302   : > { %13892 = vst [vmem:[#allocation17_spill] sm:$0xff] %v12911_v36  ;;  %v12915_v30 = vpop.f32.mrb[62].mxu1  ;;  %v9253_v36 = vld [vmem:[%s11891_s30 + $0x152] sm:$0xff] }
 0x303   : > { %10664 = vmatmul.mubr.msk.bf16.gmra.mrb[12].mxu0 %vm575_vm2, %v4729_v18  ;;  %13893 = vst [vmem:[#allocation18_spill] sm:$0xff] %v12915_v30  ;;  %v12917_v54 = vpop.f32.mrb[63].mxu1  ;;  %v9251_v18 = vld [vmem:[%s11891_s30 + $0x13a] sm:$0xff]  ;;  %v4734_v30 = vpack.c.bf16 %v9254_v28, %v9253_v36  ;;  %v9260_v36 = vld [vmem:[%s11891_s30 + $0x1a2] sm:$0xff]  ;;  %v9262_v28 = vld [vmem:[%s11891_s30 + $0x1ea] sm:$0xff] }
 0x304   : > { %10667 = vmatprep.mubr.msk.bf16.mxu0 %vm575_vm2, %v4730_v6  ;;  %13894 = vst [vmem:[#allocation19_spill] sm:$0xff] %v12917_v54  ;;  %v9252_v6 = vld [vmem:[%s11891_s30 + $0x142] sm:$0xff]  ;;  %v9283_v54 = vld [vmem:[%s11891_s30 + $0x2ea] sm:$0xff] }
 0x305   : > { %v4733_v15 = vpack.c.bf16 %v9252_v6, %v9251_v18  ;;  %v9259_v18 = vld [vmem:[%s11891_s30 + $0x19a] sm:$0xff] }
 0x30b   : > { %10668 = vmatmul.mubr.msk.bf16.gmra.mrb[16].mxu0 %vm575_vm2, %v4731_v60  ;;  %v4735_v60 = vpack.c.bf16 %v9256_v17, %v9255_v46  ;;  %v9263_v46 = vld [vmem:[%s11891_s30 + $0x1fa] sm:$0xff]  ;;  %v9264_v17 = vld [vmem:[%s11891_s30 + $0x202] sm:$0xff] }
 0x30c   : > { %10671 = vmatprep.mubr.msk.bf16.mxu0 %vm575_vm2, %v4732_v32  ;;  %v4736_v32 = vpack.c.bf16 %v9258_v31, %v9257_v33  ;;  %v9265_v33 = vld [vmem:[%s11891_s30 + $0x212] sm:$0xff]  ;;  %v9266_v31 = vld [vmem:[%s11891_s30 + $0x21a] sm:$0xff] }
 0x313   : > { %10672 = vmatmul.mubr.msk.bf16.gmra.mrb[20].mxu0 %vm575_vm2, %v4733_v15  ;;  %v9261_v15 = vld [vmem:[%s11891_s30 + $0x1e2] sm:$0xff] }
 0x314   : > { %10675 = vmatprep.mubr.msk.bf16.mxu0 %vm575_vm2, %v4734_v30  ;;  %v4737_v30 = vpack.c.bf16 %v9260_v36, %v9259_v18  ;;  %v4738_v6 = vpack.c.bf16 %v9262_v28, %v9261_v15  ;;  %v9267_v18 = vld [vmem:[%s11891_s30 + $0x22a] sm:$0xff]  ;;  %v9268_v36 = vld [vmem:[%s11891_s30 + $0x232] sm:$0xff]  ;;  %v9269_v15 = vld [vmem:[%s11891_s30 + $0x242] sm:$0xff] }
 0x315   : > { %v9270_v28 = vld [vmem:[%s11891_s30 + $0x24a] sm:$0xff] }
 0x31b   : > { %10676 = vmatmul.mubr.msk.bf16.gmra.mrb[24].mxu0 %vm575_vm2, %v4735_v60  ;;  %v4739_v60 = vpack.c.bf16 %v9264_v17, %v9263_v46  ;;  %v9271_v46 = vld [vmem:[%s11891_s30 + $0x25a] sm:$0xff]  ;;  %v9272_v17 = vld [vmem:[%s11891_s30 + $0x262] sm:$0xff] }
 0x31c   : > { %10679 = vmatprep.mubr.msk.bf16.mxu0 %vm575_vm2, %v4736_v32  ;;  %v4740_v32 = vpack.c.bf16 %v9266_v31, %v9265_v33  ;;  %v9273_v33 = vld [vmem:[%s11891_s30 + $0x272] sm:$0xff]  ;;  %v9274_v31 = vld [vmem:[%s11891_s30 + $0x27a] sm:$0xff] }
 0x323   : > { %10680 = vmatmul.mubr.msk.bf16.gmra.mrb[28].mxu0 %vm575_vm2, %v4737_v30  ;;  %v4741_v30 = vpack.c.bf16 %v9268_v36, %v9267_v18  ;;  %v9275_v18 = vld [vmem:[%s11891_s30 + $0x28a] sm:$0xff]  ;;  %v9276_v36 = vld [vmem:[%s11891_s30 + $0x292] sm:$0xff] }
 0x324   : > { %10683 = vmatprep.mubr.msk.bf16.mxu0 %vm575_vm2, %v4738_v6  ;;  %v4742_v6 = vpack.c.bf16 %v9270_v28, %v9269_v15  ;;  %v9277_v15 = vld [vmem:[%s11891_s30 + $0x2a2] sm:$0xff]  ;;  %v9278_v28 = vld [vmem:[%s11891_s30 + $0x2aa] sm:$0xff] }
 0x32b   : > { %10684 = vmatmul.mubr.msk.bf16.gmra.mrb[32].mxu0 %vm575_vm2, %v4739_v60  ;;  %v4743_v60 = vpack.c.bf16 %v9272_v17, %v9271_v46  ;;  %v9279_v46 = vld [vmem:[%s11891_s30 + $0x2ba] sm:$0xff]  ;;  %v9280_v17 = vld [vmem:[%s11891_s30 + $0x2c2] sm:$0xff] }
 0x32c   : > { %10687 = vmatprep.mubr.msk.bf16.mxu0 %vm575_vm2, %v4740_v32  ;;  %v4744_v32 = vpack.c.bf16 %v9274_v31, %v9273_v33  ;;  %v9281_v33 = vld [vmem:[%s11891_s30 + $0x2d2] sm:$0xff]  ;;  %v9282_v31 = vld [vmem:[%s11891_s30 + $0x2da] sm:$0xff] }
 0x333   : > { %10688 = vmatmul.mubr.msk.bf16.gmra.mrb[36].mxu0 %vm575_vm2, %v4741_v30  ;;  %v4745_v30 = vpack.c.bf16 %v9276_v36, %v9275_v18  ;;  %v4749_v18 = vpack.c.bf16 %v9284_v35, %v9283_v54  ;;  %v4750_v36 = vpack.c.bf16 %v9286_v51, %v9285_v24  ;;  %v9287_v51 = vld [vmem:[%s11891_s30 + $0x31a] sm:$0xff]  ;;  %v9288_v24 = vld [vmem:[%s11891_s30 + $0x322] sm:$0xff]  ;;  %v9289_v35 = vld [vmem:[%s11891_s30 + $0x332] sm:$0xff] }
 0x334   : > { %10691 = vmatprep.mubr.msk.bf16.mxu0 %vm575_vm2, %v4742_v6  ;;  %v4746_v6 = vpack.c.bf16 %v9278_v28, %v9277_v15  ;;  %v13875_v15 = vmov 0.0   ;;  %v9290_v54 = vld [vmem:[%s11891_s30 + $0x33a] sm:$0xff]  ;;  %v4751_v28 = vpack.c.bf16 %v9288_v24, %v9287_v51 }
 0x335   : > { %5492 = vst.msk [vmem:[#allocation3 + $0x20] sm:$0xff] %vm5375_vm3, %v13875_v15  ;;  %5487 = vst.msk [vmem:[#allocation3] sm:$0xff] %vm5375_vm3, %v13875_v15 }
 0x336   : > { %5493 = vst.msk [vmem:[#allocation3 + $0x28] sm:$0x3] %vm5488_vm4, %v13875_v15  ;;  %5489 = vst.msk [vmem:[#allocation3 + $0x8] sm:$0x3] %vm5488_vm4, %v13875_v15 }
 0x337   : > { %5490 = vst.msk [vmem:[#allocation3 + $0x10] sm:$0xff] %vm5375_vm3, %v13875_v15  ;;  %5494 = vst.msk [vmem:[#allocation3 + $0x30] sm:$0xff] %vm5375_vm3, %v13875_v15 }
 0x338   : > { %5491 = vst.msk [vmem:[#allocation3 + $0x18] sm:$0x3] %vm5488_vm4, %v13875_v15  ;;  %5495 = vst.msk [vmem:[#allocation3 + $0x38] sm:$0x3] %vm5488_vm4, %v13875_v15 }
 0x339   : > { %5496 = vst.msk [vmem:[#allocation3 + $0x40] sm:$0xff] %vm5375_vm3, %v13875_v15  ;;  %5498 = vst.msk [vmem:[#allocation3 + $0x50] sm:$0xff] %vm5375_vm3, %v13875_v15 }
 0x33a   : > { %5497 = vst.msk [vmem:[#allocation3 + $0x48] sm:$0x3] %vm5488_vm4, %v13875_v15  ;;  %5499 = vst.msk [vmem:[#allocation3 + $0x58] sm:$0x3] %vm5488_vm4, %v13875_v15 }
 0x33b   : > { %10692 = vmatmul.mubr.msk.bf16.gmra.mrb[40].mxu0 %vm575_vm2, %v4743_v60  ;;  %v4747_v60 = vpack.c.bf16 %v9280_v17, %v9279_v46  ;;  %5500 = vst.msk [vmem:[#allocation3 + $0x60] sm:$0xff] %vm5375_vm3, %v13875_v15  ;;  %5502 = vst.msk [vmem:[#allocation3 + $0x70] sm:$0xff] %vm5375_vm3, %v13875_v15  ;;  %v9292_v46 = vld [vmem:[%s11891_s30 + $0x352] sm:$0xff] }
 0x33c   : > { %10695 = vmatprep.mubr.msk.bf16.mxu0 %vm575_vm2, %v4744_v32  ;;  %v4748_v32 = vpack.c.bf16 %v9282_v31, %v9281_v33  ;;  %5501 = vst.msk [vmem:[#allocation3 + $0x68] sm:$0x3] %vm5488_vm4, %v13875_v15  ;;  %5503 = vst.msk [vmem:[#allocation3 + $0x78] sm:$0x3] %vm5488_vm4, %v13875_v15  ;;  %v11743_v33 = vld [vmem:[%s11958_s14 + $0x10] sm:$0xff]   ;;  %v11744_v31 = vld [vmem:[%s11958_s14 + $0x18] sm:$0xff]  }
 0x33d   : > { %5504 = vst.msk [vmem:[#allocation3 + $0x80] sm:$0xff] %vm5375_vm3, %v13875_v15  ;;  %5506 = vst.msk [vmem:[#allocation3 + $0x90] sm:$0xff] %vm5375_vm3, %v13875_v15  ;;  %10715 = vmatprep.subr.bf16.mxu1 %v11743_v33 }
 0x33e   : > { %5505 = vst.msk [vmem:[#allocation3 + $0x88] sm:$0x3] %vm5488_vm4, %v13875_v15  ;;  %5507 = vst.msk [vmem:[#allocation3 + $0x98] sm:$0x3] %vm5488_vm4, %v13875_v15  ;;  %10716 = vmatpush3.bf16.msra.mxu1 %v11743_v33 }
 0x33f   : > { %5508 = vst.msk [vmem:[#allocation3 + $0xa0] sm:$0xff] %vm5375_vm3, %v13875_v15  ;;  %5510 = vst.msk [vmem:[#allocation3 + $0xb0] sm:$0xff] %vm5375_vm3, %v13875_v15  ;;  %10717 = vmatprep.subr.bf16.mxu1 %v11744_v31 }
 0x340   : > { %5509 = vst.msk [vmem:[#allocation3 + $0xa8] sm:$0x3] %vm5488_vm4, %v13875_v15  ;;  %5511 = vst.msk [vmem:[#allocation3 + $0xb8] sm:$0x3] %vm5488_vm4, %v13875_v15 }
 0x341   : > { %5512 = vst.msk [vmem:[#allocation3 + $0xc0] sm:$0xff] %vm5375_vm3, %v13875_v15  ;;  %5514 = vst.msk [vmem:[#allocation3 + $0xd0] sm:$0xff] %vm5375_vm3, %v13875_v15 }
 0x342   : > { %5513 = vst.msk [vmem:[#allocation3 + $0xc8] sm:$0x3] %vm5488_vm4, %v13875_v15  ;;  %5515 = vst.msk [vmem:[#allocation3 + $0xd8] sm:$0x3] %vm5488_vm4, %v13875_v15  ;;  %10718 = vmatpush3.bf16.msra.mxu1 %v11744_v31 }
 0x343   : > { %10696 = vmatmul.mubr.msk.bf16.gmra.mrb[44].mxu0 %vm575_vm2, %v4745_v30  ;;  %5516 = vst.msk [vmem:[#allocation3 + $0xe0] sm:$0xff] %vm5375_vm3, %v13875_v15  ;;  %5518 = vst.msk [vmem:[#allocation3 + $0xf0] sm:$0xff] %vm5375_vm3, %v13875_v15  ;;  %v4752_v30 = vpack.c.bf16 %v9290_v54, %v9289_v35 }
 0x344   : > { %10699 = vmatprep.mubr.msk.bf16.mxu0 %vm575_vm2, %v4746_v6  ;;  %5517 = vst.msk [vmem:[#allocation3 + $0xe8] sm:$0x3] %vm5488_vm4, %v13875_v15  ;;  %5519 = vst.msk [vmem:[#allocation3 + $0xf8] sm:$0x3] %vm5488_vm4, %v13875_v15  ;;  %v9291_v6 = vld [vmem:[%s11891_s30 + $0x34a] sm:$0xff]  ;;  %s8645_s30 = sshll.u32 %s13929_s25, 1 }
 0x345   : > { %5520 = vst.msk [vmem:[#allocation3 + $0x100] sm:$0xff] %vm5375_vm3, %v13875_v15  ;;  %5522 = vst.msk [vmem:[#allocation3 + $0x110] sm:$0xff] %vm5375_vm3, %v13875_v15  ;;  %v4753_v17 = vpack.c.bf16 %v9292_v46, %v9291_v6  ;;  %s378_s10 = scalar_lea.vmem %s13874_s7, %s8645_s30 }
 0x346   : > { %5521 = vst.msk [vmem:[#allocation3 + $0x108] sm:$0x3] %vm5488_vm4, %v13875_v15  ;;  %5523 = vst.msk [vmem:[#allocation3 + $0x118] sm:$0x3] %vm5488_vm4, %v13875_v15 }
 0x347   : > { %5524 = vst.msk [vmem:[#allocation3 + $0x120] sm:$0xff] %vm5375_vm3, %v13875_v15  ;;  %5526 = vst.msk [vmem:[#allocation3 + $0x130] sm:$0xff] %vm5375_vm3, %v13875_v15 }
 0x348   : > { %5525 = vst.msk [vmem:[#allocation3 + $0x128] sm:$0x3] %vm5488_vm4, %v13875_v15  ;;  %5527 = vst.msk [vmem:[#allocation3 + $0x138] sm:$0x3] %vm5488_vm4, %v13875_v15 }
 0x34b   : > { %10700 = vmatmul.mubr.msk.bf16.gmra.mrb[48].mxu0 %vm575_vm2, %v4747_v60  ;;  %v13070_v60 = vld [vmem:[%s358_s21] ss:$0 sm:$0xff] }
 0x34c   : > { %10703 = vmatprep.mubr.msk.bf16.mxu0 %vm575_vm2, %v4748_v32 }
 0x353   : > { %10704 = vmatmul.mubr.msk.bf16.gmra.mrb[52].mxu0 %vm575_vm2, %v4749_v18 }
 0x354   : > { %10707 = vmatprep.mubr.msk.bf16.mxu0 %vm575_vm2, %v4750_v36 }
 0x35b   : > { %10708 = vmatmul.mubr.msk.bf16.gmra.mrb[56].mxu0 %vm575_vm2, %v4751_v28 }
 0x35c   : > { %10711 = vmatprep.mubr.msk.bf16.mxu0 %vm575_vm2, %v4752_v30 }
 0x363   : > { %10712 = vmatmul.mubr.msk.bf16.gmra.mrb[60].mxu0 %vm575_vm2, %v4753_v17 }
 0x3be   : > { %v10653_v32 = vpop.f32.mrb[0].mxu0 }
 0x3bf   : > { %v11089_v18 = vadd.f32 %v10653_v32, %v12696_v52  ;;  %v4889_v36 = vpop.f32.mrb[1].mxu0  ;;  %v13081_v52 = vld [vmem:[%s11958_s14] sm:$0xff]  }
 0x3c0   : > { %v11090_v51 = vadd.f32 %v4889_v36, %v12701_v53  ;;  %v10654_v24 = vpop.f32.mrb[2].mxu0  ;;  %10735 = vmatprep.subr.bf16.mxu1 %v13081_v52 }
 0x3c1   : > { %v5217_v35 = vadd.f32 %v11089_v18, %v13070_v60  ;;  %v11091_v54 = vadd.f32 %v10654_v24, %v12705_v44  ;;  %v4892_v28 = vpop.f32.mrb[3].mxu0 }
 0x3c2   : > { %v5215_v30 = vadd.f32 %v11090_v51, %v13070_v60  ;;  %v11092_v6 = vadd.f32 %v4892_v28, %v12707_v48 }
 0x3c3   : > { %v5281_v46 = vmax.f32 %v5217_v35, 0.0  ;;  %v5218_v17 = vadd.f32 %v11091_v54, %v13070_v60 }
 0x3c4   : > { %v5279_v33 = vmax.f32 %v5215_v30, 0.0  ;;  %v5216_v31 = vadd.f32 %v11092_v6, %v13070_v60 }
 0x3c5   : > { %v5282_v32 = vmax.f32 %v5218_v17, 0.0 }
 0x3c6   : > { %v5343_v53 = vmax.f32 %v5279_v33, %v5281_v46  ;;  %v5280_v36 = vmax.f32 %v5216_v31, 0.0  ;;  %v10657_v15 = vpop.f32.mrb[4].mxu0 }
 0x3c7   : > { %v11093_v44 = vadd.f32 %v10657_v15, %v12710_v12  ;;  %v4905_v18 = vpop.f32.mrb[5].mxu0 }
 0x3c8   : > { %5376 = vst.msk [vmem:[#allocation2] sm:$0xff] %vm5375_vm3, %v5343_v53  ;;  %v5344_v48 = vmax.f32 %v5280_v36, %v5282_v32  ;;  %v11094_v51 = vadd.f32 %v4905_v18, %v12715_v45  ;;  %v10658_v24 = vpop.f32.mrb[6].mxu0 }
 0x3c9   : > { %v5221_v35 = vadd.f32 %v11093_v44, %v13070_v60  ;;  %v11095_v54 = vadd.f32 %v10658_v24, %v12719_v7  ;;  %v4908_v28 = vpop.f32.mrb[7].mxu0 }
 0x3ca   : > { %5377 = vst.msk [vmem:[#allocation2 + $0x8] sm:$0xff] %vm5375_vm3, %v5344_v48  ;;  %v5219_v30 = vadd.f32 %v11094_v51, %v13070_v60  ;;  %v11096_v6 = vadd.f32 %v4908_v28, %v12721_v3 }
 0x3cb   : > { %v5285_v46 = vmax.f32 %v5221_v35, 0.0  ;;  %v5222_v12 = vadd.f32 %v11095_v54, %v13070_v60 }
 0x3cc   : > { %v5283_v15 = vmax.f32 %v5219_v30, 0.0  ;;  %v5220_v17 = vadd.f32 %v11096_v6, %v13070_v60 }
 0x3cd   : > { %v5286_v33 = vmax.f32 %v5222_v12, 0.0 }
 0x3ce   : > { %v5345_v45 = vmax.f32 %v5283_v15, %v5285_v46  ;;  %v5284_v31 = vmax.f32 %v5220_v17, 0.0  ;;  %v10661_v32 = vpop.f32.mrb[8].mxu0 }
 0x3cf   : > { %v11097_v53 = vadd.f32 %v10661_v32, %v12724_v42  ;;  %v4921_v7 = vpop.f32.mrb[9].mxu0 }
 0x3d0   : > { %5378 = vst.msk [vmem:[#allocation2 + $0x10] sm:$0xff] %vm5375_vm3, %v5345_v45  ;;  %v5346_v36 = vmax.f32 %v5284_v31, %v5286_v33  ;;  %v11098_v44 = vadd.f32 %v4921_v7, %v12729_v50  ;;  %v10662_v18 = vpop.f32.mrb[10].mxu0 }
 0x3d1   : > { %v5408_v3 = vld [vmem:[#allocation2] ss:$2 sm:$0xff]  ;;  %v5440_v48 = vld [vmem:[#allocation2 + $0x1] ss:$2 sm:$0xff]  ;;  %v5225_v51 = vadd.f32 %v11097_v53, %v13070_v60  ;;  %v11099_v24 = vadd.f32 %v10662_v18, %v12733_v61  ;;  %v4924_v35 = vpop.f32.mrb[11].mxu0 }
 0x3d2   : > { %v5471_v54 = vmax.f32 %v5408_v3, %v5440_v48  ;;  %5379 = vst.msk [vmem:[#allocation2 + $0x18] sm:$0xff] %vm5375_vm3, %v5346_v36  ;;  %v5223_v28 = vadd.f32 %v11098_v44, %v13070_v60  ;;  %v11100_v42 = vadd.f32 %v4924_v35, %v12735_v62  ;;  %v5573_v3 = vld [vmem:[#allocation3 + $0x1] sm:$0xff] }
 0x3d3   : > { %v5289_v30 = vmax.f32 %v5225_v51, 0.0  ;;  %v5226_v6 = vadd.f32 %v11099_v24, %v13070_v60 }
 0x3d4   : > { %5529 = vst.msk [vmem:[#allocation3 + $0x11] sm:$0xff] %vm5375_vm3, %v5471_v54  ;;  %v5287_v50 = vmax.f32 %v5223_v28, 0.0  ;;  %v5224_v46 = vadd.f32 %v11100_v42, %v13070_v60 }
 0x3d5   : > { %v5290_v12 = vmax.f32 %v5226_v6, 0.0 }
 0x3d6   : > { %v5347_v15 = vmax.f32 %v5287_v50, %v5289_v30  ;;  %v5288_v17 = vmax.f32 %v5224_v46, 0.0  ;;  %v10665_v61 = vpop.f32.mrb[12].mxu0 }
 0x3d7   : > { %v11101_v33 = vadd.f32 %v10665_v61, %v12738_v20  ;;  %v4937_v45 = vpop.f32.mrb[13].mxu0 }
 0x3d8   : > { %5380 = vst.msk [vmem:[#allocation2 + $0x20] sm:$0xff] %vm5375_vm3, %v5347_v15  ;;  %v5348_v31 = vmax.f32 %v5288_v17, %v5290_v12  ;;  %v11102_v62 = vadd.f32 %v4937_v45, %v12743_v9  ;;  %v10666_v32 = vpop.f32.mrb[14].mxu0 }
 0x3d9   : > { %v5410_v53 = vld [vmem:[#allocation2 + $0x10] ss:$2 sm:$0xff]  ;;  %v5442_v7 = vld [vmem:[#allocation2 + $0x11] ss:$2 sm:$0xff]  ;;  %v5229_v36 = vadd.f32 %v11101_v33, %v13070_v60  ;;  %v11103_v44 = vadd.f32 %v10666_v32, %v12747_v38  ;;  %v4940_v18 = vpop.f32.mrb[15].mxu0 }
 0x3da   : > { %v5472_v48 = vmax.f32 %v5410_v53, %v5442_v7  ;;  %5381 = vst.msk [vmem:[#allocation2 + $0x28] sm:$0xff] %vm5375_vm3, %v5348_v31  ;;  %v5227_v20 = vadd.f32 %v11102_v62, %v13070_v60  ;;  %v11104_v51 = vadd.f32 %v4940_v18, %v12749_v39 }
 0x3db   : > { %v5293_v24 = vmax.f32 %v5229_v36, 0.0  ;;  %v5230_v35 = vadd.f32 %v11103_v44, %v13070_v60  ;;  %v13114_v9 = vld [vmem:[#allocation3 + $0x11] sm:$0xff] }
 0x3dc   : > { %5530 = vst.msk [vmem:[#allocation3 + $0x21] sm:$0xff] %vm5375_vm3, %v5472_v48  ;;  %v5291_v54 = vmax.f32 %v5227_v20, 0.0  ;;  %v5228_v28 = vadd.f32 %v11104_v51, %v13070_v60  ;;  %v5589_v38 = vpack.c.bf16 %v13114_v9, %v5573_v3  ;;  %v13135_v3 = vld [vmem:[#allocation3 + $0x12] sm:$0xff] }
 0x3dd   : > { %v5294_v42 = vmax.f32 %v5230_v35, 0.0 }
 0x3de   : > { %v5349_v30 = vmax.f32 %v5291_v54, %v5293_v24  ;;  %v5292_v6 = vmax.f32 %v5228_v28, 0.0  ;;  %v10669_v50 = vpop.f32.mrb[16].mxu0  ;;  %10719 = vmatprep.mubr.msk.bf16.mxu1 %vm5375_vm3, %v5589_v38 }
 0x3df   : > { %v11105_v39 = vadd.f32 %v10669_v50, %v12752_v25  ;;  %v4953_v46 = vpop.f32.mrb[17].mxu0 }
 0x3e0   : > { %5382 = vst.msk [vmem:[#allocation2 + $0x30] sm:$0xff] %vm5375_vm3, %v5349_v30  ;;  %v5350_v12 = vmax.f32 %v5292_v6, %v5294_v42  ;;  %v11106_v15 = vadd.f32 %v4953_v46, %v12757_v63  ;;  %v10670_v17 = vpop.f32.mrb[18].mxu0 }
 0x3e1   : > { %v5412_v61 = vld [vmem:[#allocation2 + $0x20] ss:$2 sm:$0xff]  ;;  %v5444_v33 = vld [vmem:[#allocation2 + $0x21] ss:$2 sm:$0xff]  ;;  %v5233_v45 = vadd.f32 %v11105_v39, %v13070_v60  ;;  %v11107_v31 = vadd.f32 %v10670_v17, %v12761_v8  ;;  %v4956_v62 = vpop.f32.mrb[19].mxu0 }
 0x3e2   : > { %v5473_v32 = vmax.f32 %v5412_v61, %v5444_v33  ;;  %5383 = vst.msk [vmem:[#allocation2 + $0x38] sm:$0xff] %vm5375_vm3, %v5350_v12  ;;  %v5231_v53 = vadd.f32 %v11106_v15, %v13070_v60  ;;  %v11108_v25 = vadd.f32 %v4956_v62, %v12763_v11  ;;  %v11746_v62 = vld [vmem:[%s11958_s14 + $0x8] sm:$0xff]  }
 0x3e3   : > { %v5297_v7 = vmax.f32 %v5233_v45, 0.0  ;;  %v5234_v36 = vadd.f32 %v11107_v31, %v13070_v60  ;;  %v13129_v44 = vld [vmem:[#allocation3 + $0x21] sm:$0xff] }
 0x3e4   : > { %v13131_v63 = vld [vmem:[#allocation3 + $0x22] sm:$0xff]  ;;  %5531 = vst.msk [vmem:[#allocation3 + $0x31] sm:$0xff] %vm5375_vm3, %v5473_v32  ;;  %v5295_v18 = vmax.f32 %v5231_v53, 0.0  ;;  %v5232_v8 = vadd.f32 %v11108_v25, %v13070_v60 }
 0x3e5   : > { %v5298_v20 = vmax.f32 %v5234_v36, 0.0 }
 0x3e6   : > { %v5351_v51 = vmax.f32 %v5295_v18, %v5297_v7  ;;  %v5296_v24 = vmax.f32 %v5232_v8, 0.0  ;;  %v10673_v35 = vpop.f32.mrb[20].mxu0 }
 0x3e7   : > { %v11109_v54 = vadd.f32 %v10673_v35, %v12766_v34  ;;  %v4969_v28 = vpop.f32.mrb[21].mxu0 }
 0x3e8   : > { %5384 = vst.msk [vmem:[#allocation2 + $0x40] sm:$0xff] %vm5375_vm3, %v5351_v51  ;;  %v5352_v38 = vmax.f32 %v5296_v24, %v5298_v20  ;;  %v11110_v42 = vadd.f32 %v4969_v28, %v12771_v40  ;;  %v10674_v30 = vpop.f32.mrb[22].mxu0  ;;  %v13163_v51 = vld [vmem:[%s11958_s14 + $0x20] sm:$0xff]  }
 0x3e9   : > { %v5414_v6 = vld [vmem:[#allocation2 + $0x30] ss:$2 sm:$0xff]  ;;  %v5446_v50 = vld [vmem:[#allocation2 + $0x31] ss:$2 sm:$0xff]  ;;  %v5237_v39 = vadd.f32 %v11109_v54, %v13070_v60  ;;  %v11111_v46 = vadd.f32 %v10674_v30, %v12775_v41  ;;  %v4972_v12 = vpop.f32.mrb[23].mxu0 }
 0x3ea   : > { %v5474_v15 = vmax.f32 %v5414_v6, %v5446_v50  ;;  %5385 = vst.msk [vmem:[#allocation2 + $0x48] sm:$0xff] %vm5375_vm3, %v5352_v38  ;;  %v5235_v34 = vadd.f32 %v11110_v42, %v13070_v60  ;;  %v11112_v17 = vadd.f32 %v4972_v12, %v12777_v22 }
 0x3eb   : > { %v5301_v61 = vmax.f32 %v5237_v39, 0.0  ;;  %v5238_v33 = vadd.f32 %v11111_v46, %v13070_v60  ;;  %v13150_v40 = vld [vmem:[#allocation3 + $0x31] sm:$0xff] }
 0x3ec   : > { %5532 = vst.msk [vmem:[#allocation3 + $0x41] sm:$0xff] %vm5375_vm3, %v5474_v15  ;;  %v5299_v45 = vmax.f32 %v5235_v34, 0.0  ;;  %v5236_v31 = vadd.f32 %v11112_v17, %v13070_v60  ;;  %v5590_v41 = vpack.c.bf16 %v13150_v40, %v13129_v44  ;;  %v13178_v46 = vld [vmem:[#allocation3 + $0x32] sm:$0xff] }
 0x3ed   : > { %v5302_v32 = vmax.f32 %v5238_v33, 0.0 }
 0x3ee   : > { %v5353_v53 = vmax.f32 %v5299_v45, %v5301_v61  ;;  %v5300_v25 = vmax.f32 %v5236_v31, 0.0  ;;  %v10677_v7 = vpop.f32.mrb[24].mxu0  ;;  %10720 = vmatmul.mubr.msk.bf16.vlgmr.msra.gmra.mrb[64].mxu1 %vm5375_vm3, %v5590_v41 }
 0x3ef   : > { %v11113_v22 = vadd.f32 %v10677_v7, %v12780_v26  ;;  %v4985_v36 = vpop.f32.mrb[25].mxu0  ;;  %10736 = vmatpush3.bf16.msra.mxu1 %v13081_v52 }
 0x3f0   : > { %5386 = vst.msk [vmem:[#allocation2 + $0x50] sm:$0xff] %vm5375_vm3, %v5353_v53  ;;  %v5354_v18 = vmax.f32 %v5300_v25, %v5302_v32  ;;  %v11114_v8 = vadd.f32 %v4985_v36, %v12785_v47  ;;  %v10678_v20 = vpop.f32.mrb[26].mxu0  ;;  %10737 = vmatprep.subr.bf16.mxu1 %v11746_v62 }
 0x3f1   : > { %v5416_v24 = vld [vmem:[#allocation2 + $0x40] ss:$2 sm:$0xff]  ;;  %v5448_v35 = vld [vmem:[#allocation2 + $0x41] ss:$2 sm:$0xff]  ;;  %v5241_v54 = vadd.f32 %v11113_v22, %v13070_v60  ;;  %v11115_v28 = vadd.f32 %v10678_v20, %v12789_v16  ;;  %v4988_v38 = vpop.f32.mrb[27].mxu0 }
 0x3f2   : > { %v5475_v26 = vmax.f32 %v5416_v24, %v5448_v35  ;;  %5387 = vst.msk [vmem:[#allocation2 + $0x58] sm:$0xff] %vm5375_vm3, %v5354_v18  ;;  %v5239_v52 = vadd.f32 %v11114_v8, %v13070_v60  ;;  %v11116_v42 = vadd.f32 %v4988_v38, %v12791_v58  ;;  %v11752_v58 = vld [vmem:[%s11958_s14 + $0x48] sm:$0xff]  }
 0x3f3   : > { %v5305_v30 = vmax.f32 %v5241_v54, 0.0  ;;  %v5242_v47 = vadd.f32 %v11115_v28, %v13070_v60  ;;  %v13171_v6 = vld [vmem:[#allocation3 + $0x41] sm:$0xff]  ;;  %10738 = vmatpush3.bf16.msra.mxu1 %v11746_v62 }
 0x3f4   : > { %v13173_v50 = vld [vmem:[#allocation3 + $0x42] sm:$0xff]  ;;  %5533 = vst.msk [vmem:[#allocation3 + $0x51] sm:$0xff] %vm5375_vm3, %v5475_v26  ;;  %v5303_v39 = vmax.f32 %v5239_v52, 0.0  ;;  %v5240_v16 = vadd.f32 %v11116_v42, %v13070_v60  ;;  %10755 = vmatprep.subr.bf16.mxu1 %v13163_v51 }
 0x3f5   : > { %v5306_v12 = vmax.f32 %v5242_v47, 0.0 }
 0x3f6   : > { %v5355_v34 = vmax.f32 %v5303_v39, %v5305_v30  ;;  %v5304_v17 = vmax.f32 %v5240_v16, 0.0  ;;  %v10681_v61 = vpop.f32.mrb[28].mxu0 }
 0x3f7   : > { %v11117_v33 = vadd.f32 %v10681_v61, %v12794_v27  ;;  %v5001_v45 = vpop.f32.mrb[29].mxu0 }
 0x3f8   : > { %5388 = vst.msk [vmem:[#allocation2 + $0x60] sm:$0xff] %vm5375_vm3, %v5355_v34  ;;  %v5356_v31 = vmax.f32 %v5304_v17, %v5306_v12  ;;  %v11118_v41 = vadd.f32 %v5001_v45, %v12799_v57  ;;  %v10682_v62 = vpop.f32.mrb[30].mxu0 }
 0x3f9   : > { %v5418_v32 = vld [vmem:[#allocation2 + $0x50] ss:$2 sm:$0xff]  ;;  %v5450_v53 = vld [vmem:[#allocation2 + $0x51] ss:$2 sm:$0xff]  ;;  %v5245_v25 = vadd.f32 %v11117_v33, %v13070_v60  ;;  %v11119_v7 = vadd.f32 %v10682_v62, %v12803_v37  ;;  %v5004_v22 = vpop.f32.mrb[31].mxu0 }
 0x3fa   : > { %v5476_v36 = vmax.f32 %v5418_v32, %v5450_v53  ;;  %5389 = vst.msk [vmem:[#allocation2 + $0x68] sm:$0xff] %vm5375_vm3, %v5356_v31  ;;  %v5243_v18 = vadd.f32 %v11118_v41, %v13070_v60  ;;  %v11120_v27 = vadd.f32 %v5004_v22, %v12805_v49 }
 0x3fb   : > { %v5309_v8 = vmax.f32 %v5245_v25, 0.0  ;;  %v5246_v20 = vadd.f32 %v11119_v7, %v13070_v60  ;;  %v13193_v24 = vld [vmem:[#allocation3 + $0x51] sm:$0xff] }
 0x3fc   : > { %5534 = vst.msk [vmem:[#allocation3 + $0x61] sm:$0xff] %vm5375_vm3, %v5476_v36  ;;  %v5307_v57 = vmax.f32 %v5243_v18, 0.0  ;;  %v5244_v35 = vadd.f32 %v11120_v27, %v13070_v60  ;;  %v13199_v37 = vpack.c.bf16 %v13193_v24, %v13171_v6  ;;  %v13218_v32 = vld [vmem:[#allocation3 + $0x52] sm:$0xff] }
 0x3fd   : > { %v5310_v54 = vmax.f32 %v5246_v20, 0.0  ;;  %v13424_v15 = vpack.c.bf16 %v13218_v32, %v13173_v50 }
 0x3fe   : > { %v5357_v28 = vmax.f32 %v5307_v57, %v5309_v8  ;;  %v5308_v38 = vmax.f32 %v5244_v35, 0.0  ;;  %v10685_v26 = vpop.f32.mrb[32].mxu0  ;;  %10723 = vmatprep.mubr.msk.bf16.mxu1 %vm5375_vm3, %v13199_v37 }
 0x3ff   : > { %v11121_v49 = vadd.f32 %v10685_v26, %v12808_v14  ;;  %v5017_v52 = vpop.f32.mrb[33].mxu0 }
 0x400   : > { %5390 = vst.msk [vmem:[#allocation2 + $0x70] sm:$0xff] %vm5375_vm3, %v5357_v28  ;;  %v5358_v42 = vmax.f32 %v5308_v38, %v5310_v54  ;;  %v11122_v30 = vadd.f32 %v5017_v52, %v12813_v13  ;;  %v10686_v47 = vpop.f32.mrb[34].mxu0 }
 0x401   : > { %v5420_v39 = vld [vmem:[#allocation2 + $0x60] ss:$2 sm:$0xff]  ;;  %v5452_v16 = vld [vmem:[#allocation2 + $0x61] ss:$2 sm:$0xff]  ;;  %v5249_v12 = vadd.f32 %v11121_v49, %v13070_v60  ;;  %v11123_v34 = vadd.f32 %v10686_v47, %v12817_v55  ;;  %v5020_v17 = vpop.f32.mrb[35].mxu0 }
 0x402   : > { %v5477_v61 = vmax.f32 %v5420_v39, %v5452_v16  ;;  %5391 = vst.msk [vmem:[#allocation2 + $0x78] sm:$0xff] %vm5375_vm3, %v5358_v42  ;;  %v5247_v33 = vadd.f32 %v11122_v30, %v13070_v60  ;;  %v11124_v14 = vadd.f32 %v5020_v17, %v12819_v56  ;;  %v11750_v56 = vld [vmem:[%s11958_s14 + $0x38] sm:$0xff]  }
 0x403   : > { %v5313_v45 = vmax.f32 %v5249_v12, 0.0  ;;  %v5250_v31 = vadd.f32 %v11123_v34, %v13070_v60  ;;  %v13212_v41 = vld [vmem:[#allocation3 + $0x61] sm:$0xff] }
 0x404   : > { %v13214_v13 = vld [vmem:[#allocation3 + $0x62] sm:$0xff]  ;;  %5535 = vst.msk [vmem:[#allocation3 + $0x71] sm:$0xff] %vm5375_vm3, %v5477_v61  ;;  %v5311_v62 = vmax.f32 %v5247_v33, 0.0  ;;  %v5248_v55 = vadd.f32 %v11124_v14, %v13070_v60 }
 0x405   : > { %v5314_v25 = vmax.f32 %v5250_v31, 0.0 }
 0x406   : > { %v5359_v7 = vmax.f32 %v5311_v62, %v5313_v45  ;;  %v5312_v22 = vmax.f32 %v5248_v55, 0.0  ;;  %v10689_v36 = vpop.f32.mrb[36].mxu0 }
 0x407   : > { %v11125_v18 = vadd.f32 %v10689_v36, %v12822_v5  ;;  %v5033_v27 = vpop.f32.mrb[37].mxu0 }
 0x408   : > { %5392 = vst.msk [vmem:[#allocation2 + $0x80] sm:$0xff] %vm5375_vm3, %v5359_v7  ;;  %v5360_v8 = vmax.f32 %v5312_v22, %v5314_v25  ;;  %v11126_v20 = vadd.f32 %v5033_v27, %v12827_v29  ;;  %v10690_v57 = vpop.f32.mrb[38].mxu0 }
 0x409   : > { %v5422_v35 = vld [vmem:[#allocation2 + $0x70] ss:$2 sm:$0xff]  ;;  %v5454_v54 = vld [vmem:[#allocation2 + $0x71] ss:$2 sm:$0xff]  ;;  %v5253_v28 = vadd.f32 %v11125_v18, %v13070_v60  ;;  %v11127_v38 = vadd.f32 %v10690_v57, %v12831_v19  ;;  %v5036_v26 = vpop.f32.mrb[39].mxu0 }
 0x40a   : > { %v5478_v49 = vmax.f32 %v5422_v35, %v5454_v54  ;;  %5393 = vst.msk [vmem:[#allocation2 + $0x88] sm:$0xff] %vm5375_vm3, %v5360_v8  ;;  %v5251_v52 = vadd.f32 %v11126_v20, %v13070_v60  ;;  %v11128_v5 = vadd.f32 %v5036_v26, %v12833_v10 }
 0x40b   : > { %v5317_v42 = vmax.f32 %v5253_v28, 0.0  ;;  %v5254_v30 = vadd.f32 %v11127_v38, %v13070_v60  ;;  %v13233_v47 = vld [vmem:[#allocation3 + $0x71] sm:$0xff] }
 0x40c   : > { %5536 = vst.msk [vmem:[#allocation3 + $0x81] sm:$0xff] %vm5375_vm3, %v5478_v49  ;;  %v5315_v29 = vmax.f32 %v5251_v52, 0.0  ;;  %v5252_v39 = vadd.f32 %v11128_v5, %v13070_v60  ;;  %v13239_v19 = vpack.c.bf16 %v13233_v47, %v13212_v41  ;;  %v13431_v11 = vld [vmem:[#allocation3 + $0x72] sm:$0xff] }
 0x40d   : > { %v5318_v16 = vmax.f32 %v5254_v30, 0.0 }
 0x40e   : > { %v5361_v12 = vmax.f32 %v5315_v29, %v5317_v42  ;;  %v5316_v34 = vmax.f32 %v5252_v39, 0.0  ;;  %v10693_v17 = vpop.f32.mrb[40].mxu0  ;;  %10724 = vmatmul.mubr.msk.bf16.gmra.mrb[68].mxu1 %vm5375_vm3, %v13239_v19  ;;  %v5581_v29 = vld [vmem:[#allocation3 + $0xa1] sm:$0xff] }
 0x40f   : > { %v11129_v10 = vadd.f32 %v10693_v17, %v12836_v23  ;;  %v5049_v61 = vpop.f32.mrb[41].mxu0 }
 0x410   : > { %5394 = vst.msk [vmem:[#allocation2 + $0x90] sm:$0xff] %vm5375_vm3, %v5361_v12  ;;  %v5362_v33 = vmax.f32 %v5316_v34, %v5318_v16  ;;  %v11130_v14 = vadd.f32 %v5049_v61, %v12841_v43  ;;  %v10694_v45 = vpop.f32.mrb[42].mxu0 }
 0x411   : > { %v5424_v31 = vld [vmem:[#allocation2 + $0x80] ss:$2 sm:$0xff]  ;;  %v5456_v62 = vld [vmem:[#allocation2 + $0x81] ss:$2 sm:$0xff]  ;;  %v5257_v55 = vadd.f32 %v11129_v10, %v13070_v60  ;;  %v11131_v25 = vadd.f32 %v10694_v45, %v12845_v2  ;;  %v5052_v7 = vpop.f32.mrb[43].mxu0 }
 0x412   : > { %v5479_v22 = vmax.f32 %v5424_v31, %v5456_v62  ;;  %5395 = vst.msk [vmem:[#allocation2 + $0x98] sm:$0xff] %vm5375_vm3, %v5362_v33  ;;  %v5255_v36 = vadd.f32 %v11130_v14, %v13070_v60  ;;  %v11132_v23 = vadd.f32 %v5052_v7, %v12847_v0  ;;  %v13895_v31 = vld [vmem:[#allocation4_spill] sm:$0xff] }
 0x413   : > { %v5321_v18 = vmax.f32 %v5257_v55, 0.0  ;;  %v5258_v27 = vadd.f32 %v11131_v25, %v13070_v60  ;;  %v13896_v25 = vld [vmem:[#allocation5_spill] sm:$0xff] }
 0x414   : > { %5537 = vst.msk [vmem:[#allocation3 + $0xb1] sm:$0xff] %vm5375_vm3, %v5479_v22  ;;  %v5319_v43 = vmax.f32 %v5255_v36, 0.0  ;;  %v5256_v8 = vadd.f32 %v11132_v23, %v13070_v60 }
 0x415   : > { %v5322_v20 = vmax.f32 %v5258_v27, 0.0  ;;  %v13897_v27 = vld [vmem:[#allocation6_spill] sm:$0xff] }
 0x416   : > { %v5363_v57 = vmax.f32 %v5319_v43, %v5321_v18  ;;  %v5320_v35 = vmax.f32 %v5256_v8, 0.0  ;;  %v10697_v2 = vpop.f32.mrb[44].mxu0 }
 0x417   : > { %v11133_v54 = vadd.f32 %v10697_v2, %v12850_v1  ;;  %v5065_v28 = vpop.f32.mrb[45].mxu0 }
 0x418   : > { %5396 = vst.msk [vmem:[#allocation2 + $0xa0] sm:$0xff] %vm5375_vm3, %v5363_v57  ;;  %v5364_v38 = vmax.f32 %v5320_v35, %v5322_v20  ;;  %v11134_v0 = vadd.f32 %v5065_v28, %v12855_v21  ;;  %v10698_v26 = vpop.f32.mrb[46].mxu0  ;;  %v13898_v35 = vld [vmem:[#allocation7_spill] sm:$0xff] }
 0x419   : > { %v5426_v49 = vld [vmem:[#allocation2 + $0x90] ss:$2 sm:$0xff]  ;;  %v5458_v52 = vld [vmem:[#allocation2 + $0x91] ss:$2 sm:$0xff]  ;;  %v5261_v5 = vadd.f32 %v11133_v54, %v13070_v60  ;;  %v11135_v42 = vadd.f32 %v10698_v26, %v12859_v59  ;;  %v5068_v30 = vpop.f32.mrb[47].mxu0 }
 0x41a   : > { %v5480_v39 = vmax.f32 %v5426_v49, %v5458_v52  ;;  %5397 = vst.msk [vmem:[#allocation2 + $0xa8] sm:$0xff] %vm5375_vm3, %v5364_v38  ;;  %v5259_v1 = vadd.f32 %v11134_v0, %v13070_v60  ;;  %v11136_v16 = vadd.f32 %v5068_v30, %v12861_v4  ;;  %v13419_v30 = vpack.c.bf16 %v13178_v46, %v13131_v63 }
 0x41b   : > { %v5325_v12 = vmax.f32 %v5261_v5, 0.0  ;;  %v5262_v34 = vadd.f32 %v11135_v42, %v13070_v60  ;;  %v13263_v21 = vld [vmem:[#allocation3 + $0xb1] sm:$0xff] }
 0x41c   : > { %5538 = vst.msk [vmem:[#allocation3 + $0xc1] sm:$0xff] %vm5375_vm3, %v5480_v39  ;;  %v5323_v17 = vmax.f32 %v5259_v1, 0.0  ;;  %v5260_v10 = vadd.f32 %v11136_v16, %v13070_v60  ;;  %v5593_v59 = vpack.c.bf16 %v13263_v21, %v5581_v29  ;;  %v13284_v52 = vld [vmem:[#allocation3 + $0xb2] sm:$0xff]  ;;  %v13899_v16 = vld [vmem:[#allocation8_spill] sm:$0xff] }
 0x41d   : > { %v5326_v61 = vmax.f32 %v5262_v34, 0.0 }
 0x41e   : > { %v5365_v33 = vmax.f32 %v5323_v17, %v5325_v12  ;;  %v5324_v14 = vmax.f32 %v5260_v10, 0.0  ;;  %v10701_v45 = vpop.f32.mrb[48].mxu0  ;;  %10727 = vmatprep.mubr.msk.bf16.mxu1 %vm5375_vm3, %v5593_v59  ;;  %v13900_v10 = vld [vmem:[#allocation9_spill] sm:$0xff] }
 0x41f   : > { %v11137_v4 = vadd.f32 %v10701_v45, %v13895_v31  ;;  %v5081_v62 = vpop.f32.mrb[49].mxu0  ;;  %v13901_v31 = vld [vmem:[#allocation10_spill] sm:$0xff] }
 0x420   : > { %5398 = vst.msk [vmem:[#allocation2 + $0xb0] sm:$0xff] %vm5375_vm3, %v5365_v33  ;;  %v5366_v55 = vmax.f32 %v5324_v14, %v5326_v61  ;;  %v11138_v7 = vadd.f32 %v5081_v62, %v13896_v25  ;;  %v10702_v22 = vpop.f32.mrb[50].mxu0 }
 0x421   : > { %v5428_v36 = vld [vmem:[#allocation2 + $0xa0] ss:$2 sm:$0xff]  ;;  %v5460_v23 = vld [vmem:[#allocation2 + $0xa1] ss:$2 sm:$0xff]  ;;  %v5265_v18 = vadd.f32 %v11137_v4, %v13070_v60  ;;  %v11139_v43 = vadd.f32 %v10702_v22, %v13897_v27  ;;  %v5084_v8 = vpop.f32.mrb[51].mxu0 }
 0x422   : > { %v5481_v20 = vmax.f32 %v5428_v36, %v5460_v23  ;;  %5399 = vst.msk [vmem:[#allocation2 + $0xb8] sm:$0xff] %vm5375_vm3, %v5366_v55  ;;  %v5263_v57 = vadd.f32 %v11138_v7, %v13070_v60  ;;  %v11140_v2 = vadd.f32 %v5084_v8, %v13898_v35  ;;  %v13902_v7 = vld [vmem:[#allocation11_spill] sm:$0xff] }
 0x423   : > { %v5329_v54 = vmax.f32 %v5265_v18, 0.0  ;;  %v5266_v28 = vadd.f32 %v11139_v43, %v13070_v60  ;;  %v13278_v38 = vld [vmem:[#allocation3 + $0xc1] sm:$0xff] }
 0x424   : > { %v13280_v0 = vld [vmem:[#allocation3 + $0xc2] sm:$0xff]  ;;  %5539 = vst.msk [vmem:[#allocation3 + $0xd1] sm:$0xff] %vm5375_vm3, %v5481_v20  ;;  %v5327_v26 = vmax.f32 %v5263_v57, 0.0  ;;  %v5264_v49 = vadd.f32 %v11140_v2, %v13070_v60 }
 0x425   : > { %v5330_v42 = vmax.f32 %v5266_v28, 0.0 }
 0x426   : > { %v5367_v29 = vmax.f32 %v5327_v26, %v5329_v54  ;;  %v5328_v39 = vmax.f32 %v5264_v49, 0.0  ;;  %v10705_v1 = vpop.f32.mrb[52].mxu0  ;;  %v13903_v54 = vld [vmem:[#allocation12_spill] sm:$0xff] }
 0x427   : > { %v11141_v12 = vadd.f32 %v10705_v1, %v13899_v16  ;;  %v5097_v34 = vpop.f32.mrb[53].mxu0 }
 0x428   : > { %5400 = vst.msk [vmem:[#allocation2 + $0xc0] sm:$0xff] %vm5375_vm3, %v5367_v29  ;;  %v5368_v17 = vmax.f32 %v5328_v39, %v5330_v42  ;;  %v11142_v59 = vadd.f32 %v5097_v34, %v13900_v10  ;;  %v10706_v61 = vpop.f32.mrb[54].mxu0  ;;  %v13904_v42 = vld [vmem:[#allocation13_spill] sm:$0xff]  ;;  %v13905_v34 = vld [vmem:[#allocation14_spill] sm:$0xff] }
 0x429   : > { %v5430_v33 = vld [vmem:[#allocation2 + $0xb0] ss:$2 sm:$0xff]  ;;  %v5462_v14 = vld [vmem:[#allocation2 + $0xb1] ss:$2 sm:$0xff]  ;;  %v5269_v45 = vadd.f32 %v11141_v12, %v13070_v60  ;;  %v11143_v4 = vadd.f32 %v10706_v61, %v13901_v31  ;;  %v5100_v62 = vpop.f32.mrb[55].mxu0 }
 0x42a   : > { %v5482_v55 = vmax.f32 %v5430_v33, %v5462_v14  ;;  %5401 = vst.msk [vmem:[#allocation2 + $0xc8] sm:$0xff] %vm5375_vm3, %v5368_v17  ;;  %v5267_v25 = vadd.f32 %v11142_v59, %v13070_v60  ;;  %v11144_v22 = vadd.f32 %v5100_v62, %v13902_v7  ;;  %v13906_v33 = vld [vmem:[#allocation15_spill] sm:$0xff] }
 0x42b   : > { %v5333_v36 = vmax.f32 %v5269_v45, 0.0  ;;  %v5270_v23 = vadd.f32 %v11143_v4, %v13070_v60  ;;  %v13299_v18 = vld [vmem:[#allocation3 + $0xd1] sm:$0xff] }
 0x42c   : > { %5540 = vst.msk [vmem:[#allocation3 + $0xe1] sm:$0xff] %vm5375_vm3, %v5482_v55  ;;  %v5331_v27 = vmax.f32 %v5267_v25, 0.0  ;;  %v5268_v43 = vadd.f32 %v11144_v22, %v13070_v60  ;;  %v13305_v8 = vpack.c.bf16 %v13299_v18, %v13278_v38  ;;  %v13324_v7 = vld [vmem:[#allocation3 + $0xd2] sm:$0xff] }
 0x42d   : > { %v5334_v20 = vmax.f32 %v5270_v23, 0.0 }
 0x42e   : > { %v5369_v57 = vmax.f32 %v5331_v27, %v5333_v36  ;;  %v5332_v35 = vmax.f32 %v5268_v43, 0.0  ;;  %v10709_v2 = vpop.f32.mrb[56].mxu0  ;;  %10728 = vmatmul.mubr.msk.bf16.gmra.mrb[72].mxu1 %vm5375_vm3, %v13305_v8 }
 0x42f   : > { %v11145_v28 = vadd.f32 %v10709_v2, %v13903_v54  ;;  %v5113_v26 = vpop.f32.mrb[57].mxu0 }
 0x430   : > { %5402 = vst.msk [vmem:[#allocation2 + $0xd0] sm:$0xff] %vm5375_vm3, %v5369_v57  ;;  %v5370_v49 = vmax.f32 %v5332_v35, %v5334_v20  ;;  %v11146_v29 = vadd.f32 %v5113_v26, %v13904_v42  ;;  %v10710_v39 = vpop.f32.mrb[58].mxu0  ;;  %v13907_v57 = vld [vmem:[#allocation16_spill] sm:$0xff] }
 0x431   : > { %v5432_v1 = vld [vmem:[#allocation2 + $0xc0] ss:$2 sm:$0xff]  ;;  %v5464_v16 = vld [vmem:[#allocation2 + $0xc1] ss:$2 sm:$0xff]  ;;  %v5273_v12 = vadd.f32 %v11145_v28, %v13070_v60  ;;  %v11147_v17 = vadd.f32 %v10710_v39, %v13905_v34  ;;  %v5116_v10 = vpop.f32.mrb[59].mxu0 }
 0x432   : > { %v5483_v59 = vmax.f32 %v5432_v1, %v5464_v16  ;;  %5403 = vst.msk [vmem:[#allocation2 + $0xd8] sm:$0xff] %vm5375_vm3, %v5370_v49  ;;  %v5271_v61 = vadd.f32 %v11146_v29, %v13070_v60  ;;  %v11148_v14 = vadd.f32 %v5116_v10, %v13906_v33  ;;  %v13908_v28 = vld [vmem:[#allocation17_spill] sm:$0xff]  ;;  %v13909_v1 = vld [vmem:[#allocation18_spill] sm:$0xff]  ;;  %v13910_v10 = vld [vmem:[#allocation19_spill] sm:$0xff] }
 0x433   : > { %v5337_v45 = vmax.f32 %v5273_v12, 0.0  ;;  %v5274_v31 = vadd.f32 %v11147_v17, %v13070_v60  ;;  %v13318_v4 = vld [vmem:[#allocation3 + $0xe1] sm:$0xff] }
 0x434   : > { %v13320_v62 = vld [vmem:[#allocation3 + $0xe2] sm:$0xff]  ;;  %5541 = vst.msk [vmem:[#allocation3 + $0xf1] sm:$0xff] %vm5375_vm3, %v5483_v59  ;;  %v5335_v55 = vmax.f32 %v5271_v61, 0.0  ;;  %v5272_v25 = vadd.f32 %v11148_v14, %v13070_v60 }
 0x435   : > { %v5338_v36 = vmax.f32 %v5274_v31, 0.0 }
 0x436   : > { %v5371_v27 = vmax.f32 %v5335_v55, %v5337_v45  ;;  %v5336_v43 = vmax.f32 %v5272_v25, 0.0  ;;  %v10713_v20 = vpop.f32.mrb[60].mxu0 }
 0x437   : > { %v11149_v35 = vadd.f32 %v10713_v20, %v13907_v57  ;;  %v5129_v2 = vpop.f32.mrb[61].mxu0 }
 0x438   : > { %5404 = vst.msk [vmem:[#allocation2 + $0xe0] sm:$0xff] %vm5375_vm3, %v5371_v27  ;;  %v5372_v54 = vmax.f32 %v5336_v43, %v5338_v36  ;;  %v11150_v26 = vadd.f32 %v5129_v2, %v13908_v28  ;;  %v10714_v49 = vpop.f32.mrb[62].mxu0  ;;  %v13435_v28 = vpack.c.bf16 %v13431_v11, %v13214_v13 }
 0x439   : > { %v5434_v42 = vld [vmem:[#allocation2 + $0xd0] ss:$2 sm:$0xff]  ;;  %v5466_v29 = vld [vmem:[#allocation2 + $0xd1] ss:$2 sm:$0xff]  ;;  %v5277_v39 = vadd.f32 %v11149_v35, %v13070_v60  ;;  %v11151_v16 = vadd.f32 %v10714_v49, %v13909_v1  ;;  %v5132_v12 = vpop.f32.mrb[63].mxu0 }
 0x43a   : > { %v5484_v34 = vmax.f32 %v5434_v42, %v5466_v29  ;;  %5405 = vst.msk [vmem:[#allocation2 + $0xe8] sm:$0xff] %vm5375_vm3, %v5372_v54  ;;  %v5275_v17 = vadd.f32 %v11150_v26, %v13070_v60  ;;  %v11152_v59 = vadd.f32 %v5132_v12, %v13910_v10  ;;  %v13362_v1 = vld [vmem:[#allocation3 + $0x10] sm:$0xff] }
 0x43b   : > { %v5341_v61 = vmax.f32 %v5277_v39, 0.0  ;;  %v5278_v33 = vadd.f32 %v11151_v16, %v13070_v60  ;;  %v13339_v14 = vld [vmem:[#allocation3 + $0xf1] sm:$0xff]  ;;  %v5545_v39 = vld [vmem:[#allocation3] sm:$0xff] }
 0x43c   : > { %5542 = vst.msk [vmem:[#allocation3 + $0x101] sm:$0xff] %vm5375_vm3, %v5484_v34  ;;  %v5339_v45 = vmax.f32 %v5275_v17, 0.0  ;;  %v5276_v31 = vadd.f32 %v11152_v59, %v13070_v60  ;;  %v13345_v55 = vpack.c.bf16 %v13339_v14, %v13318_v4  ;;  %v13353_v60 = vld [vmem:[#allocation3 + $0xf2] sm:$0xff]  ;;  %v5561_v34 = vpack.c.bf16 %v13362_v1, %v5545_v39  ;;  %v5547_v59 = vld [vmem:[#allocation3 + $0x20] sm:$0xff] }
 0x43d   : > { %v5342_v25 = vmax.f32 %v5278_v33, 0.0  ;;  %v13375_v17 = vld [vmem:[#allocation3 + $0x30] sm:$0xff]  ;;  %v5549_v33 = vld [vmem:[#allocation3 + $0x40] sm:$0xff]  ;;  %v6062_v5 = vpack.c.bf16 %v5547_v59, %v13362_v1 }
 0x43e   : > { %v5373_v36 = vmax.f32 %v5339_v45, %v5341_v61  ;;  %v5340_v27 = vmax.f32 %v5276_v31, 0.0  ;;  %10731 = vmatprep.mubr.msk.bf16.mxu1 %vm5375_vm3, %v13345_v55  ;;  %v13377_v10 = vld [vmem:[#allocation3 + $0x50] sm:$0xff]  ;;  %v13380_v61 = vpack.c.bf16 %v13375_v17, %v5547_v59  ;;  %v11748_v45 = vld [vmem:[%s11958_s14 + $0x28] sm:$0xff]   ;;  %v5557_v39 = vld [vmem:[#allocation3 + $0xe0] sm:$0xff]  ;;  %v6063_v53 = vpack.c.bf16 %v5549_v33, %v13375_v17 }
 0x43f   : > { %v13384_v31 = vpack.c.bf16 %v13377_v10, %v5549_v33  ;;  %v11754_v59 = vld [vmem:[%s11958_s14 + $0x58] sm:$0xff]   ;;  %v13914_v33 = vpack.c.bf16 %v13171_v6, %v13150_v40  ;;  %v13917_v40 = vpack.c.bf16 %v13318_v4, %v13299_v18  ;;  %v13921_v18 = vpack.c.bf16 %v13214_v13, %v13218_v32  ;;  %v11757_v4 = vld [vmem:[%s11958_s14 + $0x70] sm:$0xff]  }
 0x440   : > { %5406 = vst.msk [vmem:[#allocation2 + $0xf0] sm:$0xff] %vm5375_vm3, %v5373_v36  ;;  %v5374_v43 = vmax.f32 %v5340_v27, %v5342_v25  ;;  %v11749_v25 = vld [vmem:[%s11958_s14 + $0x30] sm:$0xff]   ;;  %v5553_v27 = vld [vmem:[#allocation3 + $0xa0] sm:$0xff]  ;;  %v11758_v32 = vld [vmem:[%s11958_s14 + $0x78] sm:$0xff]  }
 0x441   : > { %v5436_v20 = vld [vmem:[#allocation2 + $0xe0] ss:$2 sm:$0xff]  ;;  %v5468_v57 = vld [vmem:[#allocation2 + $0xe1] ss:$2 sm:$0xff]  ;;  %v13392_v36 = vld [vmem:[#allocation3 + $0x70] sm:$0xff] }
 0x442   : > { %v5485_v35 = vmax.f32 %v5436_v20, %v5468_v57  ;;  %5407 = vst.msk [vmem:[#allocation2 + $0xf8] sm:$0xff] %vm5375_vm3, %v5374_v43  ;;  %v13394_v43 = vld [vmem:[#allocation3 + $0xb0] sm:$0xff]  ;;  %v5551_v20 = vld [vmem:[#allocation3 + $0x60] sm:$0xff] }
 0x443   : > { %v13351_v2 = vld [vmem:[#allocation3 + $0x101] sm:$0xff]  ;;  %v13397_v57 = vpack.c.bf16 %v13392_v36, %v5551_v20  ;;  %v6064_v48 = vpack.c.bf16 %v5551_v20, %v13377_v10 }
 0x444   : > { %v13355_v54 = vld [vmem:[#allocation3 + $0x102] sm:$0xff]  ;;  %5543 = vst.msk [vmem:[#allocation3 + $0x111] sm:$0xff] %vm5375_vm3, %v5485_v35  ;;  %v5565_v35 = vpack.c.bf16 %v13394_v43, %v5553_v27  ;;  %v13918_v6 = vpack.c.bf16 %v13351_v2, %v13339_v14 }
 0x445   : > { %v5868_v27 = vld [vmem:[#allocation3 + $0x2] sm:$0xff] }
 0x446   : > { %v5559_v26 = vld [vmem:[#allocation3 + $0x100] sm:$0xff]  ;;  %v5884_v23 = vpack.c.bf16 %v13135_v3, %v5868_v27 }
 0x447   : > { %v11751_v27 = vld [vmem:[%s11958_s14 + $0x40] sm:$0xff]  }
 0x448   : > { %v6409_v14 = vld [vmem:[#allocation3 + $0x82] sm:$0xff] }
 0x449   : > { %v5438_v49 = vld [vmem:[#allocation2 + $0xf0] ss:$2 sm:$0xff]  ;;  %v5470_v42 = vld [vmem:[#allocation2 + $0xf1] ss:$2 sm:$0xff] }
 0x44a   : > { %v5486_v29 = vmax.f32 %v5438_v49, %v5470_v42  ;;  %v5558_v49 = vld [vmem:[#allocation3 + $0xf0] sm:$0xff]  ;;  %v5555_v42 = vld [vmem:[#allocation3 + $0xc0] sm:$0xff] }
 0x44b   : > { %v13364_v16 = vld [vmem:[#allocation3 + $0x111] sm:$0xff] }
 0x44c   : > { %5544 = vst.msk [vmem:[#allocation3 + $0x121] sm:$0xff] %vm5375_vm3, %v5486_v29  ;;  %v13369_v12 = vpack.c.bf16 %v13364_v16, %v13351_v2  ;;  %v6760_v2 = vld [vmem:[#allocation3 + $0x31] sm:$0xff] }
 0x44e   : > { %10732 = vmatmul.mubr.msk.bf16.gmra.mrb[76].mxu1 %vm5375_vm3, %v13369_v12 }
 0x44f   : > { %10739 = vmatprep.mubr.msk.bf16.mxu1 %vm5375_vm3, %v5561_v34  ;;  %v13405_v34 = vpack.c.bf16 %v5558_v49, %v5557_v39 }
 0x453   : > { %v6417_v13 = vld [vmem:[#allocation3 + $0x122] sm:$0xff] }
 0x456   : > { %10740 = vmatmul.mubr.msk.bf16.vlgmr.msra.gmra.mrb[64].mxu1 %vm5375_vm3, %v13380_v61 }
 0x457   : > { %10743 = vmatprep.mubr.msk.bf16.mxu1 %vm5375_vm3, %v13384_v31  ;;  %10756 = vmatpush3.bf16.msra.mxu1 %v13163_v51  ;;  %v5556_v51 = vld [vmem:[#allocation3 + $0xd0] sm:$0xff] }
 0x458   : > { %10757 = vmatprep.subr.bf16.mxu1 %v11748_v45  ;;  %v13403_v29 = vpack.c.bf16 %v5556_v51, %v5555_v42  ;;  %v6067_v17 = vpack.c.bf16 %v5557_v39, %v5556_v51  ;;  %v13595_v39 = vld [vmem:[%s366_s26] ss:$0 sm:$0xff] }
 0x45b   : > { %10758 = vmatpush3.bf16.msra.mxu1 %v11748_v45  ;;  %v5560_v45 = vld [vmem:[#allocation3 + $0x110] sm:$0xff] }
 0x45c   : > { %10775 = vmatprep.subr.bf16.mxu1 %v11749_v25 }
 0x45e   : > { %10744 = vmatmul.mubr.msk.bf16.gmra.mrb[68].mxu1 %vm5375_vm3, %v13397_v57 }
 0x45f   : > { %10747 = vmatprep.mubr.msk.bf16.mxu1 %vm5375_vm3, %v5565_v35  ;;  %v13411_v35 = vpack.c.bf16 %v5560_v45, %v5559_v26 }
 0x466   : > { %10748 = vmatmul.mubr.msk.bf16.gmra.mrb[72].mxu1 %vm5375_vm3, %v13403_v29 }
 0x467   : > { %10751 = vmatprep.mubr.msk.bf16.mxu1 %vm5375_vm3, %v13405_v34 }
 0x46e   : > { %10752 = vmatmul.mubr.msk.bf16.gmra.mrb[76].mxu1 %vm5375_vm3, %v13411_v35 }
 0x46f   : > { %10759 = vmatprep.mubr.msk.bf16.mxu1 %vm5375_vm3, %v5884_v23  ;;  %v5876_v23 = vld [vmem:[#allocation3 + $0xa2] sm:$0xff] }
 0x470   : > { %v5888_v22 = vpack.c.bf16 %v13284_v52, %v5876_v23  ;;  %v13453_v23 = vld [vmem:[#allocation3 + $0x112] sm:$0xff] }
 0x476   : > { %10760 = vmatmul.mubr.msk.bf16.vlgmr.msra.gmra.mrb[64].mxu1 %vm5375_vm3, %v13419_v30 }
 0x477   : > { %10763 = vmatprep.mubr.msk.bf16.mxu1 %vm5375_vm3, %v13424_v15  ;;  %10776 = vmatpush3.bf16.msra.mxu1 %v11749_v25  ;;  %v13443_v25 = vpack.c.bf16 %v13324_v7, %v13280_v0 }
 0x478   : > { %10777 = vmatprep.subr.bf16.mxu1 %v11750_v56 }
 0x479   : > { %13911 = vst [vmem:[#allocation4_spill] sm:$0xff] %v13443_v25 }
 0x47b   : > { %10778 = vmatpush3.bf16.msra.mxu1 %v11750_v56  ;;  %v13447_v56 = vpack.c.bf16 %v13353_v60, %v13320_v62 }
 0x47c   : > { %10795 = vmatprep.subr.bf16.mxu1 %v11751_v27 }
 0x47d   : > { %13912 = vst [vmem:[#allocation5_spill] sm:$0xff] %v13447_v56 }
 0x47e   : > { %10764 = vmatmul.mubr.msk.bf16.gmra.mrb[68].mxu1 %vm5375_vm3, %v13435_v28 }
 0x47f   : > { %10767 = vmatprep.mubr.msk.bf16.mxu1 %vm5375_vm3, %v5888_v22  ;;  %v13457_v22 = vpack.c.bf16 %v13453_v23, %v13355_v54 }
 0x484   : > { %v13927_v51 = vld [vmem:[#allocation5_spill] sm:$0xff] }
 0x486   : > { %10768 = vmatmul.mubr.msk.bf16.gmra.mrb[72].mxu1 %vm5375_vm3, %v13443_v25  ;;  %v6053_v25 = vld [vmem:[#allocation3 + $0x80] sm:$0xff] }
 0x487   : > { %10771 = vmatprep.mubr.msk.bf16.mxu1 %vm5375_vm3, %v13447_v56  ;;  %v11753_v56 = vld [vmem:[%s11958_s14 + $0x50] sm:$0xff]   ;;  %v6065_v1 = vpack.c.bf16 %v6053_v25, %v13392_v36  ;;  %v11755_v36 = vld [vmem:[%s11958_s14 + $0x60] sm:$0xff]  }
 0x48e   : > { %10772 = vmatmul.mubr.msk.bf16.gmra.mrb[76].mxu1 %vm5375_vm3, %v13457_v22 }
 0x48f   : > { %10779 = vmatprep.mubr.msk.bf16.mxu1 %vm5375_vm3, %v6062_v5  ;;  %v6066_v5 = vpack.c.bf16 %v5555_v42, %v13394_v43  ;;  %v6231_v43 = vld [vmem:[#allocation3 + $0x81] sm:$0xff]  ;;  %v11763_v42 = vld [vmem:[%s11986_s18 + $0x30] sm:$0xff]  }
 0x496   : > { %10780 = vmatmul.mubr.msk.bf16.vlgmr.msra.gmra.mrb[64].mxu1 %vm5375_vm3, %v6063_v53  ;;  %v6068_v53 = vpack.c.bf16 %v5559_v26, %v5558_v49  ;;  %v13915_v26 = vpack.c.bf16 %v13212_v41, %v13193_v24  ;;  %v6239_v24 = vld [vmem:[#allocation3 + $0x121] sm:$0xff] }
 0x497   : > { %10783 = vmatprep.mubr.msk.bf16.mxu1 %vm5375_vm3, %v6064_v48  ;;  %10796 = vmatpush3.bf16.msra.mxu1 %v11751_v27  ;;  %v6061_v48 = vld [vmem:[#allocation3 + $0x120] sm:$0xff]  ;;  %v6247_v41 = vpack.c.bf16 %v6239_v24, %v13364_v16  ;;  %v11762_v49 = vld [vmem:[%s11986_s18 + $0x28] sm:$0xff]  }
 0x498   : > { %10797 = vmatprep.subr.bf16.mxu1 %v11752_v58  ;;  %v6069_v10 = vpack.c.bf16 %v6061_v48, %v5560_v45 }
 0x49b   : > { %10798 = vmatpush3.bf16.msra.mxu1 %v11752_v58  ;;  %v13913_v58 = vpack.c.bf16 %v13129_v44, %v13114_v9  ;;  %v6243_v9 = vpack.c.bf16 %v6231_v43, %v13233_v47  ;;  %v13916_v44 = vpack.c.bf16 %v13278_v38, %v13263_v21  ;;  %v13919_v47 = vpack.c.bf16 %v13131_v63, %v13135_v3  ;;  %v11756_v21 = vld [vmem:[%s11958_s14 + $0x68] sm:$0xff]  }
 0x49c   : > { %10815 = vmatprep.subr.bf16.mxu1 %v11753_v56  ;;  %v13920_v38 = vpack.c.bf16 %v13173_v50, %v13178_v46  ;;  %v6421_v63 = vpack.c.bf16 %v6409_v14, %v13431_v11  ;;  %v13922_v3 = vpack.c.bf16 %v13280_v0, %v13284_v52  ;;  %v13923_v50 = vpack.c.bf16 %v13320_v62, %v13324_v7  ;;  %v11759_v0 = vld [vmem:[%s11958_s14 + $0x80] sm:$0xff]   ;;  %v6588_v52 = vld [vmem:[#allocation3 + $0x90] sm:$0xff] }
 0x49d   : > { %v13924_v46 = vpack.c.bf16 %v13355_v54, %v13353_v60  ;;  %v6425_v11 = vpack.c.bf16 %v6417_v13, %v13453_v23  ;;  %v6600_v62 = vpack.c.bf16 %v6588_v52, %v6053_v25  ;;  %v6596_v7 = vld [vmem:[#allocation3 + $0x130] sm:$0xff]  ;;  %v6759_v54 = vld [vmem:[#allocation3 + $0x21] sm:$0xff] }
 0x49e   : > { %10784 = vmatmul.mubr.msk.bf16.gmra.mrb[68].mxu1 %vm5375_vm3, %v6065_v1  ;;  %v6604_v60 = vpack.c.bf16 %v6596_v7, %v6061_v48  ;;  %v6775_v16 = vpack.c.bf16 %v6760_v2, %v6759_v54 }
 0x49f   : > { %10787 = vmatprep.mubr.msk.bf16.mxu1 %vm5375_vm3, %v6066_v5 }
 0x4a6   : > { %10788 = vmatmul.mubr.msk.bf16.gmra.mrb[72].mxu1 %vm5375_vm3, %v6067_v17 }
 0x4a7   : > { %10791 = vmatprep.mubr.msk.bf16.mxu1 %vm5375_vm3, %v6068_v53 }
 0x4ae   : > { %10792 = vmatmul.mubr.msk.bf16.gmra.mrb[76].mxu1 %vm5375_vm3, %v6069_v10 }
 0x4af   : > { %10799 = vmatprep.mubr.msk.bf16.mxu1 %vm5375_vm3, %v13913_v58 }
 0x4b6   : > { %10800 = vmatmul.mubr.msk.bf16.vlgmr.msra.gmra.mrb[64].mxu1 %vm5375_vm3, %v13914_v33 }
 0x4b7   : > { %10803 = vmatprep.mubr.msk.bf16.mxu1 %vm5375_vm3, %v13915_v26  ;;  %10816 = vmatpush3.bf16.msra.mxu1 %v11753_v56 }
 0x4b8   : > { %10817 = vmatprep.subr.bf16.mxu1 %v11754_v59 }
 0x4bb   : > { %10818 = vmatpush3.bf16.msra.mxu1 %v11754_v59 }
 0x4bc   : > { %10835 = vmatprep.subr.bf16.mxu1 %v11755_v36 }
 0x4be   : > { %10804 = vmatmul.mubr.msk.bf16.gmra.mrb[68].mxu1 %vm5375_vm3, %v6243_v9 }
 0x4bf   : > { %10807 = vmatprep.mubr.msk.bf16.mxu1 %vm5375_vm3, %v13916_v44 }
 0x4c6   : > { %10808 = vmatmul.mubr.msk.bf16.gmra.mrb[72].mxu1 %vm5375_vm3, %v13917_v40 }
 0x4c7   : > { %10811 = vmatprep.mubr.msk.bf16.mxu1 %vm5375_vm3, %v13918_v6 }
 0x4ce   : > { %10812 = vmatmul.mubr.msk.bf16.gmra.mrb[76].mxu1 %vm5375_vm3, %v6247_v41 }
 0x4cf   : > { %10819 = vmatprep.mubr.msk.bf16.mxu1 %vm5375_vm3, %v13919_v47 }
 0x4d6   : > { %10820 = vmatmul.mubr.msk.bf16.vlgmr.msra.gmra.mrb[64].mxu1 %vm5375_vm3, %v13920_v38 }
 0x4d7   : > { %10823 = vmatprep.mubr.msk.bf16.mxu1 %vm5375_vm3, %v13921_v18  ;;  %10836 = vmatpush3.bf16.msra.mxu1 %v11755_v36 }
 0x4d8   : > { %10837 = vmatprep.subr.bf16.mxu1 %v11756_v21 }
 0x4db   : > { %10838 = vmatpush3.bf16.msra.mxu1 %v11756_v21 }
 0x4dc   : > { %10855 = vmatprep.subr.bf16.mxu1 %v11757_v4 }
 0x4de   : > { %10824 = vmatmul.mubr.msk.bf16.gmra.mrb[68].mxu1 %vm5375_vm3, %v6421_v63 }
 0x4df   : > { %10827 = vmatprep.mubr.msk.bf16.mxu1 %vm5375_vm3, %v13922_v3 }
 0x4e6   : > { %10828 = vmatmul.mubr.msk.bf16.gmra.mrb[72].mxu1 %vm5375_vm3, %v13923_v50 }
 0x4e7   : > { %10831 = vmatprep.mubr.msk.bf16.mxu1 %vm5375_vm3, %v13924_v46 }
 0x4ee   : > { %10832 = vmatmul.mubr.msk.bf16.gmra.mrb[76].mxu1 %vm5375_vm3, %v6425_v11 }
 0x4ef   : > { %10839 = vmatprep.mubr.msk.bf16.mxu1 %vm5375_vm3, %v13380_v61  ;;  %v11760_v61 = vld [vmem:[%s11958_s14 + $0x88] sm:$0xff]  }
 0x4f6   : > { %10840 = vmatmul.mubr.msk.bf16.vlgmr.msra.gmra.mrb[64].mxu1 %vm5375_vm3, %v13384_v31  ;;  %v6766_v31 = vld [vmem:[#allocation3 + $0x91] sm:$0xff] }
 0x4f7   : > { %10843 = vmatprep.mubr.msk.bf16.mxu1 %vm5375_vm3, %v13397_v57  ;;  %10856 = vmatpush3.bf16.msra.mxu1 %v11757_v4  ;;  %v6778_v20 = vpack.c.bf16 %v6766_v31, %v6231_v43  ;;  %v13925_v57 = vmov 0.0  }
 0x4f8   : > { %10857 = vmatprep.subr.bf16.mxu1 %v11758_v32 }
 0x4fb   : > { %10858 = vmatpush3.bf16.msra.mxu1 %v11758_v32 }
 0x4fc   : > { %10875 = vmatprep.subr.bf16.mxu1 %v11759_v0 }
 0x4fe   : > { %10844 = vmatmul.mubr.msk.bf16.gmra.mrb[68].mxu1 %vm5375_vm3, %v6600_v62 }
 0x4ff   : > { %10847 = vmatprep.mubr.msk.bf16.mxu1 %vm5375_vm3, %v13403_v29  ;;  %v11764_v29 = vld [vmem:[%s11986_s18 + $0x38] sm:$0xff]  }
 0x506   : > { %10848 = vmatmul.mubr.msk.bf16.gmra.mrb[72].mxu1 %vm5375_vm3, %v13405_v34 }
 0x507   : > { %10851 = vmatprep.mubr.msk.bf16.mxu1 %vm5375_vm3, %v13411_v35 }
 0x50e   : > { %10852 = vmatmul.mubr.msk.bf16.gmra.mrb[76].mxu1 %vm5375_vm3, %v6604_v60 }
 0x50f   : > { %10859 = vmatprep.mubr.msk.bf16.mxu1 %vm5375_vm3, %v6775_v16 }
 0x516   : > { %10860 = vmatmul.mubr.msk.bf16.vlgmr.msra.gmra.mrb[64].mxu1 %vm5375_vm3, %v13199_v37  ;;  %v6774_v37 = vld [vmem:[#allocation3 + $0x131] sm:$0xff] }
 0x517   : > { %10863 = vmatprep.mubr.msk.bf16.mxu1 %vm5375_vm3, %v13239_v19  ;;  %10876 = vmatpush3.bf16.msra.mxu1 %v11759_v0  ;;  %v6782_v19 = vpack.c.bf16 %v6774_v37, %v6239_v24 }
 0x518   : > { %10877 = vmatprep.subr.bf16.mxu1 %v11760_v61 }
 0x51b   : > { %10878 = vmatpush3.bf16.msra.mxu1 %v11760_v61 }
 0x51c   : > { %10895 = vmatprep.subr.bf16.mxu1 %v13925_v57 }
 0x51e   : > { %10864 = vmatmul.mubr.msk.bf16.gmra.mrb[68].mxu1 %vm5375_vm3, %v6778_v20 }
 0x51f   : > { %10867 = vmatprep.mubr.msk.bf16.mxu1 %vm5375_vm3, %v13305_v8  ;;  %v6944_v8 = vld [vmem:[#allocation3 + $0x92] sm:$0xff] }
 0x526   : > { %10868 = vmatmul.mubr.msk.bf16.gmra.mrb[72].mxu1 %vm5375_vm3, %v13345_v55  ;;  %v6956_v55 = vpack.c.bf16 %v6944_v8, %v6409_v14 }
 0x527   : > { %10871 = vmatprep.mubr.msk.bf16.mxu1 %vm5375_vm3, %v13369_v12  ;;  %v13926_v12 = vld [vmem:[#allocation4_spill] sm:$0xff] }
 0x52e   : > { %10872 = vmatmul.mubr.msk.bf16.gmra.mrb[76].mxu1 %vm5375_vm3, %v6782_v19 }
 0x52f   : > { %10879 = vmatprep.mubr.msk.bf16.mxu1 %vm5375_vm3, %v13419_v30  ;;  %v6952_v30 = vld [vmem:[#allocation3 + $0x132] sm:$0xff] }
 0x536   : > { %10880 = vmatmul.mubr.msk.bf16.vlgmr.msra.gmra.mrb[64].mxu1 %vm5375_vm3, %v13424_v15  ;;  %v6960_v15 = vpack.c.bf16 %v6952_v30, %v6417_v13 }
 0x537   : > { %10883 = vmatprep.mubr.msk.bf16.mxu1 %vm5375_vm3, %v13435_v28  ;;  %v11761_v28 = vld [vmem:[%s11986_s18 + $0x20] sm:$0xff]  }
 0x538   : > { %10896 = vmatpush3.bf16.msra.mxu1 %v11761_v28 }
 0x539   : > { %10897 = vmatprep.subr.bf16.mxu1 %v13925_v57 }
 0x53c   : > { %10898 = vmatpush3.bf16.msra.mxu1 %v11762_v49 }
 0x53d   : > { %10899 = vmatprep.subr.bf16.mxu1 %v13925_v57 }
 0x53e   : > { %10884 = vmatmul.mubr.msk.bf16.gmra.mrb[68].mxu1 %vm5375_vm3, %v6956_v55 }
 0x53f   : > { %10887 = vmatprep.mubr.msk.bf16.mxu1 %vm5375_vm3, %v13926_v12 }
 0x540   : > { %10900 = vmatpush3.bf16.msra.mxu1 %v11763_v42 }
 0x541   : > { %10901 = vmatprep.subr.bf16.mxu1 %v13925_v57 }
 0x544   : > { %10902 = vmatpush3.bf16.msra.mxu1 %v11764_v29 }
 0x545   : > { %10907 = vmatprep.subr.bf16.mxu1 %v13925_v57 }
 0x546   : > { %10888 = vmatmul.mubr.msk.bf16.gmra.mrb[72].mxu1 %vm5375_vm3, %v13927_v51 }
 0x547   : > { %10891 = vmatprep.mubr.msk.bf16.mxu1 %vm5375_vm3, %v13457_v22 }
 0x54e   : > { %10892 = vmatmul.mubr.msk.bf16.gmra.mrb[76].mxu1 %vm5375_vm3, %v6960_v15 }
 0x54f   : > { %10903 = vmatprep.mubr.msk.bf16.mxu1 %vm11835_vm5, %v13925_v57 }
 0x609   : > { %v10881_v34 = vpop.f32.mrb[64].mxu1 }
 0x60a   : > { %v7124_v45 = vadd.f32 %v10881_v34, %v13595_v39  ;;  %v7036_v35 = vpop.f32.mrb[65].mxu1 }
 0x60b   : > { %v7122_v27 = vadd.f32 %v13595_v39, %v7036_v35  ;;  %v10882_v25 = vpop.f32.mrb[66].mxu1 }
 0x60c   : > { %v7125_v56 = vadd.f32 %v10882_v25, %v13595_v39  ;;  %v7039_v23 = vpop.f32.mrb[67].mxu1  ;;  %v7140_v1 = vmax.f32 %v7124_v45, 0.0 }
 0x60d   : > { %v7123_v22 = vadd.f32 %v13595_v39, %v7039_v23  ;;  %v7138_v17 = vmax.f32 %v7122_v27, 0.0 }
 0x60e   : > { %v7141_v5 = vmax.f32 %v7125_v56, 0.0 }
 0x60f   : > { %v7139_v53 = vmax.f32 %v7123_v22, 0.0 }
 0x610   : > { %v7155_v48 = vmax.f32 %v7140_v1, %v7141_v5 }
 0x611   : > { %v7154_v10 = vmax.f32 %v7138_v17, %v7139_v53  ;;  %v10885_v58 = vpop.f32.mrb[68].mxu1 }
 0x612   : > { %v7128_v59 = vadd.f32 %v10885_v58, %v13595_v39  ;;  %v7052_v33 = vpop.f32.mrb[69].mxu1  ;;  %v7500_v26 = vrot.slane %v7155_v48, 1 }
 0x613   : > { %v7126_v36 = vadd.f32 %v13595_v39, %v7052_v33  ;;  %v10886_v43 = vpop.f32.mrb[70].mxu1  ;;  %v7164_v47 = vrot.slane %v7154_v10, 1 }
 0x614   : > { %v7129_v9 = vadd.f32 %v10886_v43, %v13595_v39  ;;  %v7055_v44 = vpop.f32.mrb[71].mxu1  ;;  %v7144_v6 = vmax.f32 %v7128_v59, 0.0  ;;  %v7504_v41 = vmax.f32 %v7155_v48, %v7500_v26 }
 0x615   : > { %v7127_v40 = vadd.f32 %v13595_v39, %v7055_v44  ;;  %v7142_v21 = vmax.f32 %v7126_v36, 0.0  ;;  %v7168_v50 = vmax.f32 %v7154_v10, %v7164_v47 }
 0x616   : > { %v7145_v24 = vmax.f32 %v7129_v9, 0.0  ;;  %v7506_v3 = vpack.c.bf16 %v7504_v41, %v7504_v41 }
 0x617   : > { %v7143_v38 = vmax.f32 %v7127_v40, 0.0  ;;  %v7170_v60 = vpack.c.bf16 %v7168_v50, %v7168_v50  ;;  %v11765_v50 = vld [vmem:[%s11986_s18] sm:$0xff]  }
 0x618   : > { %v7157_v18 = vmax.f32 %v7144_v6, %v7145_v24  ;;  %v13609_v2 = vunpack.c.l.b16 %v7506_v3 }
 0x619   : > { %v7156_v4 = vmax.f32 %v7142_v21, %v7143_v38  ;;  %v10889_v14 = vpop.f32.mrb[72].mxu1  ;;  %v7191_v30 = vunpack.c.l.b16 %v7170_v60 }
 0x61a   : > { %v7068_v63 = vpop.f32.mrb[73].mxu1  ;;  %v7132_v13 = vadd.f32 %v10889_v14, %v13595_v39  ;;  %v8174_v31 = vrot.slane %v7157_v18, 1  ;;  %v7601_v12 = vrot.slane %v13609_v2, 2  ;;  %v7682_v51 = vrot.slane %v13609_v2, 4 }
 0x61b   : > { %v10890_v46 = vpop.f32.mrb[74].mxu1  ;;  %v7130_v11 = vadd.f32 %v13595_v39, %v7068_v63  ;;  %v7837_v20 = vrot.slane %v7156_v4, 1  ;;  %v7763_v23 = vrot.slane %v13609_v2, 6  ;;  %v7193_v17 = vrot.slane %v7191_v30, 2 }
 0x61c   : > { %v7133_v32 = vadd.f32 %v10890_v46, %v13595_v39  ;;  %v7071_v0 = vpop.f32.mrb[75].mxu1  ;;  %v7148_v62 = vmax.f32 %v7132_v13, 0.0  ;;  %v8178_v35 = vmax.f32 %v7157_v18, %v8174_v31  ;;  %v7345_v58 = vrot.slane %v7191_v30, 4 }
 0x61d   : > { %v7131_v52 = vadd.f32 %v13595_v39, %v7071_v0  ;;  %v7146_v54 = vmax.f32 %v7130_v11, 0.0  ;;  %v7841_v27 = vmax.f32 %v7156_v4, %v7837_v20  ;;  %v7426_v59 = vrot.slane %v7191_v30, 6 }
 0x61e   : > { %v7149_v7 = vmax.f32 %v7133_v32, 0.0  ;;  %v8180_v36 = vpack.c.bf16 %v8178_v35, %v8178_v35  ;;  %v11767_v35 = vld [vmem:[%s11986_s18 + $0x10] sm:$0xff]  }
 0x61f   : > { %v7147_v16 = vmax.f32 %v7131_v52, 0.0  ;;  %v7843_v43 = vpack.c.bf16 %v7841_v27, %v7841_v27 }
 0x620   : > { %v7159_v61 = vmax.f32 %v7148_v62, %v7149_v7  ;;  %v8193_v32 = vunpack.c.l.b16 %v8180_v36 }
 0x621   : > { %v7158_v37 = vmax.f32 %v7146_v54, %v7147_v16  ;;  %v10893_v19 = vpop.f32.mrb[76].mxu1  ;;  %v7856_v7 = vunpack.c.l.b16 %v7843_v43  ;;  %v11774_v43 = vld [vmem:[%s11986_s18 + $0x68] sm:$0xff]  }
 0x622   : > { %v7501_v8 = vrot.slane %v7159_v61, 1  ;;  %v7084_v55 = vpop.f32.mrb[77].mxu1  ;;  %v7136_v42 = vadd.f32 %v10893_v19, %v13595_v39  ;;  %v8275_v31 = vrot.slane %v8193_v32, 2  ;;  %v8356_v20 = vrot.slane %v8193_v32, 4 }
 0x623   : > { %v7165_v15 = vrot.slane %v7158_v37, 1  ;;  %v10894_v28 = vpop.f32.mrb[78].mxu1  ;;  %v7134_v29 = vadd.f32 %v13595_v39, %v7084_v55  ;;  %v7938_v55 = vrot.slane %v7856_v7, 2 }
 0x624   : > { %v7505_v49 = vmax.f32 %v7159_v61, %v7501_v8  ;;  %v7137_v34 = vadd.f32 %v10894_v28, %v13595_v39  ;;  %v7087_v45 = vpop.f32.mrb[79].mxu1  ;;  %v7152_v1 = vmax.f32 %v7136_v42, 0.0  ;;  %v11766_v61 = vld [vmem:[%s11986_s18 + $0x8] sm:$0xff]   ;;  %v8437_v8 = vrot.slane %v8193_v32, 6 }
 0x625   : > { %v7169_v25 = vmax.f32 %v7158_v37, %v7165_v15  ;;  %v7135_v56 = vadd.f32 %v13595_v39, %v7087_v45  ;;  %v7150_v48 = vmax.f32 %v7134_v29, 0.0 }
 0x626   : > { %v7507_v22 = vpack.c.bf16 %v7505_v49, %v7505_v49  ;;  %v7153_v5 = vmax.f32 %v7137_v34, 0.0 }
 0x627   : > { %v7171_v53 = vpack.c.bf16 %v7169_v25, %v7169_v25  ;;  %v7151_v10 = vmax.f32 %v7135_v56, 0.0 }
 0x628   : > { %v7520_v33 = vunpack.c.l.b16 %v7507_v22  ;;  %v7161_v26 = vmax.f32 %v7152_v1, %v7153_v5 }
 0x629   : > { %v7192_v9 = vunpack.c.l.b16 %v7171_v53  ;;  %v7160_v44 = vmax.f32 %v7150_v48, %v7151_v10  ;;  %v11768_v53 = vld [vmem:[%s11986_s18 + $0x18] sm:$0xff]   ;;  %v11769_v48 = vld [vmem:[%s11986_s18 + $0x40] sm:$0xff]  }
 0x62a   : > { %v7521_v39 = vrot.slane %v7520_v33, 7  ;;  %v7602_v40 = vrot.slane %v7520_v33, 1  ;;  %v7683_v6 = vrot.slane %v7520_v33, 3  ;;  %v7764_v24 = vrot.slane %v7520_v33, 5  ;;  %v11772_v33 = vld [vmem:[%s11986_s18 + $0x58] sm:$0xff]  }
 0x62b   : > { %v7194_v41 = vrot.slane %v7192_v9, 1  ;;  %v7266_v47 = vrot.slane %v7192_v9, 7  ;;  %v7346_v21 = vrot.slane %v7192_v9, 3  ;;  %v7427_v38 = vrot.slane %v7192_v9, 5  ;;  %v11775_v9 = vld [vmem:[%s11986_s18 + $0x70] sm:$0xff]  }
 0x62c   : > { %v8175_v18 = vrot.slane %v7161_v26, 1  ;;  %v7838_v4 = vrot.slane %v7160_v44, 1  ;;  %v13620_v14 = vsel %vm7195_vm6, %v7521_v39, %v13609_v2  ;;  %v13623_v63 = vsel %vm7195_vm6, %v7602_v40, %v7601_v12  ;;  %v11777_v39 = vld [vmem:[%s11986_s18 + $0x80] sm:$0xff]  }
 0x62d   : > { %v7196_v3 = vsel %vm7195_vm6, %v7194_v41, %v7193_v17  ;;  %v7267_v46 = vsel %vm7195_vm6, %v7266_v47, %v7191_v30  ;;  %v13629_v13 = vsel %vm7195_vm6, %v7346_v21, %v7345_v58  ;;  %v13632_v11 = vsel %vm7195_vm6, %v7427_v38, %v7426_v59  ;;  %v11770_v58 = vld [vmem:[%s11986_s18 + $0x48] sm:$0xff]   ;;  %v11771_v59 = vld [vmem:[%s11986_s18 + $0x50] sm:$0xff]   ;;  %v11780_v41 = vld [vmem:[%s11986_s18 + $0x98] sm:$0xff]  }
 0x62e   : > { %v8179_v0 = vmax.f32 %v7161_v26, %v8175_v18  ;;  %v7842_v52 = vmax.f32 %v7160_v44, %v7838_v4  ;;  %v7197_v62 = vpack.c.b16 %v7196_v3, %v7196_v3  ;;  %v13636_v54 = vsel %vm7195_vm6, %v7683_v6, %v7682_v51  ;;  %v11773_v26 = vld [vmem:[%s11986_s18 + $0x60] sm:$0xff]   ;;  %v11776_v44 = vld [vmem:[%s11986_s18 + $0x78] sm:$0xff]   ;;  %v11778_v6 = vld [vmem:[%s11986_s18 + $0x88] sm:$0xff]  }
 0x62f   : > { %v13639_v16 = vsel %vm7195_vm6, %v7764_v24, %v7763_v23  ;;  %v8019_v12 = vrot.slane %v7856_v7, 4  ;;  %v8100_v51 = vrot.slane %v7856_v7, 6  ;;  %v7268_v10 = vpack.c.b16 %v7267_v46, %v7267_v46  ;;  %v11779_v24 = vld [vmem:[%s11986_s18 + $0x90] sm:$0xff]   ;;  %v11781_v47 = vld [vmem:[%s11986_s18 + $0xa0] sm:$0xff]   ;;  %v11782_v38 = vld [vmem:[%s11986_s18 + $0xa8] sm:$0xff]  }
 0x630   : > { %v8181_v2 = vpack.c.bf16 %v8179_v0, %v8179_v0  ;;  %v7844_v60 = vpack.c.bf16 %v7842_v52, %v7842_v52  ;;  %10904 = vmatmul.mubr.msk.bf16.vlgmr.msra.gmra.mrb[80].mxu1 %vm7222_vm7, %v7197_v62  ;;  %v7348_v36 = vpack.c.b16 %v13629_v13, %v13629_v13  ;;  %v7429_v40 = vpack.c.b16 %v13632_v11, %v13632_v11  ;;  %v11783_v18 = vld [vmem:[%s11986_s18 + $0xb0] sm:$0xff]   ;;  %v11784_v4 = vld [vmem:[%s11986_s18 + $0xb8] sm:$0xff]   ;;  %v11789_v13 = vld [vmem:[%s11986_s18 + $0xe0] sm:$0xff]  }
 0x631   : > { %10908 = vmatpush3.bf16.msra.mxu1 %v11765_v50  ;;  %10915 = vmatprep.mubr.msk.bf16.mxu1 %vm11835_vm5, %v13925_v57  ;;  %v7523_v21 = vpack.c.b16 %v13620_v14, %v13620_v14  ;;  %v11785_v14 = vld [vmem:[%s11986_s18 + $0xc0] sm:$0xff]   ;;  %v7604_v3 = vpack.c.b16 %v13623_v63, %v13623_v63  ;;  %v11786_v50 = vld [vmem:[%s11986_s18 + $0xc8] sm:$0xff]   ;;  %v11787_v46 = vld [vmem:[%s11986_s18 + $0xd0] sm:$0xff]   ;;  %v7685_v11 = vpack.c.b16 %v13636_v54, %v13636_v54 }
 0x632   : > { %v8194_v37 = vunpack.c.l.b16 %v8181_v2  ;;  %v7857_v19 = vunpack.c.l.b16 %v7844_v60  ;;  %10909 = vmatprep.subr.bf16.mxu1 %v13925_v57  ;;  %v11788_v63 = vld [vmem:[%s11986_s18 + $0xd8] sm:$0xff]   ;;  %v11791_v0 = vld [vmem:[%s11986_s18 + $0xf0] sm:$0xff]   ;;  %v11793_v62 = vld [vmem:[%s11986_s18 + $0x100] sm:$0xff]  }
 0x633   : > { %v11792_v52 = vld [vmem:[%s11986_s18 + $0xf8] sm:$0xff]   ;;  %v11794_v2 = vld [vmem:[%s11986_s18 + $0x108] sm:$0xff]   ;;  %v11795_v60 = vld [vmem:[%s11986_s18 + $0x110] sm:$0xff]  }
 0x634   : > { %v8195_v30 = vrot.slane %v8194_v37, 7  ;;  %v8276_v15 = vrot.slane %v8194_v37, 1  ;;  %v8357_v28 = vrot.slane %v8194_v37, 3  ;;  %v8438_v49 = vrot.slane %v8194_v37, 5  ;;  %v11796_v54 = vld [vmem:[%s11986_s18 + $0x118] sm:$0xff]  }
 0x635   : > { %v7858_v42 = vrot.slane %v7857_v19, 7  ;;  %v7939_v29 = vrot.slane %v7857_v19, 1  ;;  %v8020_v34 = vrot.slane %v7857_v19, 3  ;;  %v8101_v45 = vrot.slane %v7857_v19, 5  ;;  %10910 = vmatpush3.bf16.msra.mxu1 %v11766_v61  ;;  %v11800_v37 = vld [vmem:[%s11986_s18 + $0x138] sm:$0xff]   ;;  %v11801_v19 = vld [vmem:[%s11986_s18 + $0x140] sm:$0xff]  }
 0x636   : > { %10911 = vmatprep.subr.bf16.mxu1 %v13925_v57  ;;  %v13648_v27 = vsel %vm7195_vm6, %v8195_v30, %v8193_v32  ;;  %v13651_v25 = vsel %vm7195_vm6, %v8276_v15, %v8275_v31  ;;  %v13654_v56 = vsel %vm7195_vm6, %v8357_v28, %v8356_v20  ;;  %v13657_v23 = vsel %vm7195_vm6, %v8438_v49, %v8437_v8  ;;  %v11790_v32 = vld [vmem:[%s11986_s18 + $0xe8] sm:$0xff]   ;;  %v11799_v20 = vld [vmem:[%s11986_s18 + $0x130] sm:$0xff]   ;;  %v11805_v30 = vld [vmem:[%s11986_s18 + $0x160] sm:$0xff]  }
 0x637   : > { %v13660_v22 = vsel %vm7195_vm6, %v7858_v42, %v7856_v7  ;;  %v13663_v1 = vsel %vm7195_vm6, %v7939_v29, %v7938_v55  ;;  %v13666_v5 = vsel %vm7195_vm6, %v8020_v34, %v8019_v12  ;;  %v13669_v17 = vsel %vm7195_vm6, %v8101_v45, %v8100_v51  ;;  %v11798_v31 = vld [vmem:[%s11986_s18 + $0x128] sm:$0xff]   ;;  %v11803_v12 = vld [vmem:[%s11986_s18 + $0x150] sm:$0xff]   ;;  %v11804_v51 = vld [vmem:[%s11986_s18 + $0x158] sm:$0xff]  }
 0x638   : > { %v7766_v7 = vpack.c.b16 %v13639_v16, %v13639_v16  ;;  %v11797_v16 = vld [vmem:[%s11986_s18 + $0x120] sm:$0xff]   ;;  %v7860_v61 = vpack.c.b16 %v13660_v22, %v13660_v22  ;;  %v7941_v8 = vpack.c.b16 %v13663_v1, %v13663_v1  ;;  %v11802_v55 = vld [vmem:[%s11986_s18 + $0x148] sm:$0xff]   ;;  %v8022_v15 = vpack.c.b16 %v13666_v5, %v13666_v5  ;;  %v11807_v49 = vld [vmem:[%s11986_s18 + $0x170] sm:$0xff]  }
 0x639   : > { %10912 = vmatpush3.bf16.msra.mxu1 %v11767_v35  ;;  %v11806_v28 = vld [vmem:[%s11986_s18 + $0x168] sm:$0xff]   ;;  %v11808_v42 = vld [vmem:[%s11986_s18 + $0x178] sm:$0xff]   ;;  %v11809_v29 = vld [vmem:[%s11986_s18 + $0x180] sm:$0xff]   ;;  %v8103_v34 = vpack.c.b16 %v13669_v17, %v13669_v17  ;;  %v8197_v5 = vpack.c.b16 %v13648_v27, %v13648_v27 }
 0x63a   : > { %10913 = vmatprep.subr.bf16.mxu1 %v13925_v57  ;;  %v11810_v45 = vld [vmem:[%s11986_s18 + $0x188] sm:$0xff]   ;;  %v11811_v35 = vld [vmem:[%s11986_s18 + $0x190] sm:$0xff]   ;;  %v11812_v22 = vld [vmem:[%s11986_s18 + $0x198] sm:$0xff]  }
 0x63b   : > { %v11813_v1 = vld [vmem:[%s11986_s18 + $0x1a0] sm:$0xff]   ;;  %v11814_v17 = vld [vmem:[%s11986_s18 + $0x1a8] sm:$0xff]  }
 0x63c   : > { %v11817_v27 = vld [vmem:[%s11986_s18 + $0x1c0] sm:$0xff]  }
 0x63d   : > { %10914 = vmatpush3.bf16.msra.mxu1 %v11768_v53  ;;  %v11815_v53 = vld [vmem:[%s11986_s18 + $0x1b0] sm:$0xff]  }
 0x63e   : > { %10919 = vmatprep.subr.bf16.mxu1 %v13925_v57 }
 0x640   : > { %10916 = vmatmul.mubr.msk.bf16.vlgmr.msra.gmra.mrb[84].mxu1 %vm7222_vm7, %v7268_v10  ;;  %v8278_v10 = vpack.c.b16 %v13651_v25, %v13651_v25  ;;  %v11820_v25 = vld [vmem:[%s11986_s18 + $0x1d8] sm:$0xff]  }
 0x641   : > { %10920 = vmatpush3.bf16.msra.mxu1 %v11769_v48  ;;  %10927 = vmatprep.mubr.msk.bf16.mxu1 %vm11835_vm5, %v13925_v57  ;;  %v11816_v48 = vld [vmem:[%s11986_s18 + $0x1b8] sm:$0xff]  }
 0x642   : > { %10921 = vmatprep.subr.bf16.mxu1 %v13925_v57 }
 0x645   : > { %10922 = vmatpush3.bf16.msra.mxu1 %v11770_v58  ;;  %v11818_v58 = vld [vmem:[%s11986_s18 + $0x1c8] sm:$0xff]  }
 0x646   : > { %10923 = vmatprep.subr.bf16.mxu1 %v13925_v57 }
 0x649   : > { %10924 = vmatpush3.bf16.msra.mxu1 %v11771_v59 }
 0x64a   : > { %10925 = vmatprep.subr.bf16.mxu1 %v13925_v57 }
 0x64d   : > { %10926 = vmatpush3.bf16.msra.mxu1 %v11772_v33 }
 0x64e   : > { %10931 = vmatprep.subr.bf16.mxu1 %v13925_v57 }
 0x650   : > { %10928 = vmatmul.mubr.msk.bf16.vlgmr.msra.gmra.mrb[88].mxu1 %vm7222_vm7, %v7348_v36  ;;  %v11819_v36 = vld [vmem:[%s11986_s18 + $0x1d0] sm:$0xff]  }
 0x651   : > { %10932 = vmatpush3.bf16.msra.mxu1 %v11773_v26  ;;  %10939 = vmatprep.mubr.msk.bf16.mxu1 %vm11835_vm5, %v13925_v57 }
 0x652   : > { %10933 = vmatprep.subr.bf16.mxu1 %v13925_v57 }
 0x655   : > { %10934 = vmatpush3.bf16.msra.mxu1 %v11774_v43 }
 0x656   : > { %10935 = vmatprep.subr.bf16.mxu1 %v13925_v57 }
 0x659   : > { %10936 = vmatpush3.bf16.msra.mxu1 %v11775_v9  ;;  %v11821_v9 = vld [vmem:[%s11986_s18 + $0x1e0] sm:$0xff]  }
 0x65a   : > { %10937 = vmatprep.subr.bf16.mxu1 %v13925_v57 }
 0x65d   : > { %10938 = vmatpush3.bf16.msra.mxu1 %v11776_v44  ;;  %v8359_v44 = vpack.c.b16 %v13654_v56, %v13654_v56  ;;  %v11824_v56 = vld [vmem:[%s11986_s18 + $0x1f8] sm:$0xff]  }
 0x65e   : > { %10943 = vmatprep.subr.bf16.mxu1 %v13925_v57 }
 0x660   : > { %10940 = vmatmul.mubr.msk.bf16.vlgmr.msra.gmra.mrb[92].mxu1 %vm7222_vm7, %v7429_v40 }
 0x661   : > { %10944 = vmatpush3.bf16.msra.mxu1 %v11777_v39  ;;  %10951 = vmatprep.mubr.msk.bf16.mxu1 %vm11835_vm5, %v13925_v57  ;;  %v11822_v39 = vld [vmem:[%s11986_s18 + $0x1e8] sm:$0xff]  }
 0x662   : > { %10945 = vmatprep.subr.bf16.mxu1 %v13925_v57 }
 0x665   : > { %10946 = vmatpush3.bf16.msra.mxu1 %v11778_v6 }
 0x666   : > { %10947 = vmatprep.subr.bf16.mxu1 %v13925_v57 }
 0x669   : > { %10948 = vmatpush3.bf16.msra.mxu1 %v11779_v24 }
 0x66a   : > { %10949 = vmatprep.subr.bf16.mxu1 %v13925_v57 }
 0x66d   : > { %10950 = vmatpush3.bf16.msra.mxu1 %v11780_v41 }
 0x66e   : > { %10955 = vmatprep.subr.bf16.mxu1 %v13925_v57 }
 0x670   : > { %10952 = vmatmul.mubr.msk.bf16.vlgmr.msra.gmra.mrb[96].mxu1 %vm7222_vm7, %v7523_v21 }
 0x671   : > { %10956 = vmatpush3.bf16.msra.mxu1 %v11781_v47  ;;  %10963 = vmatprep.mubr.msk.bf16.mxu1 %vm11835_vm5, %v13925_v57  ;;  %v11823_v47 = vld [vmem:[%s11986_s18 + $0x1f0] sm:$0xff]  }
 0x672   : > { %10957 = vmatprep.subr.bf16.mxu1 %v13925_v57 }
 0x675   : > { %10958 = vmatpush3.bf16.msra.mxu1 %v11782_v38  ;;  %v8440_v38 = vpack.c.b16 %v13657_v23, %v13657_v23 }
 0x676   : > { %10959 = vmatprep.subr.bf16.mxu1 %v13925_v57 }
 0x679   : > { %10960 = vmatpush3.bf16.msra.mxu1 %v11783_v18 }
 0x67a   : > { %10961 = vmatprep.subr.bf16.mxu1 %v13925_v57 }
 0x67d   : > { %10962 = vmatpush3.bf16.msra.mxu1 %v11784_v4 }
 0x67e   : > { %10967 = vmatprep.subr.bf16.mxu1 %v13925_v57 }
 0x680   : > { %10964 = vmatmul.mubr.msk.bf16.vlgmr.msra.gmra.mrb[100].mxu1 %vm7222_vm7, %v7604_v3 }
 0x681   : > { %10968 = vmatpush3.bf16.msra.mxu1 %v11785_v14  ;;  %10975 = vmatprep.mubr.msk.bf16.mxu1 %vm11835_vm5, %v13925_v57 }
 0x682   : > { %10969 = vmatprep.subr.bf16.mxu1 %v13925_v57 }
 0x685   : > { %10970 = vmatpush3.bf16.msra.mxu1 %v11786_v50 }
 0x686   : > { %10971 = vmatprep.subr.bf16.mxu1 %v13925_v57 }
 0x689   : > { %10972 = vmatpush3.bf16.msra.mxu1 %v11787_v46 }
 0x68a   : > { %10973 = vmatprep.subr.bf16.mxu1 %v13925_v57 }
 0x68d   : > { %10974 = vmatpush3.bf16.msra.mxu1 %v11788_v63 }
 0x68e   : > { %10979 = vmatprep.subr.bf16.mxu1 %v13925_v57 }
 0x690   : > { %10976 = vmatmul.mubr.msk.bf16.vlgmr.msra.gmra.mrb[104].mxu1 %vm7222_vm7, %v7685_v11 }
 0x691   : > { %10980 = vmatpush3.bf16.msra.mxu1 %v11789_v13  ;;  %10987 = vmatprep.mubr.msk.bf16.mxu1 %vm11835_vm5, %v13925_v57 }
 0x692   : > { %10981 = vmatprep.subr.bf16.mxu1 %v13925_v57 }
 0x695   : > { %10982 = vmatpush3.bf16.msra.mxu1 %v11790_v32 }
 0x696   : > { %10983 = vmatprep.subr.bf16.mxu1 %v13925_v57 }
 0x699   : > { %10984 = vmatpush3.bf16.msra.mxu1 %v11791_v0 }
 0x69a   : > { %10985 = vmatprep.subr.bf16.mxu1 %v13925_v57 }
 0x69d   : > { %10986 = vmatpush3.bf16.msra.mxu1 %v11792_v52 }
 0x69e   : > { %10991 = vmatprep.subr.bf16.mxu1 %v13925_v57 }
 0x6a0   : > { %10988 = vmatmul.mubr.msk.bf16.vlgmr.msra.gmra.mrb[108].mxu1 %vm7222_vm7, %v7766_v7 }
 0x6a1   : > { %10992 = vmatpush3.bf16.msra.mxu1 %v11793_v62  ;;  %10999 = vmatprep.mubr.msk.bf16.mxu1 %vm11835_vm5, %v13925_v57 }
 0x6a2   : > { %10993 = vmatprep.subr.bf16.mxu1 %v13925_v57 }
 0x6a5   : > { %10994 = vmatpush3.bf16.msra.mxu1 %v11794_v2 }
 0x6a6   : > { %10995 = vmatprep.subr.bf16.mxu1 %v13925_v57 }
 0x6a9   : > { %10996 = vmatpush3.bf16.msra.mxu1 %v11795_v60 }
 0x6aa   : > { %10997 = vmatprep.subr.bf16.mxu1 %v13925_v57 }
 0x6ad   : > { %10998 = vmatpush3.bf16.msra.mxu1 %v11796_v54 }
 0x6ae   : > { %11003 = vmatprep.subr.bf16.mxu1 %v13925_v57 }
 0x6b0   : > { %11000 = vmatmul.mubr.msk.bf16.vlgmr.msra.gmra.mrb[112].mxu1 %vm7222_vm7, %v7860_v61 }
 0x6b1   : > { %11004 = vmatpush3.bf16.msra.mxu1 %v11797_v16  ;;  %11011 = vmatprep.mubr.msk.bf16.mxu1 %vm11835_vm5, %v13925_v57 }
 0x6b2   : > { %11005 = vmatprep.subr.bf16.mxu1 %v13925_v57 }
 0x6b5   : > { %11006 = vmatpush3.bf16.msra.mxu1 %v11798_v31 }
 0x6b6   : > { %11007 = vmatprep.subr.bf16.mxu1 %v13925_v57 }
 0x6b9   : > { %11008 = vmatpush3.bf16.msra.mxu1 %v11799_v20 }
 0x6ba   : > { %11009 = vmatprep.subr.bf16.mxu1 %v13925_v57 }
 0x6bd   : > { %11010 = vmatpush3.bf16.msra.mxu1 %v11800_v37 }
 0x6be   : > { %11015 = vmatprep.subr.bf16.mxu1 %v13925_v57 }
 0x6c0   : > { %11012 = vmatmul.mubr.msk.bf16.vlgmr.msra.gmra.mrb[116].mxu1 %vm7222_vm7, %v7941_v8 }
 0x6c1   : > { %11016 = vmatpush3.bf16.msra.mxu1 %v11801_v19  ;;  %11023 = vmatprep.mubr.msk.bf16.mxu1 %vm11835_vm5, %v13925_v57 }
 0x6c2   : > { %11017 = vmatprep.subr.bf16.mxu1 %v13925_v57 }
 0x6c5   : > { %11018 = vmatpush3.bf16.msra.mxu1 %v11802_v55 }
 0x6c6   : > { %11019 = vmatprep.subr.bf16.mxu1 %v13925_v57 }
 0x6c9   : > { %11020 = vmatpush3.bf16.msra.mxu1 %v11803_v12 }
 0x6ca   : > { %11021 = vmatprep.subr.bf16.mxu1 %v13925_v57 }
 0x6cd   : > { %11022 = vmatpush3.bf16.msra.mxu1 %v11804_v51 }
 0x6ce   : > { %11027 = vmatprep.subr.bf16.mxu1 %v13925_v57 }
 0x6d0   : > { %11024 = vmatmul.mubr.msk.bf16.vlgmr.msra.gmra.mrb[120].mxu1 %vm7222_vm7, %v8022_v15 }
 0x6d1   : > { %11028 = vmatpush3.bf16.msra.mxu1 %v11805_v30  ;;  %11035 = vmatprep.mubr.msk.bf16.mxu1 %vm11835_vm5, %v13925_v57 }
 0x6d2   : > { %11029 = vmatprep.subr.bf16.mxu1 %v13925_v57 }
 0x6d5   : > { %11030 = vmatpush3.bf16.msra.mxu1 %v11806_v28 }
 0x6d6   : > { %11031 = vmatprep.subr.bf16.mxu1 %v13925_v57 }
 0x6d9   : > { %11032 = vmatpush3.bf16.msra.mxu1 %v11807_v49 }
 0x6da   : > { %11033 = vmatprep.subr.bf16.mxu1 %v13925_v57 }
 0x6dd   : > { %11034 = vmatpush3.bf16.msra.mxu1 %v11808_v42 }
 0x6de   : > { %11039 = vmatprep.subr.bf16.mxu1 %v13925_v57 }
 0x6e0   : > { %11036 = vmatmul.mubr.msk.bf16.vlgmr.msra.gmra.mrb[124].mxu1 %vm7222_vm7, %v8103_v34 }
 0x6e1   : > { %11040 = vmatpush3.bf16.msra.mxu1 %v11809_v29  ;;  %11047 = vmatprep.mubr.msk.bf16.mxu1 %vm11835_vm5, %v13925_v57 }
 0x6e2   : > { %11041 = vmatprep.subr.bf16.mxu1 %v13925_v57 }
 0x6e5   : > { %11042 = vmatpush3.bf16.msra.mxu1 %v11810_v45 }
 0x6e6   : > { %11043 = vmatprep.subr.bf16.mxu1 %v13925_v57 }
 0x6e9   : > { %11044 = vmatpush3.bf16.msra.mxu1 %v11811_v35 }
 0x6ea   : > { %11045 = vmatprep.subr.bf16.mxu1 %v13925_v57 }
 0x6ed   : > { %11046 = vmatpush3.bf16.msra.mxu1 %v11812_v22 }
 0x6ee   : > { %11051 = vmatprep.subr.bf16.mxu1 %v13925_v57 }
 0x6f0   : > { %11048 = vmatmul.mubr.msk.bf16.vlgmr.msra.gmra.mrb[128].mxu1 %vm7222_vm7, %v8197_v5 }
 0x6f1   : > { %11052 = vmatpush3.bf16.msra.mxu1 %v11813_v1  ;;  %11059 = vmatprep.mubr.msk.bf16.mxu1 %vm11835_vm5, %v13925_v57 }
 0x6f2   : > { %11053 = vmatprep.subr.bf16.mxu1 %v13925_v57 }
 0x6f5   : > { %11054 = vmatpush3.bf16.msra.mxu1 %v11814_v17 }
 0x6f6   : > { %11055 = vmatprep.subr.bf16.mxu1 %v13925_v57 }
 0x6f9   : > { %11056 = vmatpush3.bf16.msra.mxu1 %v11815_v53 }
 0x6fa   : > { %11057 = vmatprep.subr.bf16.mxu1 %v13925_v57 }
 0x6fd   : > { %11058 = vmatpush3.bf16.msra.mxu1 %v11816_v48 }
 0x6fe   : > { %11063 = vmatprep.subr.bf16.mxu1 %v13925_v57 }
 0x700   : > { %11060 = vmatmul.mubr.msk.bf16.vlgmr.msra.gmra.mrb[132].mxu1 %vm7222_vm7, %v8278_v10 }
 0x701   : > { %11064 = vmatpush3.bf16.msra.mxu1 %v11817_v27  ;;  %11071 = vmatprep.mubr.msk.bf16.mxu1 %vm11835_vm5, %v13925_v57 }
 0x702   : > { %11065 = vmatprep.subr.bf16.mxu1 %v13925_v57 }
 0x703   : > { %v7260_v59 = vpop.f32.mrb[80].mxu1 }
 0x704   : > { %v10905_v33 = vpop.f32.mrb[81].mxu1 }
 0x705   : > { %11066 = vmatpush3.bf16.msra.mxu1 %v11818_v58  ;;  %v7263_v26 = vpop.f32.mrb[82].mxu1 }
 0x706   : > { %v10906_v43 = vpop.f32.mrb[83].mxu1  ;;  %11067 = vmatprep.subr.bf16.mxu1 %v13925_v57 }
 0x709   : > { %11068 = vmatpush3.bf16.msra.mxu1 %v11819_v36 }
 0x70a   : > { %11069 = vmatprep.subr.bf16.mxu1 %v13925_v57 }
 0x70d   : > { %11070 = vmatpush3.bf16.msra.mxu1 %v11820_v25 }
 0x70e   : > { %11075 = vmatprep.subr.bf16.mxu1 %v13925_v57 }
 0x710   : > { %11072 = vmatmul.mubr.msk.bf16.vlgmr.msra.gmra.mrb[136].mxu1 %vm7222_vm7, %v8359_v44 }
 0x711   : > { %11076 = vmatpush3.bf16.msra.mxu1 %v11821_v9  ;;  %11083 = vmatprep.mubr.msk.bf16.mxu1 %vm11835_vm5, %v13925_v57 }
 0x712   : > { %11077 = vmatprep.subr.bf16.mxu1 %v13925_v57 }
 0x713   : > { %v7330_v40 = vpop.f32.mrb[84].mxu1 }
 0x714   : > { %v7331_v6 = vadd.f32 %v7330_v40, %v7260_v59  ;;  %v10917_v24 = vpop.f32.mrb[85].mxu1 }
 0x715   : > { %v7333_v41 = vpop.f32.mrb[86].mxu1  ;;  %11078 = vmatpush3.bf16.msra.mxu1 %v11822_v39 }
 0x716   : > { %v10918_v21 = vpop.f32.mrb[87].mxu1  ;;  %11079 = vmatprep.subr.bf16.mxu1 %v13925_v57 }
 0x719   : > { %11080 = vmatpush3.bf16.msra.mxu1 %v11823_v47 }
 0x71a   : > { %11081 = vmatprep.subr.bf16.mxu1 %v13925_v57 }
 0x71d   : > { %11082 = vmatpush3.bf16.msra.mxu1 %v11824_v56 }
 0x720   : > { %11084 = vmatmul.mubr.msk.bf16.vlgmr.msra.gmra.mrb[140].mxu1 %vm7222_vm7, %v8440_v38 }
 0x723   : > { %v7410_v18 = vpop.f32.mrb[88].mxu1 }
 0x724   : > { %v7416_v4 = vadd.f32 %v7410_v18, %v7331_v6  ;;  %v10929_v14 = vpop.f32.mrb[89].mxu1 }
 0x725   : > { %v7413_v3 = vpop.f32.mrb[90].mxu1  ;;  %v9650_v14 = vld [vmem:[%s374_s29] ss:$0 sm:$0xff] }
 0x726   : > { %v10930_v50 = vpop.f32.mrb[91].mxu1 }
 0x733   : > { %v7491_v46 = vpop.f32.mrb[92].mxu1 }
 0x734   : > { %v7497_v63 = vadd.f32 %v7491_v46, %v7416_v4  ;;  %v10941_v13 = vpop.f32.mrb[93].mxu1 }
 0x735   : > { %v7494_v11 = vpop.f32.mrb[94].mxu1 }
 0x736   : > { %v10942_v32 = vpop.f32.mrb[95].mxu1 }
 0x743   : > { %v7585_v0 = vpop.f32.mrb[96].mxu1 }
 0x744   : > { %v7591_v52 = vadd.f32 %v7585_v0, %v7497_v63  ;;  %v10953_v62 = vpop.f32.mrb[97].mxu1 }
 0x745   : > { %v7588_v57 = vpop.f32.mrb[98].mxu1 }
 0x746   : > { %v10954_v7 = vpop.f32.mrb[99].mxu1 }
 0x753   : > { %v7666_v2 = vpop.f32.mrb[100].mxu1 }
 0x754   : > { %v7672_v60 = vadd.f32 %v7666_v2, %v7591_v52  ;;  %v10965_v23 = vpop.f32.mrb[101].mxu1 }
 0x755   : > { %v7669_v54 = vpop.f32.mrb[102].mxu1 }
 0x756   : > { %v10966_v16 = vpop.f32.mrb[103].mxu1 }
 0x763   : > { %v7747_v61 = vpop.f32.mrb[104].mxu1 }
 0x764   : > { %v7753_v31 = vadd.f32 %v7747_v61, %v7672_v60  ;;  %v10977_v20 = vpop.f32.mrb[105].mxu1 }
 0x765   : > { %v7750_v37 = vpop.f32.mrb[106].mxu1 }
 0x766   : > { %v10978_v19 = vpop.f32.mrb[107].mxu1 }
 0x773   : > { %v7828_v8 = vpop.f32.mrb[108].mxu1 }
 0x774   : > { %v7834_v55 = vadd.f32 %v7828_v8, %v7753_v31  ;;  %v10989_v12 = vpop.f32.mrb[109].mxu1 }
 0x775   : > { %v7831_v51 = vpop.f32.mrb[110].mxu1 }
 0x776   : > { %v10990_v30 = vpop.f32.mrb[111].mxu1 }
 0x783   : > { %v7922_v15 = vpop.f32.mrb[112].mxu1 }
 0x784   : > { %v7928_v28 = vadd.f32 %v7922_v15, %v7834_v55  ;;  %v11001_v49 = vpop.f32.mrb[113].mxu1 }
 0x785   : > { %v7925_v42 = vpop.f32.mrb[114].mxu1 }
 0x786   : > { %v11002_v29 = vpop.f32.mrb[115].mxu1 }
 0x793   : > { %v8003_v34 = vpop.f32.mrb[116].mxu1 }
 0x794   : > { %v8009_v45 = vadd.f32 %v8003_v34, %v7928_v28  ;;  %v11013_v35 = vpop.f32.mrb[117].mxu1 }
 0x795   : > { %v8006_v22 = vpop.f32.mrb[118].mxu1 }
 0x796   : > { %v11014_v1 = vpop.f32.mrb[119].mxu1 }
 0x7a3   : > { %v8084_v5 = vpop.f32.mrb[120].mxu1 }
 0x7a4   : > { %v8090_v17 = vadd.f32 %v8084_v5, %v8009_v45  ;;  %v11025_v53 = vpop.f32.mrb[121].mxu1 }
 0x7a5   : > { %v8087_v48 = vpop.f32.mrb[122].mxu1 }
 0x7a6   : > { %v11026_v27 = vpop.f32.mrb[123].mxu1 }
 0x7b3   : > { %v8165_v10 = vpop.f32.mrb[124].mxu1 }
 0x7b4   : > { %v8171_v58 = vadd.f32 %v8165_v10, %v8090_v17  ;;  %v11037_v59 = vpop.f32.mrb[125].mxu1 }
 0x7b5   : > { %v8168_v33 = vpop.f32.mrb[126].mxu1 }
 0x7b6   : > { %v11038_v26 = vpop.f32.mrb[127].mxu1 }
 0x7c3   : > { %v8259_v36 = vpop.f32.mrb[128].mxu1 }
 0x7c4   : > { %v8265_v43 = vadd.f32 %v8259_v36, %v8171_v58  ;;  %v11049_v25 = vpop.f32.mrb[129].mxu1 }
 0x7c5   : > { %v8262_v9 = vpop.f32.mrb[130].mxu1 }
 0x7c6   : > { %v11050_v44 = vpop.f32.mrb[131].mxu1 }
 0x7d3   : > { %v8340_v39 = vpop.f32.mrb[132].mxu1 }
 0x7d4   : > { %v8346_v40 = vadd.f32 %v8340_v39, %v8265_v43  ;;  %v11061_v6 = vpop.f32.mrb[133].mxu1 }
 0x7d5   : > { %v8343_v24 = vpop.f32.mrb[134].mxu1 }
 0x7d6   : > { %v11062_v41 = vpop.f32.mrb[135].mxu1 }
 0x7e3   : > { %v8421_v47 = vpop.f32.mrb[136].mxu1 }
 0x7e4   : > { %v8427_v21 = vadd.f32 %v8421_v47, %v8346_v40  ;;  %v11073_v56 = vpop.f32.mrb[137].mxu1 }
 0x7e5   : > { %v8424_v38 = vpop.f32.mrb[138].mxu1 }
 0x7e6   : > { %v11074_v18 = vpop.f32.mrb[139].mxu1 }
 0x7f3   : > { %v8502_v4 = vpop.f32.mrb[140].mxu1 }
 0x7f4   : > { %v8508_v3 = vadd.f32 %v8502_v4, %v8427_v21  ;;  %v11085_v50 = vpop.f32.mrb[141].mxu1 }
 0x7f5   : > { %v8505_v46 = vpop.f32.mrb[142].mxu1 }
 0x7f6   : > { %v8516_v63 = vadd.f32 %v9650_v14, %v8508_v3  ;;  %v11086_v13 = vpop.f32.mrb[143].mxu1 }
 0x7f8   : > { %v8517_v11 = vmax.f32 %v8516_v63, 0.0 }
 0x7fa   : > { %8518 = vst [vmem:[%s378_s10] sm:$0x3] %v8517_v11 }
 0x7fb PF: > { %s17_s24 = sadd.s32 1, %s11831_s24  }
 0x7fc   : > { %p14_p4 = scmp.ge.s32.totalorder %s17_s24, 5  }
 0x7fe   :  { %16 = sbr.rel (!%p14_p4) target bundleno = 1 (0x1), region = 162 }

</bundles_post_ra>
